<compile_context>
chip_gen: v5e
topology: v5e:2x2
jax: 0.10.0
libtpu: 0.0.40
codegen_flags: <defaults>
</compile_context>

<pallas_src>
import functools
import math

import jax
import jax.numpy as jnp
from jax.experimental import pallas as pl
from jax.experimental.pallas import tpu as pltpu

MXU_DTYPE = jnp.bfloat16     # MXU operand dtype (accumulation is always f32)
LN_EPS = 1e-5                # nn.LayerNorm default eps
SUBLANE = 8


def _round_up(n, m):
    return (n + m - 1) // m * m


def _cdiv(a, b):
    return -(-a // b)


def _choose_tb(batch, L):
    """Samples packed per grid step.

    TB*L is a multiple of 128 (BlockSpec lane tiling), targets ~256 lanes
    (v6e/v7x MXU width; >=128 for v5e), and is capped near ceil(B/2) so real
    batches keep >= 2 grid steps for v7x's two TensorCores.
    """
    q = 128 // math.gcd(L, 128)                 # lane quantum, in samples
    tb = q * max(1, _cdiv(256, q * L))          # ~256 lanes per grid step
    half = q * max(1, _cdiv(_cdiv(batch, 2), q))
    return min(tb, half)


def _all_specs(plan):
    out = []
    for entry in plan:
        if entry[0] == "conv":
            out.append(entry[1])
        else:
            out.extend(entry[1])
    return out


# ----------------------------------------------------------------------------
# Fused whole-network kernel (one pallas_call for the entire forward pass)
# ----------------------------------------------------------------------------
def _make_fused_kernel(plan, L, TB):
    N = TB * L  # lane width per grid step (TB samples packed along lanes)

    def kernel(x_ref, w_ref, b_ref, g_ref, bt_ref, r_ref, e_ref, o_ref):
        # Per-lane position within its sample (lane = sample*L + position).
        pos = jax.lax.broadcasted_iota(jnp.int32, (1, N), 1) % L

        def conv_ln_relu(h, spec):
            K, cin, cout = spec["K"], spec["cin"], spec["cout"]
            woff, lnoff, relu = spec["woff"], spec["lnoff"], spec["relu"]
            pad_l = (K - 1) // 2
            # im2col as a traced value: row k*cin + i == x[i, pos + k - pad_l],
            # zero outside the sample ('same' padding).  Lane-packed samples
            # are kept separate by masking on (lane % L).
            pieces = []
            for k in range(K):
                off = k - pad_l
                piece = h
                if off != 0:
                    piece = pltpu.roll(h, shift=(-off) % N, axis=1)        # XLU
                    valid = jnp.logical_and(pos >= -off, pos < L - off)
                    piece = jnp.where(valid, piece, 0.0)                   # VPU
                pieces.append(piece)
            col = pieces[0] if K == 1 else jnp.concatenate(pieces, axis=0)
            col = col.astype(MXU_DTYPE)                                    # (K*cin, N)
            # Single lane-dense MXU contraction (bf16 operands, f32 accumulate),
            # trimmed to exactly K*cin contraction rows.
            w = w_ref[woff:woff + cout, :K * cin]                          # bf16
            acc = jnp.dot(w, col, preferred_element_type=jnp.float32)      # (cout, N)
            acc = acc + b_ref[woff:woff + cout, :]                         # f32 bias
            if lnoff is not None:
                # nn.LayerNorm((cout, L)): per-sample mean/var over the whole
                # (channels, winsize) slab.  Per-sample segment reduction over
                # each L-lane stripe via two tiny selector matmuls:
                #   R: (N, TB) sums each sample's lanes, E: (TB, N) broadcasts back.
                nrm = 1.0 / float(cout * L)
                s1 = jnp.sum(acc, axis=0, keepdims=True)                   # (1, N)
                mu = jnp.dot(jnp.dot(s1, r_ref[...],
                                     preferred_element_type=jnp.float32),
                             e_ref[...],
                             preferred_element_type=jnp.float32) * nrm     # (1, N)
                d = acc - mu
                s2 = jnp.sum(d * d, axis=0, keepdims=True)
                var = jnp.dot(jnp.dot(s2, r_ref[...],
                                      preferred_element_type=jnp.float32),
                              e_ref[...],
                              preferred_element_type=jnp.float32) * nrm
                acc = d * jax.lax.rsqrt(var + LN_EPS)
                acc = acc * g_ref[lnoff:lnoff + cout, :] + bt_ref[lnoff:lnoff + cout, :]
            if relu:
                acc = jnp.maximum(acc, 0.0)
            return acc

        h = x_ref[...]                                  # (cin_pad, N) f32
        for entry in plan:
            if entry[0] == "conv":                      # head / tail conv
                h = conv_ln_relu(h, entry[1])
            else:                                       # ResBlockMAE: relu(id(x) + c(x))
                specs = entry[1]
                idb = conv_ln_relu(h, specs[0])
                y = h
                for s in specs[1:]:
                    y = conv_ln_relu(y, s)
                h = jnp.maximum(idb + y, 0.0)
        o_ref[...] = h.astype(o_ref.dtype)              # dense (cout_pad, N) store

    return kernel


def mae_alpha_apply(plan, params, x_packed, *, L, TB, cout_pad):
    """x_packed: (cin_pad, Bp*L) f32, lane = sample*L + position."""
    cin_pad, total_lanes = x_packed.shape
    N = TB * L
    steps = total_lanes // N
    kernel = _make_fused_kernel(plan, L, TB)

    # Advisory cost estimate so XLA schedules the surrounding ops sensibly.
    flops = 0
    transcendentals = 0
    for s in _all_specs(plan):
        flops += 2 * s["cout"] * s["K"] * s["cin"] * N
        if s["lnoff"] is not None:
            flops += 8 * N * TB            # four tiny LN-stat selector matmuls
            transcendentals += N           # rsqrt row
    param_bytes = sum(int(p.size) * p.dtype.itemsize for p in params)
    cost = pl.CostEstimate(
        flops=int(flops) * steps,
        transcendentals=int(transcendentals) * steps,
        bytes_accessed=int(x_packed.size) * 4 + cout_pad * total_lanes * 4 + param_bytes,
    )

    # All parameter slabs use constant index_maps: DMA'd once, VMEM-resident.
    const_specs = [pl.BlockSpec(p.shape, lambda i: (0, 0)) for p in params]
    return pl.pallas_call(
        kernel,
        out_shape=jax.ShapeDtypeStruct((cout_pad, total_lanes), jnp.float32),
        grid=(steps,),
        in_specs=[pl.BlockSpec((cin_pad, N), lambda i: (0, i))] + const_specs,
        out_specs=pl.BlockSpec((cout_pad, N), lambda i: (0, i)),
        compiler_params=pltpu.CompilerParams(
            dimension_semantics=("parallel",)),   # batch steps across v7x TCs
        cost_estimate=cost,
    )(x_packed, *params)


# ----------------------------------------------------------------------------
# Parameters: packed, kernel-ready
# ----------------------------------------------------------------------------
def _conv_init(key, cin, cout, K):
    # TODO(synk): PyTorch Conv1d uses kaiming-uniform init; a scaled normal is
    # used here (only matters vs. a default-initialised torch model).
    kw, kb = jax.random.split(key)
    scale = 1.0 / jnp.sqrt(jnp.float32(cin * K))
    w = jax.random.normal(kw, (cout, cin, K), jnp.float32) * scale
    b = jax.random.normal(kb, (cout,), jnp.float32) * 0.01
    return w, b


def build_mae_alpha(key, in_channels, dims, winsize, TB):
    """Returns (plan, params, cin_pad, cout_pad).

    plan:   static per-layer specs consumed by the fused kernel.
    params: (w_slab bf16, bias_slab f32, ln_gamma f32, ln_beta f32, R, E).
    """
    assert all(d % SUBLANE == 0 for d in dims), "hidden dims must be multiples of 8"
    L = winsize
    N = TB * L
    cin_pad = _round_up(in_channels, SUBLANE)
    cout_pad = _round_up(in_channels, SUBLANE)

    n_res = 2 * (len(dims) - 1)
    keys = iter(jax.random.split(key, n_res + 2))

    conv_items = []                       # (w (cout_p, cin_p, K), b (cout_p,))
    plan = []
    offs = {"w": 0, "ln": 0}

    def add_conv(k, cin, cout, K, ln, relu, cin_store=None, cout_store=None):
        cin_p = cin if cin_store is None else cin_store
        cout_p = cout if cout_store is None else cout_store
        w, b = _conv_init(k, cin, cout, K)
        if cin_p != cin:                  # zero columns: numerics unchanged
            w = jnp.pad(w, ((0, 0), (0, cin_p - cin), (0, 0)))
        if cout_p != cout:                # zero rows: padded outputs are zero
            w = jnp.pad(w, ((0, cout_p - cout), (0, 0), (0, 0)))
            b = jnp.pad(b, (0, cout_p - cout))
        spec = dict(K=K, cin=cin_p, cout=cout_p, woff=offs["w"],
                    lnoff=(offs["ln"] if ln else None), relu=relu)
        offs["w"] += cout_p
        if ln:
            offs["ln"] += cout_p
        conv_items.append((w, b))
        return spec

    def add_res(cin, cout):
        ks = iter(jax.random.split(next(keys), 4))
        sid = add_conv(next(ks), cin, cout, 1, True, False)   # identity: 1x1 + LN
        s1 = add_conv(next(ks), cin, cout, 3, True, True)     # main: 3x(conv3+LN+ReLU)
        s2 = add_conv(next(ks), cout, cout, 3, True, True)
        s3 = add_conv(next(ks), cout, cout, 3, True, True)
        plan.append(("res", [sid, s1, s2, s3]))

    # encoder head: Conv1d(in, dims[0], 9, 'same') + LN + ReLU
    plan.append(("conv", add_conv(next(keys), in_channels, dims[0], 9, True, True,
                                  cin_store=cin_pad)))
    for i in range(len(dims) - 1):                  # encoder ResBlocks
        add_res(dims[i], dims[i + 1])
    for i in range(len(dims) - 1, 0, -1):           # decoder ResBlocks
        add_res(dims[i], dims[i - 1])
    # decoder tail: Conv1d(dims[0], in, 9, 'same'), out channels padded to 8
    plan.append(("conv", add_conv(next(keys), dims[0], in_channels, 9, False, False,
                                  cout_store=cout_pad)))

    # ---- pack consolidated parameter slabs ---------------------------------
    slab_cols = max(w.shape[2] * w.shape[1] for (w, _) in conv_items)  # max K*cin
    w_rows, b_rows = [], []
    for w, b in conv_items:
        cout_p, cin_p, K = w.shape
        w2d = jnp.transpose(w, (0, 2, 1)).reshape(cout_p, K * cin_p)   # col k*cin+i
        w_rows.append(jnp.pad(w2d, ((0, 0), (0, slab_cols - K * cin_p))))
        b_rows.append(b.reshape(cout_p, 1))
    w_slab = jnp.concatenate(w_rows, axis=0).astype(MXU_DTYPE)         # bf16 MXU weights
    b_slab = jnp.concatenate(b_rows, axis=0)                           # f32 bias

    # LayerNorm affine params (nn.LayerNorm default init: weight=1, bias=0),
    # pre-tiled to the lane-packed (C, TB*L) layout (no in-kernel broadcast).
    g_slab = jnp.ones((offs["ln"], N), jnp.float32)
    bt_slab = jnp.zeros((offs["ln"], N), jnp.float32)

    # Per-sample segment selector (sum over each sample's L lanes) + broadcast.
    seg = jnp.arange(N, dtype=jnp.int32) // L
    R = (seg[:, None] == jnp.arange(TB, dtype=jnp.int32)[None, :]).astype(jnp.float32)
    E = R.T

    params = (w_slab, b_slab, g_slab, bt_slab, R, E)
    return plan, params, cin_pad, cout_pad


# ----------------------------------------------------------------------------
# Forward (masking + layout packing in plain JAX, everything else fused)
# ----------------------------------------------------------------------------
def mae_alpha_forward(plan, params, x, mask_key, *, winsize, in_channels,
                      cin_pad, cout_pad, TB, maskpct=0.25):
    L = winsize
    B = x.size // (in_channels * L)
    x = x.reshape(B, in_channels, L).astype(jnp.float32)     # x.view(-1, C, W)

    # Random masking: rand(B,1,W) < maskpct, expanded to the 3 channels,
    # masked positions replaced with N(0,1) noise (matches the torch forward).
    # TODO(synk): torch's RNG stream is not reproduced bit-for-bit; jax.random is used.
    assert in_channels == 3, "reference module hard-codes a 3-channel mask expand"
    km, kn = jax.random.split(mask_key)
    mask = jax.random.uniform(km, (B, 1, L)) < maskpct
    mask = jnp.broadcast_to(mask, (B, 3, L))
    noise = jax.random.normal(kn, x.shape, jnp.float32)
    x = jnp.where(mask, noise, x)

    # Pad channels to a sublane multiple (zero weight columns -> numerics
    # unchanged) and the batch to a whole number of lane-packed grid steps.
    steps = max(1, _cdiv(B, TB))
    Bp = steps * TB
    x = jnp.pad(x, ((0, Bp - B), (0, cin_pad - in_channels), (0, 0)))
    # Lane packing: (Bp, C, L) -> (C, Bp*L); lane index = sample*L + position.
    x_packed = jnp.transpose(x, (1, 0, 2)).reshape(cin_pad, Bp * L)

    y = mae_alpha_apply(plan, params, x_packed, L=L, TB=TB, cout_pad=cout_pad)
    y = y.reshape(cout_pad, Bp, L).transpose(1, 0, 2)[:B, :in_channels, :]
    return y.reshape(B, in_channels * L)                     # flatten(start_dim=1)


# ----------------------------------------------------------------------------
if __name__ == "__main__":
    winsize = 16
    in_channels = 3          # reference mask expand is hard-coded to 3 channels
    dims = [8, 16]
    maskpct = 0.25
    batch = 32               # -> TB=16 samples/step (256 lanes), 2 grid steps

    key = jax.random.PRNGKey(0)
    kx, kp, km = jax.random.split(key, 3)
    x = jax.random.normal(kx, (batch, in_channels, winsize), jnp.float32)

    TB = _choose_tb(batch, winsize)
    plan, params, cin_pad, cout_pad = build_mae_alpha(
        kp, in_channels, dims, winsize, TB)

    fwd = jax.jit(functools.partial(
        mae_alpha_forward, plan,
        winsize=winsize, in_channels=in_channels,
        cin_pad=cin_pad, cout_pad=cout_pad, TB=TB, maskpct=maskpct))
    out = fwd(params, x, km)
    jax.block_until_ready(out)
    assert out.shape == (batch, in_channels * winsize), out.shape
    assert bool(jnp.all(jnp.isfinite(out)))
    print("KERNEL_OK")
</pallas_src>

<mosaic_0001>
module attributes {stable_mosaic.version = 11 : i64} {
  func.func @kernel(%arg0: i32, %arg1: memref<8x256xf32, #tpu.memory_space<vmem>>, %arg2: memref<112x72xbf16, #tpu.memory_space<vmem>>, %arg3: memref<112x1xf32, #tpu.memory_space<vmem>>, %arg4: memref<104x256xf32, #tpu.memory_space<vmem>>, %arg5: memref<104x256xf32, #tpu.memory_space<vmem>>, %arg6: memref<256x16xf32, #tpu.memory_space<vmem>>, %arg7: memref<16x256xf32, #tpu.memory_space<vmem>>, %arg8: memref<8x256xf32, #tpu.memory_space<vmem>>) attributes {dimension_semantics = [#tpu.dimension_semantics<parallel>], iteration_bounds = array<i64: 2>, scalar_prefetch = 0 : i64, scratch_operands = 0 : i64, tpu.core_type = #tpu.core_type<tc>, window_params = [{transform_indices = @transform_0, window_bounds = array<i64: 8, 256>}, {pipeline_mode = #tpu.pipeline_mode<synchronous>, transform_indices = @transform_1, window_bounds = array<i64: 112, 72>}, {pipeline_mode = #tpu.pipeline_mode<synchronous>, transform_indices = @transform_2, window_bounds = array<i64: 112, 1>}, {pipeline_mode = #tpu.pipeline_mode<synchronous>, transform_indices = @transform_3, window_bounds = array<i64: 104, 256>}, {pipeline_mode = #tpu.pipeline_mode<synchronous>, transform_indices = @transform_4, window_bounds = array<i64: 104, 256>}, {pipeline_mode = #tpu.pipeline_mode<synchronous>, transform_indices = @transform_5, window_bounds = array<i64: 256, 16>}, {pipeline_mode = #tpu.pipeline_mode<synchronous>, transform_indices = @transform_6, window_bounds = array<i64: 16, 256>}, {transform_indices = @transform_7, window_bounds = array<i64: 8, 256>}]} {
    %0 = tpu.iota {dimensions = array<i32: 1>} : vector<1x256xi32>
    %c16_i32 = arith.constant 16 : i32
    %c0_i32 = arith.constant 0 : i32
    %1 = arith.cmpi eq, %c16_i32, %c0_i32 : i32
    %c1_i32 = arith.constant 1 : i32
    %2 = arith.select %1, %c1_i32, %c16_i32 : i32
    %3 = vector.broadcast %2 : i32 to vector<1x256xi32>
    %4 = arith.remsi %0, %3 : vector<1x256xi32>
    %c0_i32_0 = arith.constant 0 : i32
    %5 = vector.broadcast %c0_i32_0 : i32 to vector<1x256xi32>
    %6 = arith.cmpi ne, %4, %5 : vector<1x256xi32>
    %c0_i32_1 = arith.constant 0 : i32
    %7 = vector.broadcast %c0_i32_1 : i32 to vector<1x256xi32>
    %8 = arith.cmpi slt, %4, %7 : vector<1x256xi32>
    %c0_i32_2 = arith.constant 0 : i32
    %9 = arith.cmpi slt, %2, %c0_i32_2 : i32
    %10 = vector.broadcast %9 : i1 to vector<1x256xi1>
    %11 = vector.broadcast %10 : vector<1x256xi1> to vector<1x256xi1>
    %12 = arith.xori %8, %11 : vector<1x256xi1>
    %13 = arith.andi %12, %6 : vector<1x256xi1>
    %14 = vector.broadcast %2 : i32 to vector<1x256xi32>
    %15 = arith.addi %4, %14 : vector<1x256xi32>
    %16 = arith.select %13, %15, %4 : vector<1x256xi1>, vector<1x256xi32>
    %c0 = arith.constant 0 : index
    %c0_3 = arith.constant 0 : index
    %17 = vector.load %arg1[%c0, %c0_3] : memref<8x256xf32, #tpu.memory_space<vmem>>, vector<8x256xf32>
    %c4_i32 = arith.constant 4 : i32
    %18 = tpu.dynamic_rotate %17 by %c4_i32 dim 1 : vector<8x256xf32>, i32 -> vector<8x256xf32>
    %c4_i32_4 = arith.constant 4 : i32
    %19 = vector.broadcast %c4_i32_4 : i32 to vector<1x256xi32>
    %20 = arith.cmpi sge, %16, %19 : vector<1x256xi32>
    %c20_i32 = arith.constant 20 : i32
    %21 = vector.broadcast %c20_i32 : i32 to vector<1x256xi32>
    %22 = arith.cmpi slt, %16, %21 : vector<1x256xi32>
    %23 = arith.andi %20, %22 : vector<1x256xi1>
    %cst = arith.constant 0.000000e+00 : f32
    %24 = vector.shape_cast %23 : vector<1x256xi1> to vector<1x256xi1>
    %25 = vector.broadcast %24 : vector<1x256xi1> to vector<8x256xi1>
    %26 = vector.broadcast %cst : f32 to vector<8x256xf32>
    %27 = arith.select %25, %18, %26 : vector<8x256xi1>, vector<8x256xf32>
    %c3_i32 = arith.constant 3 : i32
    %28 = tpu.dynamic_rotate %17 by %c3_i32 dim 1 : vector<8x256xf32>, i32 -> vector<8x256xf32>
    %c3_i32_5 = arith.constant 3 : i32
    %29 = vector.broadcast %c3_i32_5 : i32 to vector<1x256xi32>
    %30 = arith.cmpi sge, %16, %29 : vector<1x256xi32>
    %c19_i32 = arith.constant 19 : i32
    %31 = vector.broadcast %c19_i32 : i32 to vector<1x256xi32>
    %32 = arith.cmpi slt, %16, %31 : vector<1x256xi32>
    %33 = arith.andi %30, %32 : vector<1x256xi1>
    %cst_6 = arith.constant 0.000000e+00 : f32
    %34 = vector.shape_cast %33 : vector<1x256xi1> to vector<1x256xi1>
    %35 = vector.broadcast %34 : vector<1x256xi1> to vector<8x256xi1>
    %36 = vector.broadcast %cst_6 : f32 to vector<8x256xf32>
    %37 = arith.select %35, %28, %36 : vector<8x256xi1>, vector<8x256xf32>
    %c2_i32 = arith.constant 2 : i32
    %38 = tpu.dynamic_rotate %17 by %c2_i32 dim 1 : vector<8x256xf32>, i32 -> vector<8x256xf32>
    %c2_i32_7 = arith.constant 2 : i32
    %39 = vector.broadcast %c2_i32_7 : i32 to vector<1x256xi32>
    %40 = arith.cmpi sge, %16, %39 : vector<1x256xi32>
    %c18_i32 = arith.constant 18 : i32
    %41 = vector.broadcast %c18_i32 : i32 to vector<1x256xi32>
    %42 = arith.cmpi slt, %16, %41 : vector<1x256xi32>
    %43 = arith.andi %40, %42 : vector<1x256xi1>
    %cst_8 = arith.constant 0.000000e+00 : f32
    %44 = vector.shape_cast %43 : vector<1x256xi1> to vector<1x256xi1>
    %45 = vector.broadcast %44 : vector<1x256xi1> to vector<8x256xi1>
    %46 = vector.broadcast %cst_8 : f32 to vector<8x256xf32>
    %47 = arith.select %45, %38, %46 : vector<8x256xi1>, vector<8x256xf32>
    %c1_i32_9 = arith.constant 1 : i32
    %48 = tpu.dynamic_rotate %17 by %c1_i32_9 dim 1 : vector<8x256xf32>, i32 -> vector<8x256xf32>
    %c1_i32_10 = arith.constant 1 : i32
    %49 = vector.broadcast %c1_i32_10 : i32 to vector<1x256xi32>
    %50 = arith.cmpi sge, %16, %49 : vector<1x256xi32>
    %c17_i32 = arith.constant 17 : i32
    %51 = vector.broadcast %c17_i32 : i32 to vector<1x256xi32>
    %52 = arith.cmpi slt, %16, %51 : vector<1x256xi32>
    %53 = arith.andi %50, %52 : vector<1x256xi1>
    %cst_11 = arith.constant 0.000000e+00 : f32
    %54 = vector.shape_cast %53 : vector<1x256xi1> to vector<1x256xi1>
    %55 = vector.broadcast %54 : vector<1x256xi1> to vector<8x256xi1>
    %56 = vector.broadcast %cst_11 : f32 to vector<8x256xf32>
    %57 = arith.select %55, %48, %56 : vector<8x256xi1>, vector<8x256xf32>
    %c255_i32 = arith.constant 255 : i32
    %58 = tpu.dynamic_rotate %17 by %c255_i32 dim 1 : vector<8x256xf32>, i32 -> vector<8x256xf32>
    %c-1_i32 = arith.constant -1 : i32
    %59 = vector.broadcast %c-1_i32 : i32 to vector<1x256xi32>
    %60 = arith.cmpi sge, %16, %59 : vector<1x256xi32>
    %c15_i32 = arith.constant 15 : i32
    %61 = vector.broadcast %c15_i32 : i32 to vector<1x256xi32>
    %62 = arith.cmpi slt, %16, %61 : vector<1x256xi32>
    %63 = arith.andi %60, %62 : vector<1x256xi1>
    %cst_12 = arith.constant 0.000000e+00 : f32
    %64 = vector.shape_cast %63 : vector<1x256xi1> to vector<1x256xi1>
    %65 = vector.broadcast %64 : vector<1x256xi1> to vector<8x256xi1>
    %66 = vector.broadcast %cst_12 : f32 to vector<8x256xf32>
    %67 = arith.select %65, %58, %66 : vector<8x256xi1>, vector<8x256xf32>
    %c254_i32 = arith.constant 254 : i32
    %68 = tpu.dynamic_rotate %17 by %c254_i32 dim 1 : vector<8x256xf32>, i32 -> vector<8x256xf32>
    %c-2_i32 = arith.constant -2 : i32
    %69 = vector.broadcast %c-2_i32 : i32 to vector<1x256xi32>
    %70 = arith.cmpi sge, %16, %69 : vector<1x256xi32>
    %c14_i32 = arith.constant 14 : i32
    %71 = vector.broadcast %c14_i32 : i32 to vector<1x256xi32>
    %72 = arith.cmpi slt, %16, %71 : vector<1x256xi32>
    %73 = arith.andi %70, %72 : vector<1x256xi1>
    %cst_13 = arith.constant 0.000000e+00 : f32
    %74 = vector.shape_cast %73 : vector<1x256xi1> to vector<1x256xi1>
    %75 = vector.broadcast %74 : vector<1x256xi1> to vector<8x256xi1>
    %76 = vector.broadcast %cst_13 : f32 to vector<8x256xf32>
    %77 = arith.select %75, %68, %76 : vector<8x256xi1>, vector<8x256xf32>
    %c253_i32 = arith.constant 253 : i32
    %78 = tpu.dynamic_rotate %17 by %c253_i32 dim 1 : vector<8x256xf32>, i32 -> vector<8x256xf32>
    %c-3_i32 = arith.constant -3 : i32
    %79 = vector.broadcast %c-3_i32 : i32 to vector<1x256xi32>
    %80 = arith.cmpi sge, %16, %79 : vector<1x256xi32>
    %c13_i32 = arith.constant 13 : i32
    %81 = vector.broadcast %c13_i32 : i32 to vector<1x256xi32>
    %82 = arith.cmpi slt, %16, %81 : vector<1x256xi32>
    %83 = arith.andi %80, %82 : vector<1x256xi1>
    %cst_14 = arith.constant 0.000000e+00 : f32
    %84 = vector.shape_cast %83 : vector<1x256xi1> to vector<1x256xi1>
    %85 = vector.broadcast %84 : vector<1x256xi1> to vector<8x256xi1>
    %86 = vector.broadcast %cst_14 : f32 to vector<8x256xf32>
    %87 = arith.select %85, %78, %86 : vector<8x256xi1>, vector<8x256xf32>
    %c252_i32 = arith.constant 252 : i32
    %88 = tpu.dynamic_rotate %17 by %c252_i32 dim 1 : vector<8x256xf32>, i32 -> vector<8x256xf32>
    %c-4_i32 = arith.constant -4 : i32
    %89 = vector.broadcast %c-4_i32 : i32 to vector<1x256xi32>
    %90 = arith.cmpi sge, %16, %89 : vector<1x256xi32>
    %c12_i32 = arith.constant 12 : i32
    %91 = vector.broadcast %c12_i32 : i32 to vector<1x256xi32>
    %92 = arith.cmpi slt, %16, %91 : vector<1x256xi32>
    %93 = arith.andi %90, %92 : vector<1x256xi1>
    %cst_15 = arith.constant 0.000000e+00 : f32
    %94 = vector.shape_cast %93 : vector<1x256xi1> to vector<1x256xi1>
    %95 = vector.broadcast %94 : vector<1x256xi1> to vector<8x256xi1>
    %96 = vector.broadcast %cst_15 : f32 to vector<8x256xf32>
    %97 = arith.select %95, %88, %96 : vector<8x256xi1>, vector<8x256xf32>
    %98 = tpu.concatenate %27, %37, %47, %57, %17, %67, %77, %87, %97 in 0 : vector<8x256xf32>, vector<8x256xf32>, vector<8x256xf32>, vector<8x256xf32>, vector<8x256xf32>, vector<8x256xf32>, vector<8x256xf32>, vector<8x256xf32>, vector<8x256xf32> -> vector<72x256xf32>
    %99 = arith.truncf %98 : vector<72x256xf32> to vector<72x256xbf16>
    %c0_16 = arith.constant 0 : index
    %c0_17 = arith.constant 0 : index
    %100 = vector.load %arg2[%c0_16, %c0_17] : memref<112x72xbf16, #tpu.memory_space<vmem>>, vector<8x72xbf16>
    %cst_18 = arith.constant dense<0.000000e+00> : vector<8x256xf32>
    %101 = tpu.matmul %100, %99, %cst_18 {dimension_numbers = #tpu.dot_dimension_numbers<[1], [0], [0], [1], [0, 0, 1, 1], [], []>} : vector<8x72xbf16>, vector<72x256xbf16>, vector<8x256xf32> -> vector<8x256xf32>
    %c0_19 = arith.constant 0 : index
    %c0_20 = arith.constant 0 : index
    %102 = vector.load %arg3[%c0_19, %c0_20] : memref<112x1xf32, #tpu.memory_space<vmem>>, vector<8x1xf32>
    %103 = vector.broadcast %102 : vector<8x1xf32> to vector<8x256xf32>
    %104 = arith.addf %101, %103 : vector<8x256xf32>
    %cst_21 = arith.constant dense<0.000000e+00> : vector<256xf32>
    %105 = vector.multi_reduction <add>, %104, %cst_21 [0] : vector<8x256xf32> to vector<256xf32>
    %106 = vector.shape_cast %105 : vector<256xf32> to vector<1x256xf32>
    %c0_22 = arith.constant 0 : index
    %c0_23 = arith.constant 0 : index
    %107 = vector.load %arg6[%c0_22, %c0_23] : memref<256x16xf32, #tpu.memory_space<vmem>>, vector<256x16xf32>
    %cst_24 = arith.constant dense<0.000000e+00> : vector<1x16xf32>
    %108 = tpu.matmul %106, %107, %cst_24 {dimension_numbers = #tpu.dot_dimension_numbers<[1], [0], [0], [1], [0, 0, 1, 1], [], []>} : vector<1x256xf32>, vector<256x16xf32>, vector<1x16xf32> -> vector<1x16xf32>
    %c0_25 = arith.constant 0 : index
    %c0_26 = arith.constant 0 : index
    %109 = vector.load %arg7[%c0_25, %c0_26] : memref<16x256xf32, #tpu.memory_space<vmem>>, vector<16x256xf32>
    %cst_27 = arith.constant dense<0.000000e+00> : vector<1x256xf32>
    %110 = tpu.matmul %108, %109, %cst_27 {dimension_numbers = #tpu.dot_dimension_numbers<[1], [0], [0], [1], [0, 0, 1, 1], [], []>} : vector<1x16xf32>, vector<16x256xf32>, vector<1x256xf32> -> vector<1x256xf32>
    %cst_28 = arith.constant 7.812500e-03 : f32
    %111 = vector.broadcast %cst_28 : f32 to vector<1x256xf32>
    %112 = arith.mulf %110, %111 : vector<1x256xf32>
    %113 = vector.broadcast %112 : vector<1x256xf32> to vector<8x256xf32>
    %114 = arith.subf %104, %113 : vector<8x256xf32>
    %115 = arith.mulf %114, %114 : vector<8x256xf32>
    %cst_29 = arith.constant dense<0.000000e+00> : vector<256xf32>
    %116 = vector.multi_reduction <add>, %115, %cst_29 [0] : vector<8x256xf32> to vector<256xf32>
    %117 = vector.shape_cast %116 : vector<256xf32> to vector<1x256xf32>
    %c0_30 = arith.constant 0 : index
    %c0_31 = arith.constant 0 : index
    %118 = vector.load %arg6[%c0_30, %c0_31] : memref<256x16xf32, #tpu.memory_space<vmem>>, vector<256x16xf32>
    %cst_32 = arith.constant dense<0.000000e+00> : vector<1x16xf32>
    %119 = tpu.matmul %117, %118, %cst_32 {dimension_numbers = #tpu.dot_dimension_numbers<[1], [0], [0], [1], [0, 0, 1, 1], [], []>} : vector<1x256xf32>, vector<256x16xf32>, vector<1x16xf32> -> vector<1x16xf32>
    %c0_33 = arith.constant 0 : index
    %c0_34 = arith.constant 0 : index
    %120 = vector.load %arg7[%c0_33, %c0_34] : memref<16x256xf32, #tpu.memory_space<vmem>>, vector<16x256xf32>
    %cst_35 = arith.constant dense<0.000000e+00> : vector<1x256xf32>
    %121 = tpu.matmul %119, %120, %cst_35 {dimension_numbers = #tpu.dot_dimension_numbers<[1], [0], [0], [1], [0, 0, 1, 1], [], []>} : vector<1x16xf32>, vector<16x256xf32>, vector<1x256xf32> -> vector<1x256xf32>
    %cst_36 = arith.constant 7.812500e-03 : f32
    %122 = vector.broadcast %cst_36 : f32 to vector<1x256xf32>
    %123 = arith.mulf %121, %122 : vector<1x256xf32>
    %cst_37 = arith.constant 9.99999974E-6 : f32
    %124 = vector.broadcast %cst_37 : f32 to vector<1x256xf32>
    %125 = arith.addf %123, %124 : vector<1x256xf32>
    %126 = math.rsqrt %125 : vector<1x256xf32>
    %127 = vector.broadcast %126 : vector<1x256xf32> to vector<8x256xf32>
    %128 = arith.mulf %114, %127 : vector<8x256xf32>
    %c0_38 = arith.constant 0 : index
    %c0_39 = arith.constant 0 : index
    %129 = vector.load %arg4[%c0_38, %c0_39] : memref<104x256xf32, #tpu.memory_space<vmem>>, vector<8x256xf32>
    %130 = arith.mulf %128, %129 : vector<8x256xf32>
    %c0_40 = arith.constant 0 : index
    %c0_41 = arith.constant 0 : index
    %131 = vector.load %arg5[%c0_40, %c0_41] : memref<104x256xf32, #tpu.memory_space<vmem>>, vector<8x256xf32>
    %132 = arith.addf %130, %131 : vector<8x256xf32>
    %cst_42 = arith.constant 0.000000e+00 : f32
    %133 = vector.broadcast %cst_42 : f32 to vector<8x256xf32>
    %134 = arith.maximumf %132, %133 : vector<8x256xf32>
    %135 = arith.truncf %134 : vector<8x256xf32> to vector<8x256xbf16>
    %c8 = arith.constant 8 : index
    %c0_43 = arith.constant 0 : index
    %136 = vector.load %arg2[%c8, %c0_43] : memref<112x72xbf16, #tpu.memory_space<vmem>>, vector<16x8xbf16>
    %cst_44 = arith.constant dense<0.000000e+00> : vector<16x256xf32>
    %137 = tpu.matmul %136, %135, %cst_44 {dimension_numbers = #tpu.dot_dimension_numbers<[1], [0], [0], [1], [0, 0, 1, 1], [], []>} : vector<16x8xbf16>, vector<8x256xbf16>, vector<16x256xf32> -> vector<16x256xf32>
    %c8_45 = arith.constant 8 : index
    %c0_46 = arith.constant 0 : index
    %138 = vector.load %arg3[%c8_45, %c0_46] : memref<112x1xf32, #tpu.memory_space<vmem>>, vector<16x1xf32>
    %139 = vector.broadcast %138 : vector<16x1xf32> to vector<16x256xf32>
    %140 = arith.addf %137, %139 : vector<16x256xf32>
    %cst_47 = arith.constant dense<0.000000e+00> : vector<256xf32>
    %141 = vector.multi_reduction <add>, %140, %cst_47 [0] : vector<16x256xf32> to vector<256xf32>
    %142 = vector.shape_cast %141 : vector<256xf32> to vector<1x256xf32>
    %c0_48 = arith.constant 0 : index
    %c0_49 = arith.constant 0 : index
    %143 = vector.load %arg6[%c0_48, %c0_49] : memref<256x16xf32, #tpu.memory_space<vmem>>, vector<256x16xf32>
    %cst_50 = arith.constant dense<0.000000e+00> : vector<1x16xf32>
    %144 = tpu.matmul %142, %143, %cst_50 {dimension_numbers = #tpu.dot_dimension_numbers<[1], [0], [0], [1], [0, 0, 1, 1], [], []>} : vector<1x256xf32>, vector<256x16xf32>, vector<1x16xf32> -> vector<1x16xf32>
    %c0_51 = arith.constant 0 : index
    %c0_52 = arith.constant 0 : index
    %145 = vector.load %arg7[%c0_51, %c0_52] : memref<16x256xf32, #tpu.memory_space<vmem>>, vector<16x256xf32>
    %cst_53 = arith.constant dense<0.000000e+00> : vector<1x256xf32>
    %146 = tpu.matmul %144, %145, %cst_53 {dimension_numbers = #tpu.dot_dimension_numbers<[1], [0], [0], [1], [0, 0, 1, 1], [], []>} : vector<1x16xf32>, vector<16x256xf32>, vector<1x256xf32> -> vector<1x256xf32>
    %cst_54 = arith.constant 3.906250e-03 : f32
    %147 = vector.broadcast %cst_54 : f32 to vector<1x256xf32>
    %148 = arith.mulf %146, %147 : vector<1x256xf32>
    %149 = vector.broadcast %148 : vector<1x256xf32> to vector<16x256xf32>
    %150 = arith.subf %140, %149 : vector<16x256xf32>
    %151 = arith.mulf %150, %150 : vector<16x256xf32>
    %cst_55 = arith.constant dense<0.000000e+00> : vector<256xf32>
    %152 = vector.multi_reduction <add>, %151, %cst_55 [0] : vector<16x256xf32> to vector<256xf32>
    %153 = vector.shape_cast %152 : vector<256xf32> to vector<1x256xf32>
    %c0_56 = arith.constant 0 : index
    %c0_57 = arith.constant 0 : index
    %154 = vector.load %arg6[%c0_56, %c0_57] : memref<256x16xf32, #tpu.memory_space<vmem>>, vector<256x16xf32>
    %cst_58 = arith.constant dense<0.000000e+00> : vector<1x16xf32>
    %155 = tpu.matmul %153, %154, %cst_58 {dimension_numbers = #tpu.dot_dimension_numbers<[1], [0], [0], [1], [0, 0, 1, 1], [], []>} : vector<1x256xf32>, vector<256x16xf32>, vector<1x16xf32> -> vector<1x16xf32>
    %c0_59 = arith.constant 0 : index
    %c0_60 = arith.constant 0 : index
    %156 = vector.load %arg7[%c0_59, %c0_60] : memref<16x256xf32, #tpu.memory_space<vmem>>, vector<16x256xf32>
    %cst_61 = arith.constant dense<0.000000e+00> : vector<1x256xf32>
    %157 = tpu.matmul %155, %156, %cst_61 {dimension_numbers = #tpu.dot_dimension_numbers<[1], [0], [0], [1], [0, 0, 1, 1], [], []>} : vector<1x16xf32>, vector<16x256xf32>, vector<1x256xf32> -> vector<1x256xf32>
    %cst_62 = arith.constant 3.906250e-03 : f32
    %158 = vector.broadcast %cst_62 : f32 to vector<1x256xf32>
    %159 = arith.mulf %157, %158 : vector<1x256xf32>
    %cst_63 = arith.constant 9.99999974E-6 : f32
    %160 = vector.broadcast %cst_63 : f32 to vector<1x256xf32>
    %161 = arith.addf %159, %160 : vector<1x256xf32>
    %162 = math.rsqrt %161 : vector<1x256xf32>
    %163 = vector.broadcast %162 : vector<1x256xf32> to vector<16x256xf32>
    %164 = arith.mulf %150, %163 : vector<16x256xf32>
    %c8_64 = arith.constant 8 : index
    %c0_65 = arith.constant 0 : index
    %165 = vector.load %arg4[%c8_64, %c0_65] : memref<104x256xf32, #tpu.memory_space<vmem>>, vector<16x256xf32>
    %166 = arith.mulf %164, %165 : vector<16x256xf32>
    %c8_66 = arith.constant 8 : index
    %c0_67 = arith.constant 0 : index
    %167 = vector.load %arg5[%c8_66, %c0_67] : memref<104x256xf32, #tpu.memory_space<vmem>>, vector<16x256xf32>
    %168 = arith.addf %166, %167 : vector<16x256xf32>
    %c1_i32_68 = arith.constant 1 : i32
    %169 = tpu.dynamic_rotate %134 by %c1_i32_68 dim 1 : vector<8x256xf32>, i32 -> vector<8x256xf32>
    %c1_i32_69 = arith.constant 1 : i32
    %170 = vector.broadcast %c1_i32_69 : i32 to vector<1x256xi32>
    %171 = arith.cmpi sge, %16, %170 : vector<1x256xi32>
    %c17_i32_70 = arith.constant 17 : i32
    %172 = vector.broadcast %c17_i32_70 : i32 to vector<1x256xi32>
    %173 = arith.cmpi slt, %16, %172 : vector<1x256xi32>
    %174 = arith.andi %171, %173 : vector<1x256xi1>
    %cst_71 = arith.constant 0.000000e+00 : f32
    %175 = vector.shape_cast %174 : vector<1x256xi1> to vector<1x256xi1>
    %176 = vector.broadcast %175 : vector<1x256xi1> to vector<8x256xi1>
    %177 = vector.broadcast %cst_71 : f32 to vector<8x256xf32>
    %178 = arith.select %176, %169, %177 : vector<8x256xi1>, vector<8x256xf32>
    %c255_i32_72 = arith.constant 255 : i32
    %179 = tpu.dynamic_rotate %134 by %c255_i32_72 dim 1 : vector<8x256xf32>, i32 -> vector<8x256xf32>
    %c-1_i32_73 = arith.constant -1 : i32
    %180 = vector.broadcast %c-1_i32_73 : i32 to vector<1x256xi32>
    %181 = arith.cmpi sge, %16, %180 : vector<1x256xi32>
    %c15_i32_74 = arith.constant 15 : i32
    %182 = vector.broadcast %c15_i32_74 : i32 to vector<1x256xi32>
    %183 = arith.cmpi slt, %16, %182 : vector<1x256xi32>
    %184 = arith.andi %181, %183 : vector<1x256xi1>
    %cst_75 = arith.constant 0.000000e+00 : f32
    %185 = vector.shape_cast %184 : vector<1x256xi1> to vector<1x256xi1>
    %186 = vector.broadcast %185 : vector<1x256xi1> to vector<8x256xi1>
    %187 = vector.broadcast %cst_75 : f32 to vector<8x256xf32>
    %188 = arith.select %186, %179, %187 : vector<8x256xi1>, vector<8x256xf32>
    %189 = tpu.concatenate %178, %134, %188 in 0 : vector<8x256xf32>, vector<8x256xf32>, vector<8x256xf32> -> vector<24x256xf32>
    %190 = arith.truncf %189 : vector<24x256xf32> to vector<24x256xbf16>
    %c24 = arith.constant 24 : index
    %c0_76 = arith.constant 0 : index
    %191 = vector.load %arg2[%c24, %c0_76] : memref<112x72xbf16, #tpu.memory_space<vmem>>, vector<16x24xbf16>
    %cst_77 = arith.constant dense<0.000000e+00> : vector<16x256xf32>
    %192 = tpu.matmul %191, %190, %cst_77 {dimension_numbers = #tpu.dot_dimension_numbers<[1], [0], [0], [1], [0, 0, 1, 1], [], []>} : vector<16x24xbf16>, vector<24x256xbf16>, vector<16x256xf32> -> vector<16x256xf32>
    %c24_78 = arith.constant 24 : index
    %c0_79 = arith.constant 0 : index
    %193 = vector.load %arg3[%c24_78, %c0_79] : memref<112x1xf32, #tpu.memory_space<vmem>>, vector<16x1xf32>
    %194 = vector.broadcast %193 : vector<16x1xf32> to vector<16x256xf32>
    %195 = arith.addf %192, %194 : vector<16x256xf32>
    %cst_80 = arith.constant dense<0.000000e+00> : vector<256xf32>
    %196 = vector.multi_reduction <add>, %195, %cst_80 [0] : vector<16x256xf32> to vector<256xf32>
    %197 = vector.shape_cast %196 : vector<256xf32> to vector<1x256xf32>
    %c0_81 = arith.constant 0 : index
    %c0_82 = arith.constant 0 : index
    %198 = vector.load %arg6[%c0_81, %c0_82] : memref<256x16xf32, #tpu.memory_space<vmem>>, vector<256x16xf32>
    %cst_83 = arith.constant dense<0.000000e+00> : vector<1x16xf32>
    %199 = tpu.matmul %197, %198, %cst_83 {dimension_numbers = #tpu.dot_dimension_numbers<[1], [0], [0], [1], [0, 0, 1, 1], [], []>} : vector<1x256xf32>, vector<256x16xf32>, vector<1x16xf32> -> vector<1x16xf32>
    %c0_84 = arith.constant 0 : index
    %c0_85 = arith.constant 0 : index
    %200 = vector.load %arg7[%c0_84, %c0_85] : memref<16x256xf32, #tpu.memory_space<vmem>>, vector<16x256xf32>
    %cst_86 = arith.constant dense<0.000000e+00> : vector<1x256xf32>
    %201 = tpu.matmul %199, %200, %cst_86 {dimension_numbers = #tpu.dot_dimension_numbers<[1], [0], [0], [1], [0, 0, 1, 1], [], []>} : vector<1x16xf32>, vector<16x256xf32>, vector<1x256xf32> -> vector<1x256xf32>
    %cst_87 = arith.constant 3.906250e-03 : f32
    %202 = vector.broadcast %cst_87 : f32 to vector<1x256xf32>
    %203 = arith.mulf %201, %202 : vector<1x256xf32>
    %204 = vector.broadcast %203 : vector<1x256xf32> to vector<16x256xf32>
    %205 = arith.subf %195, %204 : vector<16x256xf32>
    %206 = arith.mulf %205, %205 : vector<16x256xf32>
    %cst_88 = arith.constant dense<0.000000e+00> : vector<256xf32>
    %207 = vector.multi_reduction <add>, %206, %cst_88 [0] : vector<16x256xf32> to vector<256xf32>
    %208 = vector.shape_cast %207 : vector<256xf32> to vector<1x256xf32>
    %c0_89 = arith.constant 0 : index
    %c0_90 = arith.constant 0 : index
    %209 = vector.load %arg6[%c0_89, %c0_90] : memref<256x16xf32, #tpu.memory_space<vmem>>, vector<256x16xf32>
    %cst_91 = arith.constant dense<0.000000e+00> : vector<1x16xf32>
    %210 = tpu.matmul %208, %209, %cst_91 {dimension_numbers = #tpu.dot_dimension_numbers<[1], [0], [0], [1], [0, 0, 1, 1], [], []>} : vector<1x256xf32>, vector<256x16xf32>, vector<1x16xf32> -> vector<1x16xf32>
    %c0_92 = arith.constant 0 : index
    %c0_93 = arith.constant 0 : index
    %211 = vector.load %arg7[%c0_92, %c0_93] : memref<16x256xf32, #tpu.memory_space<vmem>>, vector<16x256xf32>
    %cst_94 = arith.constant dense<0.000000e+00> : vector<1x256xf32>
    %212 = tpu.matmul %210, %211, %cst_94 {dimension_numbers = #tpu.dot_dimension_numbers<[1], [0], [0], [1], [0, 0, 1, 1], [], []>} : vector<1x16xf32>, vector<16x256xf32>, vector<1x256xf32> -> vector<1x256xf32>
    %cst_95 = arith.constant 3.906250e-03 : f32
    %213 = vector.broadcast %cst_95 : f32 to vector<1x256xf32>
    %214 = arith.mulf %212, %213 : vector<1x256xf32>
    %cst_96 = arith.constant 9.99999974E-6 : f32
    %215 = vector.broadcast %cst_96 : f32 to vector<1x256xf32>
    %216 = arith.addf %214, %215 : vector<1x256xf32>
    %217 = math.rsqrt %216 : vector<1x256xf32>
    %218 = vector.broadcast %217 : vector<1x256xf32> to vector<16x256xf32>
    %219 = arith.mulf %205, %218 : vector<16x256xf32>
    %c24_97 = arith.constant 24 : index
    %c0_98 = arith.constant 0 : index
    %220 = vector.load %arg4[%c24_97, %c0_98] : memref<104x256xf32, #tpu.memory_space<vmem>>, vector<16x256xf32>
    %221 = arith.mulf %219, %220 : vector<16x256xf32>
    %c24_99 = arith.constant 24 : index
    %c0_100 = arith.constant 0 : index
    %222 = vector.load %arg5[%c24_99, %c0_100] : memref<104x256xf32, #tpu.memory_space<vmem>>, vector<16x256xf32>
    %223 = arith.addf %221, %222 : vector<16x256xf32>
    %cst_101 = arith.constant 0.000000e+00 : f32
    %224 = vector.broadcast %cst_101 : f32 to vector<16x256xf32>
    %225 = arith.maximumf %223, %224 : vector<16x256xf32>
    %c1_i32_102 = arith.constant 1 : i32
    %226 = tpu.dynamic_rotate %225 by %c1_i32_102 dim 1 : vector<16x256xf32>, i32 -> vector<16x256xf32>
    %c1_i32_103 = arith.constant 1 : i32
    %227 = vector.broadcast %c1_i32_103 : i32 to vector<1x256xi32>
    %228 = arith.cmpi sge, %16, %227 : vector<1x256xi32>
    %c17_i32_104 = arith.constant 17 : i32
    %229 = vector.broadcast %c17_i32_104 : i32 to vector<1x256xi32>
    %230 = arith.cmpi slt, %16, %229 : vector<1x256xi32>
    %231 = arith.andi %228, %230 : vector<1x256xi1>
    %cst_105 = arith.constant 0.000000e+00 : f32
    %232 = vector.shape_cast %231 : vector<1x256xi1> to vector<1x256xi1>
    %233 = vector.broadcast %232 : vector<1x256xi1> to vector<16x256xi1>
    %234 = vector.broadcast %cst_105 : f32 to vector<16x256xf32>
    %235 = arith.select %233, %226, %234 : vector<16x256xi1>, vector<16x256xf32>
    %c255_i32_106 = arith.constant 255 : i32
    %236 = tpu.dynamic_rotate %225 by %c255_i32_106 dim 1 : vector<16x256xf32>, i32 -> vector<16x256xf32>
    %c-1_i32_107 = arith.constant -1 : i32
    %237 = vector.broadcast %c-1_i32_107 : i32 to vector<1x256xi32>
    %238 = arith.cmpi sge, %16, %237 : vector<1x256xi32>
    %c15_i32_108 = arith.constant 15 : i32
    %239 = vector.broadcast %c15_i32_108 : i32 to vector<1x256xi32>
    %240 = arith.cmpi slt, %16, %239 : vector<1x256xi32>
    %241 = arith.andi %238, %240 : vector<1x256xi1>
    %cst_109 = arith.constant 0.000000e+00 : f32
    %242 = vector.shape_cast %241 : vector<1x256xi1> to vector<1x256xi1>
    %243 = vector.broadcast %242 : vector<1x256xi1> to vector<16x256xi1>
    %244 = vector.broadcast %cst_109 : f32 to vector<16x256xf32>
    %245 = arith.select %243, %236, %244 : vector<16x256xi1>, vector<16x256xf32>
    %246 = tpu.concatenate %235, %225, %245 in 0 : vector<16x256xf32>, vector<16x256xf32>, vector<16x256xf32> -> vector<48x256xf32>
    %247 = arith.truncf %246 : vector<48x256xf32> to vector<48x256xbf16>
    %c40 = arith.constant 40 : index
    %c0_110 = arith.constant 0 : index
    %248 = vector.load %arg2[%c40, %c0_110] : memref<112x72xbf16, #tpu.memory_space<vmem>>, vector<16x48xbf16>
    %cst_111 = arith.constant dense<0.000000e+00> : vector<16x256xf32>
    %249 = tpu.matmul %248, %247, %cst_111 {dimension_numbers = #tpu.dot_dimension_numbers<[1], [0], [0], [1], [0, 0, 1, 1], [], []>} : vector<16x48xbf16>, vector<48x256xbf16>, vector<16x256xf32> -> vector<16x256xf32>
    %c40_112 = arith.constant 40 : index
    %c0_113 = arith.constant 0 : index
    %250 = vector.load %arg3[%c40_112, %c0_113] : memref<112x1xf32, #tpu.memory_space<vmem>>, vector<16x1xf32>
    %251 = vector.broadcast %250 : vector<16x1xf32> to vector<16x256xf32>
    %252 = arith.addf %249, %251 : vector<16x256xf32>
    %cst_114 = arith.constant dense<0.000000e+00> : vector<256xf32>
    %253 = vector.multi_reduction <add>, %252, %cst_114 [0] : vector<16x256xf32> to vector<256xf32>
    %254 = vector.shape_cast %253 : vector<256xf32> to vector<1x256xf32>
    %c0_115 = arith.constant 0 : index
    %c0_116 = arith.constant 0 : index
    %255 = vector.load %arg6[%c0_115, %c0_116] : memref<256x16xf32, #tpu.memory_space<vmem>>, vector<256x16xf32>
    %cst_117 = arith.constant dense<0.000000e+00> : vector<1x16xf32>
    %256 = tpu.matmul %254, %255, %cst_117 {dimension_numbers = #tpu.dot_dimension_numbers<[1], [0], [0], [1], [0, 0, 1, 1], [], []>} : vector<1x256xf32>, vector<256x16xf32>, vector<1x16xf32> -> vector<1x16xf32>
    %c0_118 = arith.constant 0 : index
    %c0_119 = arith.constant 0 : index
    %257 = vector.load %arg7[%c0_118, %c0_119] : memref<16x256xf32, #tpu.memory_space<vmem>>, vector<16x256xf32>
    %cst_120 = arith.constant dense<0.000000e+00> : vector<1x256xf32>
    %258 = tpu.matmul %256, %257, %cst_120 {dimension_numbers = #tpu.dot_dimension_numbers<[1], [0], [0], [1], [0, 0, 1, 1], [], []>} : vector<1x16xf32>, vector<16x256xf32>, vector<1x256xf32> -> vector<1x256xf32>
    %cst_121 = arith.constant 3.906250e-03 : f32
    %259 = vector.broadcast %cst_121 : f32 to vector<1x256xf32>
    %260 = arith.mulf %258, %259 : vector<1x256xf32>
    %261 = vector.broadcast %260 : vector<1x256xf32> to vector<16x256xf32>
    %262 = arith.subf %252, %261 : vector<16x256xf32>
    %263 = arith.mulf %262, %262 : vector<16x256xf32>
    %cst_122 = arith.constant dense<0.000000e+00> : vector<256xf32>
    %264 = vector.multi_reduction <add>, %263, %cst_122 [0] : vector<16x256xf32> to vector<256xf32>
    %265 = vector.shape_cast %264 : vector<256xf32> to vector<1x256xf32>
    %c0_123 = arith.constant 0 : index
    %c0_124 = arith.constant 0 : index
    %266 = vector.load %arg6[%c0_123, %c0_124] : memref<256x16xf32, #tpu.memory_space<vmem>>, vector<256x16xf32>
    %cst_125 = arith.constant dense<0.000000e+00> : vector<1x16xf32>
    %267 = tpu.matmul %265, %266, %cst_125 {dimension_numbers = #tpu.dot_dimension_numbers<[1], [0], [0], [1], [0, 0, 1, 1], [], []>} : vector<1x256xf32>, vector<256x16xf32>, vector<1x16xf32> -> vector<1x16xf32>
    %c0_126 = arith.constant 0 : index
    %c0_127 = arith.constant 0 : index
    %268 = vector.load %arg7[%c0_126, %c0_127] : memref<16x256xf32, #tpu.memory_space<vmem>>, vector<16x256xf32>
    %cst_128 = arith.constant dense<0.000000e+00> : vector<1x256xf32>
    %269 = tpu.matmul %267, %268, %cst_128 {dimension_numbers = #tpu.dot_dimension_numbers<[1], [0], [0], [1], [0, 0, 1, 1], [], []>} : vector<1x16xf32>, vector<16x256xf32>, vector<1x256xf32> -> vector<1x256xf32>
    %cst_129 = arith.constant 3.906250e-03 : f32
    %270 = vector.broadcast %cst_129 : f32 to vector<1x256xf32>
    %271 = arith.mulf %269, %270 : vector<1x256xf32>
    %cst_130 = arith.constant 9.99999974E-6 : f32
    %272 = vector.broadcast %cst_130 : f32 to vector<1x256xf32>
    %273 = arith.addf %271, %272 : vector<1x256xf32>
    %274 = math.rsqrt %273 : vector<1x256xf32>
    %275 = vector.broadcast %274 : vector<1x256xf32> to vector<16x256xf32>
    %276 = arith.mulf %262, %275 : vector<16x256xf32>
    %c40_131 = arith.constant 40 : index
    %c0_132 = arith.constant 0 : index
    %277 = vector.load %arg4[%c40_131, %c0_132] : memref<104x256xf32, #tpu.memory_space<vmem>>, vector<16x256xf32>
    %278 = arith.mulf %276, %277 : vector<16x256xf32>
    %c40_133 = arith.constant 40 : index
    %c0_134 = arith.constant 0 : index
    %279 = vector.load %arg5[%c40_133, %c0_134] : memref<104x256xf32, #tpu.memory_space<vmem>>, vector<16x256xf32>
    %280 = arith.addf %278, %279 : vector<16x256xf32>
    %cst_135 = arith.constant 0.000000e+00 : f32
    %281 = vector.broadcast %cst_135 : f32 to vector<16x256xf32>
    %282 = arith.maximumf %280, %281 : vector<16x256xf32>
    %c1_i32_136 = arith.constant 1 : i32
    %283 = tpu.dynamic_rotate %282 by %c1_i32_136 dim 1 : vector<16x256xf32>, i32 -> vector<16x256xf32>
    %c1_i32_137 = arith.constant 1 : i32
    %284 = vector.broadcast %c1_i32_137 : i32 to vector<1x256xi32>
    %285 = arith.cmpi sge, %16, %284 : vector<1x256xi32>
    %c17_i32_138 = arith.constant 17 : i32
    %286 = vector.broadcast %c17_i32_138 : i32 to vector<1x256xi32>
    %287 = arith.cmpi slt, %16, %286 : vector<1x256xi32>
    %288 = arith.andi %285, %287 : vector<1x256xi1>
    %cst_139 = arith.constant 0.000000e+00 : f32
    %289 = vector.shape_cast %288 : vector<1x256xi1> to vector<1x256xi1>
    %290 = vector.broadcast %289 : vector<1x256xi1> to vector<16x256xi1>
    %291 = vector.broadcast %cst_139 : f32 to vector<16x256xf32>
    %292 = arith.select %290, %283, %291 : vector<16x256xi1>, vector<16x256xf32>
    %c255_i32_140 = arith.constant 255 : i32
    %293 = tpu.dynamic_rotate %282 by %c255_i32_140 dim 1 : vector<16x256xf32>, i32 -> vector<16x256xf32>
    %c-1_i32_141 = arith.constant -1 : i32
    %294 = vector.broadcast %c-1_i32_141 : i32 to vector<1x256xi32>
    %295 = arith.cmpi sge, %16, %294 : vector<1x256xi32>
    %c15_i32_142 = arith.constant 15 : i32
    %296 = vector.broadcast %c15_i32_142 : i32 to vector<1x256xi32>
    %297 = arith.cmpi slt, %16, %296 : vector<1x256xi32>
    %298 = arith.andi %295, %297 : vector<1x256xi1>
    %cst_143 = arith.constant 0.000000e+00 : f32
    %299 = vector.shape_cast %298 : vector<1x256xi1> to vector<1x256xi1>
    %300 = vector.broadcast %299 : vector<1x256xi1> to vector<16x256xi1>
    %301 = vector.broadcast %cst_143 : f32 to vector<16x256xf32>
    %302 = arith.select %300, %293, %301 : vector<16x256xi1>, vector<16x256xf32>
    %303 = tpu.concatenate %292, %282, %302 in 0 : vector<16x256xf32>, vector<16x256xf32>, vector<16x256xf32> -> vector<48x256xf32>
    %304 = arith.truncf %303 : vector<48x256xf32> to vector<48x256xbf16>
    %c56 = arith.constant 56 : index
    %c0_144 = arith.constant 0 : index
    %305 = vector.load %arg2[%c56, %c0_144] : memref<112x72xbf16, #tpu.memory_space<vmem>>, vector<16x48xbf16>
    %cst_145 = arith.constant dense<0.000000e+00> : vector<16x256xf32>
    %306 = tpu.matmul %305, %304, %cst_145 {dimension_numbers = #tpu.dot_dimension_numbers<[1], [0], [0], [1], [0, 0, 1, 1], [], []>} : vector<16x48xbf16>, vector<48x256xbf16>, vector<16x256xf32> -> vector<16x256xf32>
    %c56_146 = arith.constant 56 : index
    %c0_147 = arith.constant 0 : index
    %307 = vector.load %arg3[%c56_146, %c0_147] : memref<112x1xf32, #tpu.memory_space<vmem>>, vector<16x1xf32>
    %308 = vector.broadcast %307 : vector<16x1xf32> to vector<16x256xf32>
    %309 = arith.addf %306, %308 : vector<16x256xf32>
    %cst_148 = arith.constant dense<0.000000e+00> : vector<256xf32>
    %310 = vector.multi_reduction <add>, %309, %cst_148 [0] : vector<16x256xf32> to vector<256xf32>
    %311 = vector.shape_cast %310 : vector<256xf32> to vector<1x256xf32>
    %c0_149 = arith.constant 0 : index
    %c0_150 = arith.constant 0 : index
    %312 = vector.load %arg6[%c0_149, %c0_150] : memref<256x16xf32, #tpu.memory_space<vmem>>, vector<256x16xf32>
    %cst_151 = arith.constant dense<0.000000e+00> : vector<1x16xf32>
    %313 = tpu.matmul %311, %312, %cst_151 {dimension_numbers = #tpu.dot_dimension_numbers<[1], [0], [0], [1], [0, 0, 1, 1], [], []>} : vector<1x256xf32>, vector<256x16xf32>, vector<1x16xf32> -> vector<1x16xf32>
    %c0_152 = arith.constant 0 : index
    %c0_153 = arith.constant 0 : index
    %314 = vector.load %arg7[%c0_152, %c0_153] : memref<16x256xf32, #tpu.memory_space<vmem>>, vector<16x256xf32>
    %cst_154 = arith.constant dense<0.000000e+00> : vector<1x256xf32>
    %315 = tpu.matmul %313, %314, %cst_154 {dimension_numbers = #tpu.dot_dimension_numbers<[1], [0], [0], [1], [0, 0, 1, 1], [], []>} : vector<1x16xf32>, vector<16x256xf32>, vector<1x256xf32> -> vector<1x256xf32>
    %cst_155 = arith.constant 3.906250e-03 : f32
    %316 = vector.broadcast %cst_155 : f32 to vector<1x256xf32>
    %317 = arith.mulf %315, %316 : vector<1x256xf32>
    %318 = vector.broadcast %317 : vector<1x256xf32> to vector<16x256xf32>
    %319 = arith.subf %309, %318 : vector<16x256xf32>
    %320 = arith.mulf %319, %319 : vector<16x256xf32>
    %cst_156 = arith.constant dense<0.000000e+00> : vector<256xf32>
    %321 = vector.multi_reduction <add>, %320, %cst_156 [0] : vector<16x256xf32> to vector<256xf32>
    %322 = vector.shape_cast %321 : vector<256xf32> to vector<1x256xf32>
    %c0_157 = arith.constant 0 : index
    %c0_158 = arith.constant 0 : index
    %323 = vector.load %arg6[%c0_157, %c0_158] : memref<256x16xf32, #tpu.memory_space<vmem>>, vector<256x16xf32>
    %cst_159 = arith.constant dense<0.000000e+00> : vector<1x16xf32>
    %324 = tpu.matmul %322, %323, %cst_159 {dimension_numbers = #tpu.dot_dimension_numbers<[1], [0], [0], [1], [0, 0, 1, 1], [], []>} : vector<1x256xf32>, vector<256x16xf32>, vector<1x16xf32> -> vector<1x16xf32>
    %c0_160 = arith.constant 0 : index
    %c0_161 = arith.constant 0 : index
    %325 = vector.load %arg7[%c0_160, %c0_161] : memref<16x256xf32, #tpu.memory_space<vmem>>, vector<16x256xf32>
    %cst_162 = arith.constant dense<0.000000e+00> : vector<1x256xf32>
    %326 = tpu.matmul %324, %325, %cst_162 {dimension_numbers = #tpu.dot_dimension_numbers<[1], [0], [0], [1], [0, 0, 1, 1], [], []>} : vector<1x16xf32>, vector<16x256xf32>, vector<1x256xf32> -> vector<1x256xf32>
    %cst_163 = arith.constant 3.906250e-03 : f32
    %327 = vector.broadcast %cst_163 : f32 to vector<1x256xf32>
    %328 = arith.mulf %326, %327 : vector<1x256xf32>
    %cst_164 = arith.constant 9.99999974E-6 : f32
    %329 = vector.broadcast %cst_164 : f32 to vector<1x256xf32>
    %330 = arith.addf %328, %329 : vector<1x256xf32>
    %331 = math.rsqrt %330 : vector<1x256xf32>
    %332 = vector.broadcast %331 : vector<1x256xf32> to vector<16x256xf32>
    %333 = arith.mulf %319, %332 : vector<16x256xf32>
    %c56_165 = arith.constant 56 : index
    %c0_166 = arith.constant 0 : index
    %334 = vector.load %arg4[%c56_165, %c0_166] : memref<104x256xf32, #tpu.memory_space<vmem>>, vector<16x256xf32>
    %335 = arith.mulf %333, %334 : vector<16x256xf32>
    %c56_167 = arith.constant 56 : index
    %c0_168 = arith.constant 0 : index
    %336 = vector.load %arg5[%c56_167, %c0_168] : memref<104x256xf32, #tpu.memory_space<vmem>>, vector<16x256xf32>
    %337 = arith.addf %335, %336 : vector<16x256xf32>
    %cst_169 = arith.constant 0.000000e+00 : f32
    %338 = vector.broadcast %cst_169 : f32 to vector<16x256xf32>
    %339 = arith.maximumf %337, %338 : vector<16x256xf32>
    %340 = arith.addf %168, %339 : vector<16x256xf32>
    %cst_170 = arith.constant 0.000000e+00 : f32
    %341 = vector.broadcast %cst_170 : f32 to vector<16x256xf32>
    %342 = arith.maximumf %340, %341 : vector<16x256xf32>
    %343 = arith.truncf %342 : vector<16x256xf32> to vector<16x256xbf16>
    %c72 = arith.constant 72 : index
    %c0_171 = arith.constant 0 : index
    %344 = vector.load %arg2[%c72, %c0_171] : memref<112x72xbf16, #tpu.memory_space<vmem>>, vector<8x16xbf16>
    %cst_172 = arith.constant dense<0.000000e+00> : vector<8x256xf32>
    %345 = tpu.matmul %344, %343, %cst_172 {dimension_numbers = #tpu.dot_dimension_numbers<[1], [0], [0], [1], [0, 0, 1, 1], [], []>} : vector<8x16xbf16>, vector<16x256xbf16>, vector<8x256xf32> -> vector<8x256xf32>
    %c72_173 = arith.constant 72 : index
    %c0_174 = arith.constant 0 : index
    %346 = vector.load %arg3[%c72_173, %c0_174] : memref<112x1xf32, #tpu.memory_space<vmem>>, vector<8x1xf32>
    %347 = vector.broadcast %346 : vector<8x1xf32> to vector<8x256xf32>
    %348 = arith.addf %345, %347 : vector<8x256xf32>
    %cst_175 = arith.constant dense<0.000000e+00> : vector<256xf32>
    %349 = vector.multi_reduction <add>, %348, %cst_175 [0] : vector<8x256xf32> to vector<256xf32>
    %350 = vector.shape_cast %349 : vector<256xf32> to vector<1x256xf32>
    %c0_176 = arith.constant 0 : index
    %c0_177 = arith.constant 0 : index
    %351 = vector.load %arg6[%c0_176, %c0_177] : memref<256x16xf32, #tpu.memory_space<vmem>>, vector<256x16xf32>
    %cst_178 = arith.constant dense<0.000000e+00> : vector<1x16xf32>
    %352 = tpu.matmul %350, %351, %cst_178 {dimension_numbers = #tpu.dot_dimension_numbers<[1], [0], [0], [1], [0, 0, 1, 1], [], []>} : vector<1x256xf32>, vector<256x16xf32>, vector<1x16xf32> -> vector<1x16xf32>
    %c0_179 = arith.constant 0 : index
    %c0_180 = arith.constant 0 : index
    %353 = vector.load %arg7[%c0_179, %c0_180] : memref<16x256xf32, #tpu.memory_space<vmem>>, vector<16x256xf32>
    %cst_181 = arith.constant dense<0.000000e+00> : vector<1x256xf32>
    %354 = tpu.matmul %352, %353, %cst_181 {dimension_numbers = #tpu.dot_dimension_numbers<[1], [0], [0], [1], [0, 0, 1, 1], [], []>} : vector<1x16xf32>, vector<16x256xf32>, vector<1x256xf32> -> vector<1x256xf32>
    %cst_182 = arith.constant 7.812500e-03 : f32
    %355 = vector.broadcast %cst_182 : f32 to vector<1x256xf32>
    %356 = arith.mulf %354, %355 : vector<1x256xf32>
    %357 = vector.broadcast %356 : vector<1x256xf32> to vector<8x256xf32>
    %358 = arith.subf %348, %357 : vector<8x256xf32>
    %359 = arith.mulf %358, %358 : vector<8x256xf32>
    %cst_183 = arith.constant dense<0.000000e+00> : vector<256xf32>
    %360 = vector.multi_reduction <add>, %359, %cst_183 [0] : vector<8x256xf32> to vector<256xf32>
    %361 = vector.shape_cast %360 : vector<256xf32> to vector<1x256xf32>
    %c0_184 = arith.constant 0 : index
    %c0_185 = arith.constant 0 : index
    %362 = vector.load %arg6[%c0_184, %c0_185] : memref<256x16xf32, #tpu.memory_space<vmem>>, vector<256x16xf32>
    %cst_186 = arith.constant dense<0.000000e+00> : vector<1x16xf32>
    %363 = tpu.matmul %361, %362, %cst_186 {dimension_numbers = #tpu.dot_dimension_numbers<[1], [0], [0], [1], [0, 0, 1, 1], [], []>} : vector<1x256xf32>, vector<256x16xf32>, vector<1x16xf32> -> vector<1x16xf32>
    %c0_187 = arith.constant 0 : index
    %c0_188 = arith.constant 0 : index
    %364 = vector.load %arg7[%c0_187, %c0_188] : memref<16x256xf32, #tpu.memory_space<vmem>>, vector<16x256xf32>
    %cst_189 = arith.constant dense<0.000000e+00> : vector<1x256xf32>
    %365 = tpu.matmul %363, %364, %cst_189 {dimension_numbers = #tpu.dot_dimension_numbers<[1], [0], [0], [1], [0, 0, 1, 1], [], []>} : vector<1x16xf32>, vector<16x256xf32>, vector<1x256xf32> -> vector<1x256xf32>
    %cst_190 = arith.constant 7.812500e-03 : f32
    %366 = vector.broadcast %cst_190 : f32 to vector<1x256xf32>
    %367 = arith.mulf %365, %366 : vector<1x256xf32>
    %cst_191 = arith.constant 9.99999974E-6 : f32
    %368 = vector.broadcast %cst_191 : f32 to vector<1x256xf32>
    %369 = arith.addf %367, %368 : vector<1x256xf32>
    %370 = math.rsqrt %369 : vector<1x256xf32>
    %371 = vector.broadcast %370 : vector<1x256xf32> to vector<8x256xf32>
    %372 = arith.mulf %358, %371 : vector<8x256xf32>
    %c72_192 = arith.constant 72 : index
    %c0_193 = arith.constant 0 : index
    %373 = vector.load %arg4[%c72_192, %c0_193] : memref<104x256xf32, #tpu.memory_space<vmem>>, vector<8x256xf32>
    %374 = arith.mulf %372, %373 : vector<8x256xf32>
    %c72_194 = arith.constant 72 : index
    %c0_195 = arith.constant 0 : index
    %375 = vector.load %arg5[%c72_194, %c0_195] : memref<104x256xf32, #tpu.memory_space<vmem>>, vector<8x256xf32>
    %376 = arith.addf %374, %375 : vector<8x256xf32>
    %c1_i32_196 = arith.constant 1 : i32
    %377 = tpu.dynamic_rotate %342 by %c1_i32_196 dim 1 : vector<16x256xf32>, i32 -> vector<16x256xf32>
    %c1_i32_197 = arith.constant 1 : i32
    %378 = vector.broadcast %c1_i32_197 : i32 to vector<1x256xi32>
    %379 = arith.cmpi sge, %16, %378 : vector<1x256xi32>
    %c17_i32_198 = arith.constant 17 : i32
    %380 = vector.broadcast %c17_i32_198 : i32 to vector<1x256xi32>
    %381 = arith.cmpi slt, %16, %380 : vector<1x256xi32>
    %382 = arith.andi %379, %381 : vector<1x256xi1>
    %cst_199 = arith.constant 0.000000e+00 : f32
    %383 = vector.shape_cast %382 : vector<1x256xi1> to vector<1x256xi1>
    %384 = vector.broadcast %383 : vector<1x256xi1> to vector<16x256xi1>
    %385 = vector.broadcast %cst_199 : f32 to vector<16x256xf32>
    %386 = arith.select %384, %377, %385 : vector<16x256xi1>, vector<16x256xf32>
    %c255_i32_200 = arith.constant 255 : i32
    %387 = tpu.dynamic_rotate %342 by %c255_i32_200 dim 1 : vector<16x256xf32>, i32 -> vector<16x256xf32>
    %c-1_i32_201 = arith.constant -1 : i32
    %388 = vector.broadcast %c-1_i32_201 : i32 to vector<1x256xi32>
    %389 = arith.cmpi sge, %16, %388 : vector<1x256xi32>
    %c15_i32_202 = arith.constant 15 : i32
    %390 = vector.broadcast %c15_i32_202 : i32 to vector<1x256xi32>
    %391 = arith.cmpi slt, %16, %390 : vector<1x256xi32>
    %392 = arith.andi %389, %391 : vector<1x256xi1>
    %cst_203 = arith.constant 0.000000e+00 : f32
    %393 = vector.shape_cast %392 : vector<1x256xi1> to vector<1x256xi1>
    %394 = vector.broadcast %393 : vector<1x256xi1> to vector<16x256xi1>
    %395 = vector.broadcast %cst_203 : f32 to vector<16x256xf32>
    %396 = arith.select %394, %387, %395 : vector<16x256xi1>, vector<16x256xf32>
    %397 = tpu.concatenate %386, %342, %396 in 0 : vector<16x256xf32>, vector<16x256xf32>, vector<16x256xf32> -> vector<48x256xf32>
    %398 = arith.truncf %397 : vector<48x256xf32> to vector<48x256xbf16>
    %c80 = arith.constant 80 : index
    %c0_204 = arith.constant 0 : index
    %399 = vector.load %arg2[%c80, %c0_204] : memref<112x72xbf16, #tpu.memory_space<vmem>>, vector<8x48xbf16>
    %cst_205 = arith.constant dense<0.000000e+00> : vector<8x256xf32>
    %400 = tpu.matmul %399, %398, %cst_205 {dimension_numbers = #tpu.dot_dimension_numbers<[1], [0], [0], [1], [0, 0, 1, 1], [], []>} : vector<8x48xbf16>, vector<48x256xbf16>, vector<8x256xf32> -> vector<8x256xf32>
    %c80_206 = arith.constant 80 : index
    %c0_207 = arith.constant 0 : index
    %401 = vector.load %arg3[%c80_206, %c0_207] : memref<112x1xf32, #tpu.memory_space<vmem>>, vector<8x1xf32>
    %402 = vector.broadcast %401 : vector<8x1xf32> to vector<8x256xf32>
    %403 = arith.addf %400, %402 : vector<8x256xf32>
    %cst_208 = arith.constant dense<0.000000e+00> : vector<256xf32>
    %404 = vector.multi_reduction <add>, %403, %cst_208 [0] : vector<8x256xf32> to vector<256xf32>
    %405 = vector.shape_cast %404 : vector<256xf32> to vector<1x256xf32>
    %c0_209 = arith.constant 0 : index
    %c0_210 = arith.constant 0 : index
    %406 = vector.load %arg6[%c0_209, %c0_210] : memref<256x16xf32, #tpu.memory_space<vmem>>, vector<256x16xf32>
    %cst_211 = arith.constant dense<0.000000e+00> : vector<1x16xf32>
    %407 = tpu.matmul %405, %406, %cst_211 {dimension_numbers = #tpu.dot_dimension_numbers<[1], [0], [0], [1], [0, 0, 1, 1], [], []>} : vector<1x256xf32>, vector<256x16xf32>, vector<1x16xf32> -> vector<1x16xf32>
    %c0_212 = arith.constant 0 : index
    %c0_213 = arith.constant 0 : index
    %408 = vector.load %arg7[%c0_212, %c0_213] : memref<16x256xf32, #tpu.memory_space<vmem>>, vector<16x256xf32>
    %cst_214 = arith.constant dense<0.000000e+00> : vector<1x256xf32>
    %409 = tpu.matmul %407, %408, %cst_214 {dimension_numbers = #tpu.dot_dimension_numbers<[1], [0], [0], [1], [0, 0, 1, 1], [], []>} : vector<1x16xf32>, vector<16x256xf32>, vector<1x256xf32> -> vector<1x256xf32>
    %cst_215 = arith.constant 7.812500e-03 : f32
    %410 = vector.broadcast %cst_215 : f32 to vector<1x256xf32>
    %411 = arith.mulf %409, %410 : vector<1x256xf32>
    %412 = vector.broadcast %411 : vector<1x256xf32> to vector<8x256xf32>
    %413 = arith.subf %403, %412 : vector<8x256xf32>
    %414 = arith.mulf %413, %413 : vector<8x256xf32>
    %cst_216 = arith.constant dense<0.000000e+00> : vector<256xf32>
    %415 = vector.multi_reduction <add>, %414, %cst_216 [0] : vector<8x256xf32> to vector<256xf32>
    %416 = vector.shape_cast %415 : vector<256xf32> to vector<1x256xf32>
    %c0_217 = arith.constant 0 : index
    %c0_218 = arith.constant 0 : index
    %417 = vector.load %arg6[%c0_217, %c0_218] : memref<256x16xf32, #tpu.memory_space<vmem>>, vector<256x16xf32>
    %cst_219 = arith.constant dense<0.000000e+00> : vector<1x16xf32>
    %418 = tpu.matmul %416, %417, %cst_219 {dimension_numbers = #tpu.dot_dimension_numbers<[1], [0], [0], [1], [0, 0, 1, 1], [], []>} : vector<1x256xf32>, vector<256x16xf32>, vector<1x16xf32> -> vector<1x16xf32>
    %c0_220 = arith.constant 0 : index
    %c0_221 = arith.constant 0 : index
    %419 = vector.load %arg7[%c0_220, %c0_221] : memref<16x256xf32, #tpu.memory_space<vmem>>, vector<16x256xf32>
    %cst_222 = arith.constant dense<0.000000e+00> : vector<1x256xf32>
    %420 = tpu.matmul %418, %419, %cst_222 {dimension_numbers = #tpu.dot_dimension_numbers<[1], [0], [0], [1], [0, 0, 1, 1], [], []>} : vector<1x16xf32>, vector<16x256xf32>, vector<1x256xf32> -> vector<1x256xf32>
    %cst_223 = arith.constant 7.812500e-03 : f32
    %421 = vector.broadcast %cst_223 : f32 to vector<1x256xf32>
    %422 = arith.mulf %420, %421 : vector<1x256xf32>
    %cst_224 = arith.constant 9.99999974E-6 : f32
    %423 = vector.broadcast %cst_224 : f32 to vector<1x256xf32>
    %424 = arith.addf %422, %423 : vector<1x256xf32>
    %425 = math.rsqrt %424 : vector<1x256xf32>
    %426 = vector.broadcast %425 : vector<1x256xf32> to vector<8x256xf32>
    %427 = arith.mulf %413, %426 : vector<8x256xf32>
    %c80_225 = arith.constant 80 : index
    %c0_226 = arith.constant 0 : index
    %428 = vector.load %arg4[%c80_225, %c0_226] : memref<104x256xf32, #tpu.memory_space<vmem>>, vector<8x256xf32>
    %429 = arith.mulf %427, %428 : vector<8x256xf32>
    %c80_227 = arith.constant 80 : index
    %c0_228 = arith.constant 0 : index
    %430 = vector.load %arg5[%c80_227, %c0_228] : memref<104x256xf32, #tpu.memory_space<vmem>>, vector<8x256xf32>
    %431 = arith.addf %429, %430 : vector<8x256xf32>
    %cst_229 = arith.constant 0.000000e+00 : f32
    %432 = vector.broadcast %cst_229 : f32 to vector<8x256xf32>
    %433 = arith.maximumf %431, %432 : vector<8x256xf32>
    %c1_i32_230 = arith.constant 1 : i32
    %434 = tpu.dynamic_rotate %433 by %c1_i32_230 dim 1 : vector<8x256xf32>, i32 -> vector<8x256xf32>
    %c1_i32_231 = arith.constant 1 : i32
    %435 = vector.broadcast %c1_i32_231 : i32 to vector<1x256xi32>
    %436 = arith.cmpi sge, %16, %435 : vector<1x256xi32>
    %c17_i32_232 = arith.constant 17 : i32
    %437 = vector.broadcast %c17_i32_232 : i32 to vector<1x256xi32>
    %438 = arith.cmpi slt, %16, %437 : vector<1x256xi32>
    %439 = arith.andi %436, %438 : vector<1x256xi1>
    %cst_233 = arith.constant 0.000000e+00 : f32
    %440 = vector.shape_cast %439 : vector<1x256xi1> to vector<1x256xi1>
    %441 = vector.broadcast %440 : vector<1x256xi1> to vector<8x256xi1>
    %442 = vector.broadcast %cst_233 : f32 to vector<8x256xf32>
    %443 = arith.select %441, %434, %442 : vector<8x256xi1>, vector<8x256xf32>
    %c255_i32_234 = arith.constant 255 : i32
    %444 = tpu.dynamic_rotate %433 by %c255_i32_234 dim 1 : vector<8x256xf32>, i32 -> vector<8x256xf32>
    %c-1_i32_235 = arith.constant -1 : i32
    %445 = vector.broadcast %c-1_i32_235 : i32 to vector<1x256xi32>
    %446 = arith.cmpi sge, %16, %445 : vector<1x256xi32>
    %c15_i32_236 = arith.constant 15 : i32
    %447 = vector.broadcast %c15_i32_236 : i32 to vector<1x256xi32>
    %448 = arith.cmpi slt, %16, %447 : vector<1x256xi32>
    %449 = arith.andi %446, %448 : vector<1x256xi1>
    %cst_237 = arith.constant 0.000000e+00 : f32
    %450 = vector.shape_cast %449 : vector<1x256xi1> to vector<1x256xi1>
    %451 = vector.broadcast %450 : vector<1x256xi1> to vector<8x256xi1>
    %452 = vector.broadcast %cst_237 : f32 to vector<8x256xf32>
    %453 = arith.select %451, %444, %452 : vector<8x256xi1>, vector<8x256xf32>
    %454 = tpu.concatenate %443, %433, %453 in 0 : vector<8x256xf32>, vector<8x256xf32>, vector<8x256xf32> -> vector<24x256xf32>
    %455 = arith.truncf %454 : vector<24x256xf32> to vector<24x256xbf16>
    %c88 = arith.constant 88 : index
    %c0_238 = arith.constant 0 : index
    %456 = vector.load %arg2[%c88, %c0_238] : memref<112x72xbf16, #tpu.memory_space<vmem>>, vector<8x24xbf16>
    %cst_239 = arith.constant dense<0.000000e+00> : vector<8x256xf32>
    %457 = tpu.matmul %456, %455, %cst_239 {dimension_numbers = #tpu.dot_dimension_numbers<[1], [0], [0], [1], [0, 0, 1, 1], [], []>} : vector<8x24xbf16>, vector<24x256xbf16>, vector<8x256xf32> -> vector<8x256xf32>
    %c88_240 = arith.constant 88 : index
    %c0_241 = arith.constant 0 : index
    %458 = vector.load %arg3[%c88_240, %c0_241] : memref<112x1xf32, #tpu.memory_space<vmem>>, vector<8x1xf32>
    %459 = vector.broadcast %458 : vector<8x1xf32> to vector<8x256xf32>
    %460 = arith.addf %457, %459 : vector<8x256xf32>
    %cst_242 = arith.constant dense<0.000000e+00> : vector<256xf32>
    %461 = vector.multi_reduction <add>, %460, %cst_242 [0] : vector<8x256xf32> to vector<256xf32>
    %462 = vector.shape_cast %461 : vector<256xf32> to vector<1x256xf32>
    %c0_243 = arith.constant 0 : index
    %c0_244 = arith.constant 0 : index
    %463 = vector.load %arg6[%c0_243, %c0_244] : memref<256x16xf32, #tpu.memory_space<vmem>>, vector<256x16xf32>
    %cst_245 = arith.constant dense<0.000000e+00> : vector<1x16xf32>
    %464 = tpu.matmul %462, %463, %cst_245 {dimension_numbers = #tpu.dot_dimension_numbers<[1], [0], [0], [1], [0, 0, 1, 1], [], []>} : vector<1x256xf32>, vector<256x16xf32>, vector<1x16xf32> -> vector<1x16xf32>
    %c0_246 = arith.constant 0 : index
    %c0_247 = arith.constant 0 : index
    %465 = vector.load %arg7[%c0_246, %c0_247] : memref<16x256xf32, #tpu.memory_space<vmem>>, vector<16x256xf32>
    %cst_248 = arith.constant dense<0.000000e+00> : vector<1x256xf32>
    %466 = tpu.matmul %464, %465, %cst_248 {dimension_numbers = #tpu.dot_dimension_numbers<[1], [0], [0], [1], [0, 0, 1, 1], [], []>} : vector<1x16xf32>, vector<16x256xf32>, vector<1x256xf32> -> vector<1x256xf32>
    %cst_249 = arith.constant 7.812500e-03 : f32
    %467 = vector.broadcast %cst_249 : f32 to vector<1x256xf32>
    %468 = arith.mulf %466, %467 : vector<1x256xf32>
    %469 = vector.broadcast %468 : vector<1x256xf32> to vector<8x256xf32>
    %470 = arith.subf %460, %469 : vector<8x256xf32>
    %471 = arith.mulf %470, %470 : vector<8x256xf32>
    %cst_250 = arith.constant dense<0.000000e+00> : vector<256xf32>
    %472 = vector.multi_reduction <add>, %471, %cst_250 [0] : vector<8x256xf32> to vector<256xf32>
    %473 = vector.shape_cast %472 : vector<256xf32> to vector<1x256xf32>
    %c0_251 = arith.constant 0 : index
    %c0_252 = arith.constant 0 : index
    %474 = vector.load %arg6[%c0_251, %c0_252] : memref<256x16xf32, #tpu.memory_space<vmem>>, vector<256x16xf32>
    %cst_253 = arith.constant dense<0.000000e+00> : vector<1x16xf32>
    %475 = tpu.matmul %473, %474, %cst_253 {dimension_numbers = #tpu.dot_dimension_numbers<[1], [0], [0], [1], [0, 0, 1, 1], [], []>} : vector<1x256xf32>, vector<256x16xf32>, vector<1x16xf32> -> vector<1x16xf32>
    %c0_254 = arith.constant 0 : index
    %c0_255 = arith.constant 0 : index
    %476 = vector.load %arg7[%c0_254, %c0_255] : memref<16x256xf32, #tpu.memory_space<vmem>>, vector<16x256xf32>
    %cst_256 = arith.constant dense<0.000000e+00> : vector<1x256xf32>
    %477 = tpu.matmul %475, %476, %cst_256 {dimension_numbers = #tpu.dot_dimension_numbers<[1], [0], [0], [1], [0, 0, 1, 1], [], []>} : vector<1x16xf32>, vector<16x256xf32>, vector<1x256xf32> -> vector<1x256xf32>
    %cst_257 = arith.constant 7.812500e-03 : f32
    %478 = vector.broadcast %cst_257 : f32 to vector<1x256xf32>
    %479 = arith.mulf %477, %478 : vector<1x256xf32>
    %cst_258 = arith.constant 9.99999974E-6 : f32
    %480 = vector.broadcast %cst_258 : f32 to vector<1x256xf32>
    %481 = arith.addf %479, %480 : vector<1x256xf32>
    %482 = math.rsqrt %481 : vector<1x256xf32>
    %483 = vector.broadcast %482 : vector<1x256xf32> to vector<8x256xf32>
    %484 = arith.mulf %470, %483 : vector<8x256xf32>
    %c88_259 = arith.constant 88 : index
    %c0_260 = arith.constant 0 : index
    %485 = vector.load %arg4[%c88_259, %c0_260] : memref<104x256xf32, #tpu.memory_space<vmem>>, vector<8x256xf32>
    %486 = arith.mulf %484, %485 : vector<8x256xf32>
    %c88_261 = arith.constant 88 : index
    %c0_262 = arith.constant 0 : index
    %487 = vector.load %arg5[%c88_261, %c0_262] : memref<104x256xf32, #tpu.memory_space<vmem>>, vector<8x256xf32>
    %488 = arith.addf %486, %487 : vector<8x256xf32>
    %cst_263 = arith.constant 0.000000e+00 : f32
    %489 = vector.broadcast %cst_263 : f32 to vector<8x256xf32>
    %490 = arith.maximumf %488, %489 : vector<8x256xf32>
    %c1_i32_264 = arith.constant 1 : i32
    %491 = tpu.dynamic_rotate %490 by %c1_i32_264 dim 1 : vector<8x256xf32>, i32 -> vector<8x256xf32>
    %c1_i32_265 = arith.constant 1 : i32
    %492 = vector.broadcast %c1_i32_265 : i32 to vector<1x256xi32>
    %493 = arith.cmpi sge, %16, %492 : vector<1x256xi32>
    %c17_i32_266 = arith.constant 17 : i32
    %494 = vector.broadcast %c17_i32_266 : i32 to vector<1x256xi32>
    %495 = arith.cmpi slt, %16, %494 : vector<1x256xi32>
    %496 = arith.andi %493, %495 : vector<1x256xi1>
    %cst_267 = arith.constant 0.000000e+00 : f32
    %497 = vector.shape_cast %496 : vector<1x256xi1> to vector<1x256xi1>
    %498 = vector.broadcast %497 : vector<1x256xi1> to vector<8x256xi1>
    %499 = vector.broadcast %cst_267 : f32 to vector<8x256xf32>
    %500 = arith.select %498, %491, %499 : vector<8x256xi1>, vector<8x256xf32>
    %c255_i32_268 = arith.constant 255 : i32
    %501 = tpu.dynamic_rotate %490 by %c255_i32_268 dim 1 : vector<8x256xf32>, i32 -> vector<8x256xf32>
    %c-1_i32_269 = arith.constant -1 : i32
    %502 = vector.broadcast %c-1_i32_269 : i32 to vector<1x256xi32>
    %503 = arith.cmpi sge, %16, %502 : vector<1x256xi32>
    %c15_i32_270 = arith.constant 15 : i32
    %504 = vector.broadcast %c15_i32_270 : i32 to vector<1x256xi32>
    %505 = arith.cmpi slt, %16, %504 : vector<1x256xi32>
    %506 = arith.andi %503, %505 : vector<1x256xi1>
    %cst_271 = arith.constant 0.000000e+00 : f32
    %507 = vector.shape_cast %506 : vector<1x256xi1> to vector<1x256xi1>
    %508 = vector.broadcast %507 : vector<1x256xi1> to vector<8x256xi1>
    %509 = vector.broadcast %cst_271 : f32 to vector<8x256xf32>
    %510 = arith.select %508, %501, %509 : vector<8x256xi1>, vector<8x256xf32>
    %511 = tpu.concatenate %500, %490, %510 in 0 : vector<8x256xf32>, vector<8x256xf32>, vector<8x256xf32> -> vector<24x256xf32>
    %512 = arith.truncf %511 : vector<24x256xf32> to vector<24x256xbf16>
    %c96 = arith.constant 96 : index
    %c0_272 = arith.constant 0 : index
    %513 = vector.load %arg2[%c96, %c0_272] : memref<112x72xbf16, #tpu.memory_space<vmem>>, vector<8x24xbf16>
    %cst_273 = arith.constant dense<0.000000e+00> : vector<8x256xf32>
    %514 = tpu.matmul %513, %512, %cst_273 {dimension_numbers = #tpu.dot_dimension_numbers<[1], [0], [0], [1], [0, 0, 1, 1], [], []>} : vector<8x24xbf16>, vector<24x256xbf16>, vector<8x256xf32> -> vector<8x256xf32>
    %c96_274 = arith.constant 96 : index
    %c0_275 = arith.constant 0 : index
    %515 = vector.load %arg3[%c96_274, %c0_275] : memref<112x1xf32, #tpu.memory_space<vmem>>, vector<8x1xf32>
    %516 = vector.broadcast %515 : vector<8x1xf32> to vector<8x256xf32>
    %517 = arith.addf %514, %516 : vector<8x256xf32>
    %cst_276 = arith.constant dense<0.000000e+00> : vector<256xf32>
    %518 = vector.multi_reduction <add>, %517, %cst_276 [0] : vector<8x256xf32> to vector<256xf32>
    %519 = vector.shape_cast %518 : vector<256xf32> to vector<1x256xf32>
    %c0_277 = arith.constant 0 : index
    %c0_278 = arith.constant 0 : index
    %520 = vector.load %arg6[%c0_277, %c0_278] : memref<256x16xf32, #tpu.memory_space<vmem>>, vector<256x16xf32>
    %cst_279 = arith.constant dense<0.000000e+00> : vector<1x16xf32>
    %521 = tpu.matmul %519, %520, %cst_279 {dimension_numbers = #tpu.dot_dimension_numbers<[1], [0], [0], [1], [0, 0, 1, 1], [], []>} : vector<1x256xf32>, vector<256x16xf32>, vector<1x16xf32> -> vector<1x16xf32>
    %c0_280 = arith.constant 0 : index
    %c0_281 = arith.constant 0 : index
    %522 = vector.load %arg7[%c0_280, %c0_281] : memref<16x256xf32, #tpu.memory_space<vmem>>, vector<16x256xf32>
    %cst_282 = arith.constant dense<0.000000e+00> : vector<1x256xf32>
    %523 = tpu.matmul %521, %522, %cst_282 {dimension_numbers = #tpu.dot_dimension_numbers<[1], [0], [0], [1], [0, 0, 1, 1], [], []>} : vector<1x16xf32>, vector<16x256xf32>, vector<1x256xf32> -> vector<1x256xf32>
    %cst_283 = arith.constant 7.812500e-03 : f32
    %524 = vector.broadcast %cst_283 : f32 to vector<1x256xf32>
    %525 = arith.mulf %523, %524 : vector<1x256xf32>
    %526 = vector.broadcast %525 : vector<1x256xf32> to vector<8x256xf32>
    %527 = arith.subf %517, %526 : vector<8x256xf32>
    %528 = arith.mulf %527, %527 : vector<8x256xf32>
    %cst_284 = arith.constant dense<0.000000e+00> : vector<256xf32>
    %529 = vector.multi_reduction <add>, %528, %cst_284 [0] : vector<8x256xf32> to vector<256xf32>
    %530 = vector.shape_cast %529 : vector<256xf32> to vector<1x256xf32>
    %c0_285 = arith.constant 0 : index
    %c0_286 = arith.constant 0 : index
    %531 = vector.load %arg6[%c0_285, %c0_286] : memref<256x16xf32, #tpu.memory_space<vmem>>, vector<256x16xf32>
    %cst_287 = arith.constant dense<0.000000e+00> : vector<1x16xf32>
    %532 = tpu.matmul %530, %531, %cst_287 {dimension_numbers = #tpu.dot_dimension_numbers<[1], [0], [0], [1], [0, 0, 1, 1], [], []>} : vector<1x256xf32>, vector<256x16xf32>, vector<1x16xf32> -> vector<1x16xf32>
    %c0_288 = arith.constant 0 : index
    %c0_289 = arith.constant 0 : index
    %533 = vector.load %arg7[%c0_288, %c0_289] : memref<16x256xf32, #tpu.memory_space<vmem>>, vector<16x256xf32>
    %cst_290 = arith.constant dense<0.000000e+00> : vector<1x256xf32>
    %534 = tpu.matmul %532, %533, %cst_290 {dimension_numbers = #tpu.dot_dimension_numbers<[1], [0], [0], [1], [0, 0, 1, 1], [], []>} : vector<1x16xf32>, vector<16x256xf32>, vector<1x256xf32> -> vector<1x256xf32>
    %cst_291 = arith.constant 7.812500e-03 : f32
    %535 = vector.broadcast %cst_291 : f32 to vector<1x256xf32>
    %536 = arith.mulf %534, %535 : vector<1x256xf32>
    %cst_292 = arith.constant 9.99999974E-6 : f32
    %537 = vector.broadcast %cst_292 : f32 to vector<1x256xf32>
    %538 = arith.addf %536, %537 : vector<1x256xf32>
    %539 = math.rsqrt %538 : vector<1x256xf32>
    %540 = vector.broadcast %539 : vector<1x256xf32> to vector<8x256xf32>
    %541 = arith.mulf %527, %540 : vector<8x256xf32>
    %c96_293 = arith.constant 96 : index
    %c0_294 = arith.constant 0 : index
    %542 = vector.load %arg4[%c96_293, %c0_294] : memref<104x256xf32, #tpu.memory_space<vmem>>, vector<8x256xf32>
    %543 = arith.mulf %541, %542 : vector<8x256xf32>
    %c96_295 = arith.constant 96 : index
    %c0_296 = arith.constant 0 : index
    %544 = vector.load %arg5[%c96_295, %c0_296] : memref<104x256xf32, #tpu.memory_space<vmem>>, vector<8x256xf32>
    %545 = arith.addf %543, %544 : vector<8x256xf32>
    %cst_297 = arith.constant 0.000000e+00 : f32
    %546 = vector.broadcast %cst_297 : f32 to vector<8x256xf32>
    %547 = arith.maximumf %545, %546 : vector<8x256xf32>
    %548 = arith.addf %376, %547 : vector<8x256xf32>
    %cst_298 = arith.constant 0.000000e+00 : f32
    %549 = vector.broadcast %cst_298 : f32 to vector<8x256xf32>
    %550 = arith.maximumf %548, %549 : vector<8x256xf32>
    %c4_i32_299 = arith.constant 4 : i32
    %551 = tpu.dynamic_rotate %550 by %c4_i32_299 dim 1 : vector<8x256xf32>, i32 -> vector<8x256xf32>
    %c4_i32_300 = arith.constant 4 : i32
    %552 = vector.broadcast %c4_i32_300 : i32 to vector<1x256xi32>
    %553 = arith.cmpi sge, %16, %552 : vector<1x256xi32>
    %c20_i32_301 = arith.constant 20 : i32
    %554 = vector.broadcast %c20_i32_301 : i32 to vector<1x256xi32>
    %555 = arith.cmpi slt, %16, %554 : vector<1x256xi32>
    %556 = arith.andi %553, %555 : vector<1x256xi1>
    %cst_302 = arith.constant 0.000000e+00 : f32
    %557 = vector.shape_cast %556 : vector<1x256xi1> to vector<1x256xi1>
    %558 = vector.broadcast %557 : vector<1x256xi1> to vector<8x256xi1>
    %559 = vector.broadcast %cst_302 : f32 to vector<8x256xf32>
    %560 = arith.select %558, %551, %559 : vector<8x256xi1>, vector<8x256xf32>
    %c3_i32_303 = arith.constant 3 : i32
    %561 = tpu.dynamic_rotate %550 by %c3_i32_303 dim 1 : vector<8x256xf32>, i32 -> vector<8x256xf32>
    %c3_i32_304 = arith.constant 3 : i32
    %562 = vector.broadcast %c3_i32_304 : i32 to vector<1x256xi32>
    %563 = arith.cmpi sge, %16, %562 : vector<1x256xi32>
    %c19_i32_305 = arith.constant 19 : i32
    %564 = vector.broadcast %c19_i32_305 : i32 to vector<1x256xi32>
    %565 = arith.cmpi slt, %16, %564 : vector<1x256xi32>
    %566 = arith.andi %563, %565 : vector<1x256xi1>
    %cst_306 = arith.constant 0.000000e+00 : f32
    %567 = vector.shape_cast %566 : vector<1x256xi1> to vector<1x256xi1>
    %568 = vector.broadcast %567 : vector<1x256xi1> to vector<8x256xi1>
    %569 = vector.broadcast %cst_306 : f32 to vector<8x256xf32>
    %570 = arith.select %568, %561, %569 : vector<8x256xi1>, vector<8x256xf32>
    %c2_i32_307 = arith.constant 2 : i32
    %571 = tpu.dynamic_rotate %550 by %c2_i32_307 dim 1 : vector<8x256xf32>, i32 -> vector<8x256xf32>
    %c2_i32_308 = arith.constant 2 : i32
    %572 = vector.broadcast %c2_i32_308 : i32 to vector<1x256xi32>
    %573 = arith.cmpi sge, %16, %572 : vector<1x256xi32>
    %c18_i32_309 = arith.constant 18 : i32
    %574 = vector.broadcast %c18_i32_309 : i32 to vector<1x256xi32>
    %575 = arith.cmpi slt, %16, %574 : vector<1x256xi32>
    %576 = arith.andi %573, %575 : vector<1x256xi1>
    %cst_310 = arith.constant 0.000000e+00 : f32
    %577 = vector.shape_cast %576 : vector<1x256xi1> to vector<1x256xi1>
    %578 = vector.broadcast %577 : vector<1x256xi1> to vector<8x256xi1>
    %579 = vector.broadcast %cst_310 : f32 to vector<8x256xf32>
    %580 = arith.select %578, %571, %579 : vector<8x256xi1>, vector<8x256xf32>
    %c1_i32_311 = arith.constant 1 : i32
    %581 = tpu.dynamic_rotate %550 by %c1_i32_311 dim 1 : vector<8x256xf32>, i32 -> vector<8x256xf32>
    %c1_i32_312 = arith.constant 1 : i32
    %582 = vector.broadcast %c1_i32_312 : i32 to vector<1x256xi32>
    %583 = arith.cmpi sge, %16, %582 : vector<1x256xi32>
    %c17_i32_313 = arith.constant 17 : i32
    %584 = vector.broadcast %c17_i32_313 : i32 to vector<1x256xi32>
    %585 = arith.cmpi slt, %16, %584 : vector<1x256xi32>
    %586 = arith.andi %583, %585 : vector<1x256xi1>
    %cst_314 = arith.constant 0.000000e+00 : f32
    %587 = vector.shape_cast %586 : vector<1x256xi1> to vector<1x256xi1>
    %588 = vector.broadcast %587 : vector<1x256xi1> to vector<8x256xi1>
    %589 = vector.broadcast %cst_314 : f32 to vector<8x256xf32>
    %590 = arith.select %588, %581, %589 : vector<8x256xi1>, vector<8x256xf32>
    %c255_i32_315 = arith.constant 255 : i32
    %591 = tpu.dynamic_rotate %550 by %c255_i32_315 dim 1 : vector<8x256xf32>, i32 -> vector<8x256xf32>
    %c-1_i32_316 = arith.constant -1 : i32
    %592 = vector.broadcast %c-1_i32_316 : i32 to vector<1x256xi32>
    %593 = arith.cmpi sge, %16, %592 : vector<1x256xi32>
    %c15_i32_317 = arith.constant 15 : i32
    %594 = vector.broadcast %c15_i32_317 : i32 to vector<1x256xi32>
    %595 = arith.cmpi slt, %16, %594 : vector<1x256xi32>
    %596 = arith.andi %593, %595 : vector<1x256xi1>
    %cst_318 = arith.constant 0.000000e+00 : f32
    %597 = vector.shape_cast %596 : vector<1x256xi1> to vector<1x256xi1>
    %598 = vector.broadcast %597 : vector<1x256xi1> to vector<8x256xi1>
    %599 = vector.broadcast %cst_318 : f32 to vector<8x256xf32>
    %600 = arith.select %598, %591, %599 : vector<8x256xi1>, vector<8x256xf32>
    %c254_i32_319 = arith.constant 254 : i32
    %601 = tpu.dynamic_rotate %550 by %c254_i32_319 dim 1 : vector<8x256xf32>, i32 -> vector<8x256xf32>
    %c-2_i32_320 = arith.constant -2 : i32
    %602 = vector.broadcast %c-2_i32_320 : i32 to vector<1x256xi32>
    %603 = arith.cmpi sge, %16, %602 : vector<1x256xi32>
    %c14_i32_321 = arith.constant 14 : i32
    %604 = vector.broadcast %c14_i32_321 : i32 to vector<1x256xi32>
    %605 = arith.cmpi slt, %16, %604 : vector<1x256xi32>
    %606 = arith.andi %603, %605 : vector<1x256xi1>
    %cst_322 = arith.constant 0.000000e+00 : f32
    %607 = vector.shape_cast %606 : vector<1x256xi1> to vector<1x256xi1>
    %608 = vector.broadcast %607 : vector<1x256xi1> to vector<8x256xi1>
    %609 = vector.broadcast %cst_322 : f32 to vector<8x256xf32>
    %610 = arith.select %608, %601, %609 : vector<8x256xi1>, vector<8x256xf32>
    %c253_i32_323 = arith.constant 253 : i32
    %611 = tpu.dynamic_rotate %550 by %c253_i32_323 dim 1 : vector<8x256xf32>, i32 -> vector<8x256xf32>
    %c-3_i32_324 = arith.constant -3 : i32
    %612 = vector.broadcast %c-3_i32_324 : i32 to vector<1x256xi32>
    %613 = arith.cmpi sge, %16, %612 : vector<1x256xi32>
    %c13_i32_325 = arith.constant 13 : i32
    %614 = vector.broadcast %c13_i32_325 : i32 to vector<1x256xi32>
    %615 = arith.cmpi slt, %16, %614 : vector<1x256xi32>
    %616 = arith.andi %613, %615 : vector<1x256xi1>
    %cst_326 = arith.constant 0.000000e+00 : f32
    %617 = vector.shape_cast %616 : vector<1x256xi1> to vector<1x256xi1>
    %618 = vector.broadcast %617 : vector<1x256xi1> to vector<8x256xi1>
    %619 = vector.broadcast %cst_326 : f32 to vector<8x256xf32>
    %620 = arith.select %618, %611, %619 : vector<8x256xi1>, vector<8x256xf32>
    %c252_i32_327 = arith.constant 252 : i32
    %621 = tpu.dynamic_rotate %550 by %c252_i32_327 dim 1 : vector<8x256xf32>, i32 -> vector<8x256xf32>
    %c-4_i32_328 = arith.constant -4 : i32
    %622 = vector.broadcast %c-4_i32_328 : i32 to vector<1x256xi32>
    %623 = arith.cmpi sge, %16, %622 : vector<1x256xi32>
    %c12_i32_329 = arith.constant 12 : i32
    %624 = vector.broadcast %c12_i32_329 : i32 to vector<1x256xi32>
    %625 = arith.cmpi slt, %16, %624 : vector<1x256xi32>
    %626 = arith.andi %623, %625 : vector<1x256xi1>
    %cst_330 = arith.constant 0.000000e+00 : f32
    %627 = vector.shape_cast %626 : vector<1x256xi1> to vector<1x256xi1>
    %628 = vector.broadcast %627 : vector<1x256xi1> to vector<8x256xi1>
    %629 = vector.broadcast %cst_330 : f32 to vector<8x256xf32>
    %630 = arith.select %628, %621, %629 : vector<8x256xi1>, vector<8x256xf32>
    %631 = tpu.concatenate %560, %570, %580, %590, %550, %600, %610, %620, %630 in 0 : vector<8x256xf32>, vector<8x256xf32>, vector<8x256xf32>, vector<8x256xf32>, vector<8x256xf32>, vector<8x256xf32>, vector<8x256xf32>, vector<8x256xf32>, vector<8x256xf32> -> vector<72x256xf32>
    %632 = arith.truncf %631 : vector<72x256xf32> to vector<72x256xbf16>
    %c104 = arith.constant 104 : index
    %c0_331 = arith.constant 0 : index
    %633 = vector.load %arg2[%c104, %c0_331] : memref<112x72xbf16, #tpu.memory_space<vmem>>, vector<8x72xbf16>
    %cst_332 = arith.constant dense<0.000000e+00> : vector<8x256xf32>
    %634 = tpu.matmul %633, %632, %cst_332 {dimension_numbers = #tpu.dot_dimension_numbers<[1], [0], [0], [1], [0, 0, 1, 1], [], []>} : vector<8x72xbf16>, vector<72x256xbf16>, vector<8x256xf32> -> vector<8x256xf32>
    %c104_333 = arith.constant 104 : index
    %c0_334 = arith.constant 0 : index
    %635 = vector.load %arg3[%c104_333, %c0_334] : memref<112x1xf32, #tpu.memory_space<vmem>>, vector<8x1xf32>
    %636 = vector.broadcast %635 : vector<8x1xf32> to vector<8x256xf32>
    %637 = arith.addf %634, %636 : vector<8x256xf32>
    %c0_335 = arith.constant 0 : index
    %c0_336 = arith.constant 0 : index
    %638 = vector.load %arg8[%c0_335, %c0_336] : memref<8x256xf32, #tpu.memory_space<vmem>>, vector<8x256xf32>
    tpu.vector_store %arg8[%c0_335, %c0_336], %637 {strides = array<i32>} : memref<8x256xf32, #tpu.memory_space<vmem>>, vector<8x256xf32>,
    return
  }
  func.func @transform_0(%arg0: i32) -> (i32, i32) {
    %c0_i32 = arith.constant 0 : i32
    %c0_i32_0 = arith.constant 0 : i32
    return %c0_i32, %arg0 : i32, i32
  }
  func.func @transform_1(%arg0: i32) -> (i32, i32) {
    %c0_i32 = arith.constant 0 : i32
    %c0_i32_0 = arith.constant 0 : i32
    %c0_i32_1 = arith.constant 0 : i32
    return %c0_i32, %c0_i32_0 : i32, i32
  }
  func.func @transform_2(%arg0: i32) -> (i32, i32) {
    %c0_i32 = arith.constant 0 : i32
    %c0_i32_0 = arith.constant 0 : i32
    %c0_i32_1 = arith.constant 0 : i32
    return %c0_i32, %c0_i32_0 : i32, i32
  }
  func.func @transform_3(%arg0: i32) -> (i32, i32) {
    %c0_i32 = arith.constant 0 : i32
    %c0_i32_0 = arith.constant 0 : i32
    %c0_i32_1 = arith.constant 0 : i32
    return %c0_i32, %c0_i32_0 : i32, i32
  }
  func.func @transform_4(%arg0: i32) -> (i32, i32) {
    %c0_i32 = arith.constant 0 : i32
    %c0_i32_0 = arith.constant 0 : i32
    %c0_i32_1 = arith.constant 0 : i32
    return %c0_i32, %c0_i32_0 : i32, i32
  }
  func.func @transform_5(%arg0: i32) -> (i32, i32) {
    %c0_i32 = arith.constant 0 : i32
    %c0_i32_0 = arith.constant 0 : i32
    %c0_i32_1 = arith.constant 0 : i32
    return %c0_i32, %c0_i32_0 : i32, i32
  }
  func.func @transform_6(%arg0: i32) -> (i32, i32) {
    %c0_i32 = arith.constant 0 : i32
    %c0_i32_0 = arith.constant 0 : i32
    %c0_i32_1 = arith.constant 0 : i32
    return %c0_i32, %c0_i32_0 : i32, i32
  }
  func.func @transform_7(%arg0: i32) -> (i32, i32) {
    %c0_i32 = arith.constant 0 : i32
    %c0_i32_0 = arith.constant 0 : i32
    return %c0_i32, %arg0 : i32, i32
  }
}

</mosaic_0001>

<bundles_post_ra>
// kernel: mae_alpha_forward.3
= control target key start
LH: loop header
LB: loop body
LE: loop exit
PB: predicated region body
PF: predicated region fallthrough
CT: control target
= control target key end

     0   :  { %s4054_s24 = smov 0   ;;  %s6233_s0 = inlined_call_operand.vmem [shape: f32[8,512], index: 0, kind: input, shape index: {}]   ;;  %s6234_s1 = inlined_call_operand.vmem [shape: bf16[112,72], index: 1, kind: input, shape index: {}]   ;;  %s6235_s2 = inlined_call_operand.vmem [shape: f32[112,1], index: 2, kind: input, shape index: {}]   ;;  %s6236_s3 = inlined_call_operand.vmem [shape: f32[104,256], index: 3, kind: input, shape index: {}]   ;;  %s6237_s4 = inlined_call_operand.vmem [shape: f32[104,256], index: 4, kind: input, shape index: {}]   ;;  %s6238_s5 = inlined_call_operand.vmem [shape: f32[256,16], index: 5, kind: input, shape index: {}]   ;;  %s6239_s6 = inlined_call_operand.vmem [shape: f32[16,256], index: 6, kind: input, shape index: {}]   ;;  %s6240_s7 = inlined_call_operand.vmem [shape: f32[8,512], index: 7, kind: output, shape index: {}]  }
   0x1 LB: > { %s3486_s25 = sadd.s32 4294967295, %s4002_s24   ;;  %p3490_p0 = scmp.ge.s32.totalorder %s4002_s24, 1  ;;  %s4002_s24 = sphi %s4054_s24, %s17_s24  }
   0x2   : > { %p238_p1 = scmp.lt.s32.totalorder %s4002_s24, 3 }
   0x4   : > { %p239_p2 = pnand %p3490_p0, %p238_p1 }
   0x6   : > { %242 = sbr.rel (%p239_p2) target bundleno = 7168 (0x1c00), region = 48 }
   0xb   : > { %s3491_s26 = sshll.u32 %s3486_s25, 1  ;;  %s4004_s8 = smov 124   ;;  %v283_v3 = vlaneseq  ;;  %v475_v9 = vld [vmem:[%s6235_s2] sm:$0xff]  ;;  %v4100_v10 = vld [vmem:[%s6238_s5 + $0x78] sm:$0xff]  ;;  %v4012_v12 = vmov 0   ;;  %v4111_v13 = vld [vmem:[%s6238_s5 + $0x70] sm:$0xff] }
   0xc   : > { %p271_p3 = scmp.lt.s32.totalorder %s3491_s26, 3  ;;  %s4005_s9 = smov 125   ;;  %v4105_v11 = vld [vmem:[%s6238_s5 + $0xf8] sm:$0xff]  ;;  %3733 = vset.pattern.permute.xlu2 %v4012_v12  ;;  %562 = vmatpush.msra.mxu2 %v4100_v10  ;;  %v4116_v14 = vld [vmem:[%s6238_s5 + $0xf0] sm:$0xff]  ;;  %v4122_v15 = vld [vmem:[%s6238_s5 + $0x68] sm:$0xff]  ;;  %vm6275_vm3 = vcmask 1043456  }
   0xd   : > { %s4006_s10 = smov 2   ;;  %s4007_s11 = smov 126   ;;  %v4084_v4 = vand.u32 127, %v283_v3  ;;  %582 = vmatpush.msra.mxu3 %v4105_v11  ;;  %v4131_v18 = vld [vmem:[%s6238_s5 + $0xe8] sm:$0xff]  ;;  %3735 = vset.pattern.permute.xlu1 %v4012_v12  ;;  %v4139_v21 = vld [vmem:[%s6238_s5 + $0x60] sm:$0xff]  ;;  %v4155_v25 = vld [vmem:[%s6238_s5 + $0x58] sm:$0xff] }
   0xe   : > { %s6548_s26 = smov (!%p271_p3, %s3491_s26), 3  ;;  %s4008_s12 = smov 127   ;;  %563 = vmatpush.msra.mxu2 %v4111_v13  ;;  %3734 = vset.pattern.permute.xlu0 %v4012_v12  ;;  %v4145_v22 = vld [vmem:[%s6238_s5 + $0xe0] sm:$0xff]  ;;  %v4167_v28 = vld [vmem:[%s6238_s5 + $0xd8] sm:$0xff]  ;;  %v4180_v35 = vld [vmem:[%s6238_s5 + $0x50] sm:$0xff]  ;;  %v6324_v51 = vmov 0 }
   0xf   : > { %s3492_s27 = sshll.u32 %s6548_s26, 3  ;;  %s4009_s13 = smov 1   ;;  %6321 = vst [vmem:[#allocation2_spill] sm:$0xff] %v4084_v4  ;;  %v285_v5 = vadd.s32 128, %v4084_v4  ;;  %v4090_v7 = vand.u32 15, %v4084_v4  ;;  %vm6246_vm0 = vcmp.lt.s32.totalorder %v4084_v4, 124  ;;  %583 = vmatpush.msra.mxu3 %v4116_v14 }
  0x10   : > { %s274_s30 = scalar_lea.vmem %s6233_s0, %s3492_s27  ;;  %s4010_s14 = smov 3   ;;  %564 = vmatpush.msra.mxu2 %v4122_v15  ;;  %vm6276_vm4 = vcmp.lt.s32.totalorder %v4084_v4, 127  ;;  %vm6242_vm5 = vcmp.lt.s32.totalorder %v4084_v4, 125  ;;  %vm6241_vm6 = vcmp.lt.s32.totalorder %v4084_v4, 126  ;;  %vm6243_vm7 = vcmp.lt.s32.totalorder %v4084_v4, 2  ;;  %v4185_v36 = vld [vmem:[%s6238_s5 + $0xd0] sm:$0xff] }
  0x11   : > { %v4070_v0 = vld [vmem:[%s274_s30] sm:$0xff]  ;;  %v4072_v1 = vld [vmem:[%s274_s30 + $0x8] sm:$0xff]  ;;  %s4011_s15 = smov 4   ;;  %6322 = vst [vmem:[#allocation3_spill] sm:$0xff] %v4090_v7  ;;  %v4092_v8 = vand.u32 15, %v285_v5  ;;  %vm6245_vm1 = vcmp.lt.s32.totalorder %v4090_v7, 12  ;;  %584 = vmatpush.msra.mxu3 %v4131_v18 }
  0x12   : > { %v3693_v2 = vpack.i.bf16 %v4072_v1, %v4070_v0  ;;  %565 = vmatpush.msra.mxu2 %v4139_v21  ;;  %vm416_vm8 = vcmp.lt.s32.totalorder %v4090_v7, 14  ;;  %vm435_vm9 = vcmp.lt.s32.totalorder %v4090_v7, 13  ;;  %vm6251_vm12 = vcmp.lt.s32.totalorder %v4090_v7, 15  ;;  %v4198_v42 = vld [vmem:[%s6238_s5 + $0x48] sm:$0xff]  ;;  %v4222_v53 = vld [vmem:[%s6238_s5 + $0x40] sm:$0xff]  ;;  %v4252_v62 = vld [vmem:[%s6238_s5 + $0x38] sm:$0xff] }
  0x13   : > { %6323 = vst [vmem:[#allocation4_spill] sm:$0xff] %v4092_v8  ;;  %vm6244_vm2 = vcmp.lt.s32.totalorder %v4092_v8, 12  ;;  %585 = vmatpush.msra.mxu3 %v4145_v22  ;;  %vm417_vm10 = vcmp.lt.s32.totalorder %v4092_v8, 14  ;;  %vm436_vm11 = vcmp.lt.s32.totalorder %v4092_v8, 13  ;;  %v4205_v47 = vld [vmem:[%s6238_s5 + $0xc8] sm:$0xff]  ;;  %vm4213_vm13 = vmpackc.low %vm435_vm9, %vm416_vm8  ;;  %v6327_v56 = vmov 0 }
  0x14   : > { %3694 = vrot.lane.b32.xlu0 %v3693_v2, %s4004_s8  ;;  %3704 = vrot.lane.b32.xlu1 %v3693_v2, %s4005_s9  ;;  %v6325_v51 = vsel %vm4213_vm13, 4294967295, %v6324_v51  ;;  %vm4232_vm14 = vmpackc.low %vm436_vm11, %vm417_vm10  ;;  %vm6249_vm15 = vcmp.lt.s32.totalorder %v4084_v4, 1  ;;  %vm6250_vm8 = vcmp.lt.s32.totalorder %v4092_v8, 15  ;;  %v4247_v61 = vld [vmem:[%s6238_s5 + $0xc0] sm:$0xff]  ;;  %vm6247_vm9 = vmmov 1  }
  0x15   : > { %3714 = vrot.lane.b32.xlu2 %v3693_v2, %s4006_s10  ;;  %566 = vmatpush.msra.mxu2 %v4155_v25  ;;  %6326 = vst [vmem:[#allocation5_spill] sm:$0xff] %v6325_v51  ;;  %v6328_v56 = vsel %vm4232_vm14, 4294967295, %v6327_v56  ;;  %vm4264_vm10 = vmpackc.low %vm6251_vm12, %vm6247_vm9  ;;  %v6333_v12 = vmov 0 }
  0x16   : > { %586 = vmatpush.msra.mxu3 %v4167_v28  ;;  %6329 = vst [vmem:[#allocation6_spill] sm:$0xff] %v6328_v56  ;;  %vm4280_vm11 = vmpackc.low %vm6250_vm8, %vm6247_vm9  ;;  %vm338_vm8 = vcmp.ge.s32.totalorder %v4090_v7, 3 }
  0x17   : > { %567 = vmatpush.msra.mxu2 %v4180_v35  ;;  %v6334_v12 = vsel %vm4280_vm11, 4294967295, %v6333_v12 }
  0x18   : > { %587 = vmatpush.msra.mxu3 %v4185_v36  ;;  %6335 = vst [vmem:[#allocation8_spill] sm:$0xff] %v6334_v12 }
  0x19   : > { %568 = vmatpush.msra.mxu2 %v4198_v42 }
  0x1a   : > { %588 = vmatpush.msra.mxu3 %v4205_v47 }
  0x1b   : > { %569 = vmatpush.msra.mxu2 %v4222_v53 }
  0x1c   : > { %3699 = vrot.lane.b32.xlu0 %v3693_v2, %s4007_s11  ;;  %3709 = vrot.lane.b32.xlu1 %v3693_v2, %s4008_s12 }
  0x1d   : > { %3719 = vrot.lane.b32.xlu2 %v3693_v2, %s4009_s13  ;;  %589 = vmatpush.msra.mxu3 %v4247_v61 }
  0x1e   : > { %570 = vmatpush.msra.mxu2 %v4252_v62 }
  0x24   : > { %3729 = vrot.lane.b32.xlu1 %v3693_v2, %s4010_s14  ;;  %3724 = vrot.lane.b32.xlu0 %v3693_v2, %s4011_s15  ;;  %v6330_v2 = vmov 0 }
  0x25   : > { %478 = vperm.xlu2 %3733, %v475_v9   ;;  %v6331_v2 = vsel %vm4264_vm10, 4294967295, %v6330_v2  ;;  %v4275_v9 = vld [vmem:[%s6238_s5 + $0xb8] sm:$0xff] }
  0x26   : > { %6332 = vst [vmem:[#allocation7_spill] sm:$0xff] %v6331_v2  ;;  %590 = vmatpush.msra.mxu3 %v4275_v9 }
  0x6f   : > { %v4087_v6 = vpop.permute.xlu2 %3714 }
  0x70   : > { %v3717_v29 = vunpack.i.h.bf16 %v4087_v6  ;;  %v3716_v32 = vunpack.i.l.bf16 %v4087_v6 }
  0x72   : > { %v356_v63 = vsel %vm6243_vm7, %v3717_v29, %v3716_v32  ;;  %v355_v6 = vsel %vm6243_vm7, %v3716_v32, %v3717_v29  ;;  %vm358_vm7 = vcmp.ge.s32.totalorder %v4092_v8, 2 }
  0x77   : > { %v3720_v37 = vpop.permute.xlu2 %3719 }
  0x78   : > { %v3722_v48 = vunpack.i.h.bf16 %v3720_v37  ;;  %v3721_v49 = vunpack.i.l.bf16 %v3720_v37  ;;  %v6342_v37 = vmov 0 }
  0x86   : > { %v3695_v16 = vpop.permute.xlu0 %3694  ;;  %v4124_v17 = vpop.permute.xlu1 %3704 }
  0x87   : > { %v3697_v19 = vunpack.i.h.bf16 %v3695_v16  ;;  %v3696_v20 = vunpack.i.l.bf16 %v3695_v16  ;;  %v3707_v33 = vunpack.i.h.bf16 %v4124_v17  ;;  %v3706_v34 = vunpack.i.l.bf16 %v4124_v17 }
  0x88   : > { %v374_v17 = vsel %vm6249_vm15, %v3721_v49, %v3722_v48 }
  0x89   : > { %v450_v23 = vsel %vm6246_vm0, %v3696_v20, %v3697_v19  ;;  %v451_v24 = vsel %vm6246_vm0, %v3697_v19, %v3696_v20  ;;  %v431_v50 = vsel %vm6242_vm5, %v3706_v34, %v3707_v33  ;;  %v432_v52 = vsel %vm6242_vm5, %v3707_v33, %v3706_v34 }
  0x8a   : > { %v462_v26 = vsel %vm6245_vm1, %v450_v23, 0.0  ;;  %v463_v27 = vsel %vm6244_vm2, %v451_v24, 0.0  ;;  %vm6259_vm5 = vcmp.ge.s32.totalorder %v4090_v7, 1  ;;  %vm6252_vm2 = vcmp.ge.s32.totalorder %v4092_v8, 1 }
  0x8b   : > { %v472_v30 = vpack.c.bf16 %v462_v26, %v462_v26  ;;  %v473_v31 = vpack.c.bf16 %v463_v27, %v463_v27  ;;  %vm6253_vm1 = vcmp.lt.s32.totalorder %v4084_v4, 4  ;;  %vm6256_vm0 = vcmp.lt.s32.totalorder %v4084_v4, 3  ;;  %vm4315_vm12 = vmpackc.low %vm6252_vm2, %vm358_vm7 }
  0x8c   : > { %v6336_v26 = vmov 0  ;;  %v6339_v27 = vmov 0  ;;  %v3515_v34 = vpack.c.bf16 %v374_v17, %v355_v6  ;;  %vm339_vm7 = vcmp.ge.s32.totalorder %v4092_v8, 3 }
  0x8d   : > { %v487_v38 = vsel %vm6275_vm3, %v472_v30, 0  ;;  %v490_v39 = vsel %vm6275_vm3, %v473_v31, 0  ;;  %v6340_v27 = vsel %vm4315_vm12, 4294967295, %v6339_v27 }
  0x8e   : > { %v3700_v40 = vpop.permute.xlu0 %3699  ;;  %495 = vmatpush.bf16.msra.mxu0 %v487_v38  ;;  %508 = vmatpush.bf16.msra.mxu1 %v490_v39  ;;  %v3710_v41 = vpop.permute.xlu1 %3709  ;;  %6341 = vst [vmem:[#allocation10_spill] sm:$0xff] %v6340_v27 }
  0x8f   : > { %v3702_v43 = vunpack.i.h.bf16 %v3700_v40  ;;  %v3701_v44 = vunpack.i.l.bf16 %v3700_v40  ;;  %v3712_v45 = vunpack.i.h.bf16 %v3710_v41  ;;  %v3711_v46 = vunpack.i.l.bf16 %v3710_v41  ;;  %v474_v41 = vld [vmem:[%s6234_s1] sm:$0xf] }
  0x90   : > { %v6345_v40 = vmov 0 }
  0x91   : > { %v412_v54 = vsel %vm6241_vm6, %v3701_v44, %v3702_v43  ;;  %v413_v55 = vsel %vm6241_vm6, %v3702_v43, %v3701_v44  ;;  %v393_v57 = vsel %vm6276_vm4, %v3711_v46, %v3712_v45  ;;  %v394_v58 = vsel %vm6276_vm4, %v3712_v45, %v3711_v46  ;;  %v4353_v43 = vld [vmem:[%s6238_s5 + $0x30] sm:$0xff]  ;;  %v4365_v45 = vld [vmem:[%s6238_s5 + $0x28] sm:$0xff] }
  0x92   : > { %v3496_v59 = vpack.c.bf16 %v431_v50, %v412_v54  ;;  %v3509_v60 = vpack.c.bf16 %v432_v52, %v413_v55  ;;  %v3499_v3 = vpack.c.bf16 %v393_v57, %v4070_v0  ;;  %v3512_v5 = vpack.c.bf16 %v394_v58, %v4072_v1  ;;  %v4358_v44 = vld [vmem:[%s6238_s5 + $0xb0] sm:$0xff]  ;;  %571 = vmatpush.msra.mxu2 %v4353_v43  ;;  %v4370_v46 = vld [vmem:[%s6238_s5 + $0xa8] sm:$0xff]  ;;  %v4389_v50 = vld [vmem:[%s6238_s5 + $0x18] sm:$0xff] }
  0x93   : > { %vm357_vm6 = vcmp.ge.s32.totalorder %v4090_v7, 2  ;;  %v375_v0 = vsel %vm6249_vm15, %v3722_v48, %v3721_v49  ;;  %vm319_vm15 = vcmp.ge.s32.totalorder %v4090_v7, 4  ;;  %591 = vmatpush.msra.mxu3 %v4358_v44  ;;  %v4375_v48 = vld [vmem:[%s6238_s5 + $0x20] sm:$0xff]  ;;  %v4394_v52 = vld [vmem:[%s6238_s5 + $0x98] sm:$0xff]  ;;  %v4401_v54 = vld [vmem:[%s6238_s5 + $0x10] sm:$0xff] }
  0x94   : > { %3497 = vmatpush.bf16.msk.msra.mxu0 %vm4213_vm13, %v3496_v59  ;;  %3510 = vmatpush.bf16.msk.msra.mxu1 %vm4232_vm14, %v3509_v60  ;;  %vm4305_vm9 = vmpackc.low %vm6259_vm5, %vm357_vm6  ;;  %v3502_v33 = vpack.c.bf16 %v375_v0, %v356_v63  ;;  %vm320_vm6 = vcmp.ge.s32.totalorder %v4092_v8, 4  ;;  %v4382_v49 = vld [vmem:[%s6238_s5 + $0xa0] sm:$0xff]  ;;  %v4406_v55 = vld [vmem:[%s6238_s5 + $0x90] sm:$0xff] }
  0x95   : > { %v6337_v26 = vsel %vm4305_vm9, 4294967295, %v6336_v26  ;;  %vm4333_vm2 = vmpackc.low %vm338_vm8, %vm319_vm15  ;;  %vm6255_vm15 = vcmask 588800   ;;  %572 = vmatpush.msra.mxu2 %v4365_v45  ;;  %592 = vmatpush.msra.mxu3 %v4370_v46  ;;  %v4411_v57 = vld [vmem:[%s6238_s5 + $0x8] sm:$0xff]  ;;  %v4423_v59 = vld [vmem:[%s6238_s5] sm:$0xff]  ;;  %vm6257_vm8 = vcmask 130048  }
  0x96   : > { %v3730_v1 = vpop.permute.xlu1 %3729  ;;  %v3725_v16 = vpop.permute.xlu0 %3724  ;;  %6338 = vst [vmem:[#allocation9_spill] sm:$0xff] %v6337_v26  ;;  %v6343_v37 = vsel %vm4333_vm2, 4294967295, %v6342_v37  ;;  %v4416_v58 = vld [vmem:[%s6238_s5 + $0x88] sm:$0xff]  ;;  %v4428_v60 = vld [vmem:[%s6238_s5 + $0x80] sm:$0xff]  ;;  %v4437_v63 = vld [vmem:[%s6239_s6 + $0x10] sm:$0xff] }
  0x97   : > { %v3732_v19 = vunpack.i.h.bf16 %v3730_v1  ;;  %v3731_v20 = vunpack.i.l.bf16 %v3730_v1  ;;  %v3727_v23 = vunpack.i.h.bf16 %v3725_v16  ;;  %v3726_v24 = vunpack.i.l.bf16 %v3725_v16  ;;  %6344 = vst [vmem:[#allocation11_spill] sm:$0xff] %v6343_v37  ;;  %573 = vmatpush.msra.mxu2 %v4375_v48  ;;  %593 = vmatpush.msra.mxu3 %v4382_v49 }
  0x98   : > { %3500 = vmatpush.bf16.msk.msra.mxu0 %vm4264_vm10, %v3499_v3  ;;  %3513 = vmatpush.bf16.msk.msra.mxu1 %vm4280_vm11, %v3512_v5  ;;  %6348 = vst [vmem:[#allocation13_spill] sm:$0xff] %v4411_v57  ;;  %v4442_v3 = vld [vmem:[%s6239_s6 + $0x18] sm:$0xff]  ;;  %v479_v5 = vpop.permute.xlu2 %478 }
  0x99   : > { %v318_v29 = vsel %vm6253_vm1, %v3727_v23, %v3726_v24  ;;  %v337_v30 = vsel %vm6256_vm0, %v3732_v19, %v3731_v20  ;;  %v317_v31 = vsel %vm6253_vm1, %v3726_v24, %v3727_v23  ;;  %v336_v32 = vsel %vm6256_vm0, %v3731_v20, %v3732_v19  ;;  %vm4337_vm1 = vmpackc.low %vm339_vm7, %vm320_vm6  ;;  %574 = vmatpush.msra.mxu2 %v4389_v50 }
  0x9a   : > { %v3505_v38 = vpack.c.bf16 %v337_v30, %v318_v29  ;;  %v3518_v39 = vpack.c.bf16 %v336_v32, %v317_v31  ;;  %v6346_v40 = vsel %vm4337_vm1, 4294967295, %v6345_v40  ;;  %594 = vmatpush.msra.mxu3 %v4394_v52  ;;  %6349 = vst [vmem:[#allocation14_spill] sm:$0xff] %v4416_v58 }
  0x9b   : > { %6347 = vst [vmem:[#allocation12_spill] sm:$0xff] %v6346_v40  ;;  %575 = vmatpush.msra.mxu2 %v4401_v54 }
  0x9c   : > { %3503 = vmatpush.bf16.msk.msra.mxu0 %vm4305_vm9, %v3502_v33  ;;  %3516 = vmatpush.bf16.msk.msra.mxu1 %vm4315_vm12, %v3515_v34  ;;  %6350 = vst [vmem:[#allocation15_spill] sm:$0xff] %v4423_v59  ;;  %vm6402_vm12 = vcmp.ge.s32.totalorder %v4092_v8, 1 }
  0x9d   : > { %595 = vmatpush.msra.mxu3 %v4406_v55  ;;  %6351 = vst [vmem:[#allocation16_spill] sm:$0xff] %v4428_v60  ;;  %576 = vmatpush.msra.mxu2 %v4411_v57  ;;  %vm5000_vm9 = vmpackc.low %vm6402_vm12, %vm6402_vm12  ;;  %vm6414_vm12 = vcmask 130048  }
  0x9f   : > { %596 = vmatpush.msra.mxu3 %v4416_v58  ;;  %577 = vmatpush.msra.mxu2 %v4423_v59 }
  0xa0   : > { %3506 = vmatpush.bf16.msk.msra.mxu0 %vm4333_vm2, %v3505_v38  ;;  %3519 = vmatpush.bf16.msk.msra.mxu1 %vm4337_vm1, %v3518_v39  ;;  %vm6390_vm1 = vcmp.lt.s32.totalorder %v4092_v8, 15 }
  0xa1   : > { %597 = vmatpush.msra.mxu3 %v4428_v60  ;;  %670 = vmatpush.msrb.mxu2 %v4100_v10  ;;  %vm4974_vm2 = vmpackc.low %vm6390_vm1, %vm6390_vm1  ;;  %vm6394_vm1 = vcmp.ge.s32.totalorder %v4090_v7, 1 }
  0xa3   : > { %3507 = vmatmul.msk.bf16.vlgmr.msra.gmra.mxu0 %vm6255_vm15, %v474_v41  ;;  %3520 = vmatmul.msk.bf16.vlgmr.msra.gmra.mxu1 %vm6255_vm15, %v474_v41 }
  0xa4   : > { %690 = vmatpush.msrb.mxu3 %v4105_v11  ;;  %624 = vmatpush.msrb.mxu0 %v4437_v63 }
  0xa5   : > { %644 = vmatpush.msrb.mxu1 %v4442_v3  ;;  %671 = vmatpush.msrb.mxu2 %v4111_v13 }
  0xa6   : > { %691 = vmatpush.msrb.mxu3 %v4116_v14 }
  0xa7   : > { %672 = vmatpush.msrb.mxu2 %v4122_v15 }
  0xa8   : > { %692 = vmatpush.msrb.mxu3 %v4131_v18 }
  0xa9   : > { %673 = vmatpush.msrb.mxu2 %v4139_v21 }
  0xaa   : > { %693 = vmatpush.msrb.mxu3 %v4145_v22 }
  0xab   : > { %674 = vmatpush.msrb.mxu2 %v4155_v25 }
  0xac   : > { %694 = vmatpush.msrb.mxu3 %v4167_v28 }
  0xad   : > { %675 = vmatpush.msrb.mxu2 %v4180_v35 }
  0xae   : > { %695 = vmatpush.msrb.mxu3 %v4185_v36 }
  0xaf   : > { %676 = vmatpush.msrb.mxu2 %v4198_v42 }
  0xb0   : > { %696 = vmatpush.msrb.mxu3 %v4205_v47 }
  0xb1   : > { %677 = vmatpush.msrb.mxu2 %v4222_v53 }
  0xb2   : > { %697 = vmatpush.msrb.mxu3 %v4247_v61 }
  0xb3   : > { %678 = vmatpush.msrb.mxu2 %v4252_v62 }
  0xb4   : > { %698 = vmatpush.msrb.mxu3 %v4275_v9 }
  0xb5   : > { %679 = vmatpush.msrb.mxu2 %v4353_v43 }
  0xb6   : > { %699 = vmatpush.msrb.mxu3 %v4358_v44 }
  0xb7   : > { %680 = vmatpush.msrb.mxu2 %v4365_v45 }
  0xb8   : > { %700 = vmatpush.msrb.mxu3 %v4370_v46 }
  0xb9   : > { %681 = vmatpush.msrb.mxu2 %v4375_v48 }
  0xba   : > { %701 = vmatpush.msrb.mxu3 %v4382_v49 }
  0xbb   : > { %682 = vmatpush.msrb.mxu2 %v4389_v50 }
  0xbc   : > { %702 = vmatpush.msrb.mxu3 %v4394_v52 }
  0xbd   : > { %683 = vmatpush.msrb.mxu2 %v4401_v54 }
  0xbe   : > { %703 = vmatpush.msrb.mxu3 %v4406_v55 }
  0xbf   : > { %684 = vmatpush.msrb.mxu2 %v4411_v57 }
  0xc0   : > { %704 = vmatpush.msrb.mxu3 %v4416_v58 }
  0xc1   : > { %685 = vmatpush.msrb.mxu2 %v4423_v59 }
  0xc2   : > { %705 = vmatpush.msrb.mxu3 %v4428_v60 }
 0x120   : > { %v501_v6 = vpop.f32.mrf.mxu0  ;;  %v514_v0 = vpop.f32.mrf.mxu1 }
 0x121   : > { %v502_v1 = vadd.f32 %v501_v6, %v479_v5  ;;  %v515_v16 = vadd.f32 %v514_v0, %v479_v5  ;;  %v4483_v5 = vld [vmem:[%s6239_s6] sm:$0xff]  ;;  %v4488_v6 = vld [vmem:[%s6239_s6 + $0x8] sm:$0xff] }
 0x122   : > { %625 = vmatpush.msrb.mxu0 %v4483_v5  ;;  %645 = vmatpush.msrb.mxu1 %v4488_v6 }
 0x123   : > { %v518_v17 = vrot.slane %v502_v1, 4  ;;  %v524_v19 = vrot.slane %v515_v16, 4 }
 0x124   : > { %727 = vmatpush.msra.mxu0 %v4437_v63  ;;  %747 = vmatpush.msra.mxu1 %v4442_v3 }
 0x125   : > { %v519_v20 = vadd.f32 %v518_v17, %v502_v1  ;;  %v525_v23 = vadd.f32 %v524_v19, %v515_v16 }
 0x126   : > { %728 = vmatpush.msra.mxu0 %v4483_v5  ;;  %748 = vmatpush.msra.mxu1 %v4488_v6 }
 0x127   : > { %v520_v24 = vrot.slane %v519_v20, 2  ;;  %v526_v29 = vrot.slane %v525_v23, 2 }
 0x128   : > { %v503_v30 = vpop.f32.mrf.mxu0  ;;  %v516_v31 = vpop.f32.mrf.mxu1 }
 0x129   : > { %v521_v32 = vadd.f32 %v520_v24, %v519_v20  ;;  %v527_v33 = vadd.f32 %v526_v29, %v525_v23 }
 0x12b   : > { %v522_v34 = vrot.slane %v521_v32, 1  ;;  %v528_v38 = vrot.slane %v527_v33, 1 }
 0x12d   : > { %v523_v39 = vadd.f32 %v522_v34, %v521_v32  ;;  %v529_v41 = vadd.f32 %v528_v38, %v527_v33 }
 0x12f   : > { %578 = vmatmul.f32.vlgmr.msra.gmra.mxu2 %v523_v39  ;;  %598 = vmatmul.f32.vlgmr.msra.gmra.mxu3 %v529_v41 }
 0x130   : > { %921 = vmatpush.msra.mxu2 %v4437_v63  ;;  %941 = vmatpush.msra.mxu3 %v4442_v3 }
 0x132   : > { %922 = vmatpush.msra.mxu2 %v4483_v5  ;;  %942 = vmatpush.msra.mxu3 %v4488_v6 }
 0x1b2   : > { %v579_v0 = vpop.f32.mrf.mxu2  ;;  %v599_v17 = vpop.f32.mrf.mxu3 }
 0x1b3   : > { %v600_v19 = vadd.f32 %v599_v17, %v579_v0 }
 0x1b5   : > { %3521 = vmatmul.msk.f32.vlgmr.msrb.gmra.mxu0 %vm6257_vm8, %v600_v19  ;;  %3522 = vmatmul.msk.f32.vlgmr.msrb.gmra.mxu1 %vm6257_vm8, %v600_v19 }
 0x232   : > { %v627_v20 = vpop.f32.mrf.mxu0  ;;  %v647_v23 = vpop.f32.mrf.mxu1 }
 0x233   : > { %v650_v24 = vmul.f32 0.0078125, %v627_v20  ;;  %v651_v29 = vmul.f32 0.0078125, %v647_v23 }
 0x235   : > { %v652_v30 = vperm.slane %v650_v24, 0  ;;  %v653_v31 = vperm.slane %v651_v29, 0 }
 0x237   : > { %v4500_v32 = vsub.f32 %v502_v1, %v652_v30  ;;  %v4502_v33 = vsub.f32 %v515_v16, %v653_v31 }
 0x239   : > { %v656_v34 = vmul.f32 %v4500_v32, %v4500_v32  ;;  %v657_v38 = vmul.f32 %v4502_v33, %v4502_v33 }
 0x23b   : > { %v658_v39 = vrot.slane %v656_v34, 4  ;;  %v664_v41 = vrot.slane %v657_v38, 4 }
 0x23d   : > { %v659_v0 = vadd.f32 %v658_v39, %v656_v34  ;;  %v665_v17 = vadd.f32 %v664_v41, %v657_v38  ;;  %v796_v34 = vld [vmem:[%s6235_s2 + $0x10] sm:$0xff] }
 0x23e   : > { %804 = vperm.xlu1 %3735, %v796_v34  }
 0x23f   : > { %v660_v19 = vrot.slane %v659_v0, 2  ;;  %v666_v40 = vrot.slane %v665_v17, 2 }
 0x241   : > { %v661_v20 = vadd.f32 %v660_v19, %v659_v0  ;;  %v667_v23 = vadd.f32 %v666_v40, %v665_v17 }
 0x243   : > { %v662_v24 = vrot.slane %v661_v20, 1  ;;  %v668_v29 = vrot.slane %v667_v23, 1 }
 0x245   : > { %v663_v1 = vadd.f32 %v662_v24, %v661_v20  ;;  %v669_v30 = vadd.f32 %v668_v29, %v667_v23  ;;  %v795_v29 = vld [vmem:[%s6235_s2 + $0x8] sm:$0xff] }
 0x246   : > { %799 = vperm.xlu0 %3734, %v795_v29  }
 0x247   : > { %686 = vmatmul.f32.vlgmr.msrb.gmra.mxu2 %v663_v1  ;;  %706 = vmatmul.f32.vlgmr.msrb.gmra.mxu3 %v669_v30 }
 0x248   : > { %973 = vmatpush.msrb.mxu2 %v4100_v10  ;;  %993 = vmatpush.msrb.mxu3 %v4105_v11 }
 0x24a   : > { %974 = vmatpush.msrb.mxu2 %v4111_v13  ;;  %994 = vmatpush.msrb.mxu3 %v4116_v14 }
 0x24c   : > { %975 = vmatpush.msrb.mxu2 %v4122_v15  ;;  %995 = vmatpush.msrb.mxu3 %v4131_v18 }
 0x24e   : > { %976 = vmatpush.msrb.mxu2 %v4139_v21  ;;  %996 = vmatpush.msrb.mxu3 %v4145_v22 }
 0x250   : > { %977 = vmatpush.msrb.mxu2 %v4155_v25  ;;  %997 = vmatpush.msrb.mxu3 %v4167_v28 }
 0x252   : > { %978 = vmatpush.msrb.mxu2 %v4180_v35  ;;  %998 = vmatpush.msrb.mxu3 %v4185_v36 }
 0x254   : > { %979 = vmatpush.msrb.mxu2 %v4198_v42  ;;  %999 = vmatpush.msrb.mxu3 %v4205_v47 }
 0x256   : > { %980 = vmatpush.msrb.mxu2 %v4222_v53  ;;  %1000 = vmatpush.msrb.mxu3 %v4247_v61 }
 0x258   : > { %981 = vmatpush.msrb.mxu2 %v4252_v62  ;;  %1001 = vmatpush.msrb.mxu3 %v4275_v9 }
 0x25a   : > { %982 = vmatpush.msrb.mxu2 %v4353_v43  ;;  %1002 = vmatpush.msrb.mxu3 %v4358_v44 }
 0x25c   : > { %983 = vmatpush.msrb.mxu2 %v4365_v45  ;;  %1003 = vmatpush.msrb.mxu3 %v4370_v46 }
 0x25e   : > { %984 = vmatpush.msrb.mxu2 %v4375_v48  ;;  %1004 = vmatpush.msrb.mxu3 %v4382_v49 }
 0x260   : > { %985 = vmatpush.msrb.mxu2 %v4389_v50  ;;  %1005 = vmatpush.msrb.mxu3 %v4394_v52 }
 0x262   : > { %986 = vmatpush.msrb.mxu2 %v4401_v54  ;;  %1006 = vmatpush.msrb.mxu3 %v4406_v55 }
 0x264   : > { %987 = vmatpush.msrb.mxu2 %v4411_v57  ;;  %1007 = vmatpush.msrb.mxu3 %v4416_v58 }
 0x266   : > { %988 = vmatpush.msrb.mxu2 %v4423_v59  ;;  %1008 = vmatpush.msrb.mxu3 %v4428_v60 }
 0x2ca   : > { %v687_v40 = vpop.f32.mrf.mxu2  ;;  %v707_v16 = vpop.f32.mrf.mxu3 }
 0x2cb   : > { %v708_v31 = vadd.f32 %v707_v16, %v687_v40 }
 0x2cd   : > { %3523 = vmatmul.msk.f32.vlgmr.msra.gmra.mxu0 %vm6257_vm8, %v708_v31  ;;  %3524 = vmatmul.msk.f32.vlgmr.msra.gmra.mxu1 %vm6257_vm8, %v708_v31 }
 0x34a   : > { %v730_v38 = vpop.f32.mrf.mxu0  ;;  %v750_v39 = vpop.f32.mrf.mxu1 }
 0x34b   : > { %v753_v41 = vmul.f32 0.0078125, %v730_v38  ;;  %v754_v0 = vmul.f32 0.0078125, %v750_v39  ;;  %v1125_v38 = vld [vmem:[%s6235_s2 + $0x20] sm:$0xff] }
 0x34c   : > { %1133 = vperm.xlu0 %3734, %v1125_v38  }
 0x34d   : > { %v755_v17 = vadd.f32 1e-05, %v753_v41  ;;  %v756_v19 = vadd.f32 1e-05, %v754_v0 }
 0x34f   : > { %3866 = vrsqrt.f32 %v755_v17  ;;  %vm763_vm15 = vweird.f32 %v755_v17  ;;  %vm773_vm8 = vweird.f32 %v756_v19 }
 0x350   : > { %3868 = vrsqrt.f32 %v756_v19 }
 0x355   : > { %v3867_v20 = vpop.eup %3866 }
 0x356   : > { %v3869_v23 = vpop.eup %3868  ;;  %v758_v24 = vmul.f32 %v3867_v20, %v755_v17  ;;  %vm764_vm6 = vweird.f32 %v3867_v20 }
 0x357   : > { %v768_v1 = vmul.f32 %v3869_v23, %v756_v19  ;;  %vm774_vm7 = vweird.f32 %v3869_v23  ;;  %vm765_vm0 = vmor %vm763_vm15, %vm764_vm6  ;;  %v785_v19 = vld [vmem:[%s6237_s4] sm:$0xff]  ;;  %vm6353_vm15 = vcmp.lt.s32.totalorder %v4092_v8, 15 }
 0x358   : > { %v759_v30 = vmul.f32 %v3867_v20, %v758_v24  ;;  %vm775_vm5 = vmor %vm773_vm8, %vm774_vm7  ;;  %vm6354_vm8 = vcmp.lt.s32.totalorder %v4084_v4, 1  ;;  %vm6356_vm7 = vcmp.ge.s32.totalorder %v4090_v7, 1 }
 0x359   : > { %v769_v40 = vmul.f32 %v3869_v23, %v768_v1  ;;  %v781_v1 = vld [vmem:[%s6236_s3] sm:$0xff]  ;;  %vm6355_vm6 = vmmov %vm6354_vm8 }
 0x35a   : > { %v760_v16 = vmul.f32 0.5, %v759_v30 }
 0x35b   : > { %v770_v31 = vmul.f32 0.5, %v769_v40 }
 0x35c   : > { %v761_v34 = vsub.f32 1.5, %v760_v16  ;;  %v782_v16 = vld [vmem:[%s6236_s3 + $0x8] sm:$0xff] }
 0x35d   : > { %v771_v39 = vsub.f32 1.5, %v770_v31 }
 0x35e   : > { %v762_v41 = vmul.f32 %v3867_v20, %v761_v34 }
 0x35f   : > { %v772_v0 = vmul.f32 %v3869_v23, %v771_v39 }
 0x360   : > { %v766_v37 = vsel %vm765_vm0, %v3867_v20, %v762_v41  ;;  %vm812_vm0 = vcmask 64512  }
 0x361   : > { %v777_v24 = vperm.slane %v766_v37, 0  ;;  %v776_v29 = vsel %vm775_vm5, %v3869_v23, %v772_v0  ;;  %v786_v37 = vld [vmem:[%s6237_s4 + $0x8] sm:$0xff]  ;;  %vm6352_vm5 = vcmp.lt.s32.totalorder %v4090_v7, 15 }
 0x362   : > { %v778_v30 = vperm.slane %v776_v29, 0  ;;  %v3671_v29 = vld [vmem:[%s6234_s1 + $0x4] sm:$0xff] }
 0x363   : > { %v779_v40 = vmul.f32 %v777_v24, %v4500_v32 }
 0x364   : > { %v780_v17 = vmul.f32 %v778_v30, %v4502_v33 }
 0x365   : > { %v783_v20 = vmul.f32 %v781_v1, %v779_v40  ;;  %v1124_v1 = vld [vmem:[%s6235_s2 + $0x18] sm:$0xff] }
 0x366   : > { %v784_v23 = vmul.f32 %v782_v16, %v780_v17  ;;  %v800_v16 = vpop.permute.xlu0 %799 }
 0x367   : > { %v787_v31 = vadd.f32 %v785_v19, %v783_v20  ;;  %v805_v19 = vpop.permute.xlu1 %804 }
 0x368   : > { %v788_v34 = vadd.f32 %v786_v37, %v784_v23 }
 0x369   : > { %v4565_v38 = vmax.f32 %v787_v31, 0.0 }
 0x36a   : > { %v4567_v32 = vmax.f32 %v788_v34, 0.0 }
 0x36b   : > { %v791_v39 = vpack.c.bf16 %v4565_v38, %v4565_v38 }
 0x36c   : > { %v3741_v33 = vpack.i.bf16 %v4567_v32, %v4565_v38  ;;  %v792_v41 = vpack.c.bf16 %v4567_v32, %v4567_v32 }
 0x36d   : > { %v817_v0 = vsel %vm6275_vm3, %v791_v39, 0 }
 0x36e   : > { %3742 = vrot.lane.b32.xlu1 %v3741_v33, %s4009_s13  ;;  %3737 = vrot.lane.b32.xlu2 %v3741_v33, %s4008_s12  ;;  %v820_v24 = vsel %vm6275_vm3, %v792_v41, 0 }
 0x36f   : > { %829 = vmatpush.bf16.msrb.mxu0 %v817_v0  ;;  %843 = vmatpush.bf16.msrb.mxu1 %v820_v24 }
 0x372   : > { %3529 = vmatmul.msk.bf16.vlgmr.msrb.gmra.mxu0 %vm812_vm0, %v3671_v29  ;;  %3530 = vmatmul.msk.bf16.vlgmr.msrb.gmra.mxu1 %vm812_vm0, %v3671_v29  ;;  %vm6357_vm0 = vmmov 1  }
 0x373   : > { %864 = vmatpush.msra.mxu0 %v4100_v10  ;;  %884 = vmatpush.msra.mxu1 %v4105_v11 }
 0x375   : > { %865 = vmatpush.msra.mxu0 %v4111_v13  ;;  %885 = vmatpush.msra.mxu1 %v4116_v14 }
 0x376   : > { %1128 = vperm.xlu2 %3733, %v1124_v1  }
 0x377   : > { %866 = vmatpush.msra.mxu0 %v4122_v15  ;;  %886 = vmatpush.msra.mxu1 %v4131_v18 }
 0x379   : > { %867 = vmatpush.msra.mxu0 %v4139_v21  ;;  %887 = vmatpush.msra.mxu1 %v4145_v22 }
 0x37b   : > { %868 = vmatpush.msra.mxu0 %v4155_v25  ;;  %888 = vmatpush.msra.mxu1 %v4167_v28 }
 0x37d   : > { %869 = vmatpush.msra.mxu0 %v4180_v35  ;;  %889 = vmatpush.msra.mxu1 %v4185_v36 }
 0x37f   : > { %870 = vmatpush.msra.mxu0 %v4198_v42  ;;  %890 = vmatpush.msra.mxu1 %v4205_v47 }
 0x381   : > { %871 = vmatpush.msra.mxu0 %v4222_v53  ;;  %891 = vmatpush.msra.mxu1 %v4247_v61 }
 0x383   : > { %872 = vmatpush.msra.mxu0 %v4252_v62  ;;  %892 = vmatpush.msra.mxu1 %v4275_v9 }
 0x385   : > { %873 = vmatpush.msra.mxu0 %v4353_v43  ;;  %893 = vmatpush.msra.mxu1 %v4358_v44 }
 0x387   : > { %874 = vmatpush.msra.mxu0 %v4365_v45  ;;  %894 = vmatpush.msra.mxu1 %v4370_v46 }
 0x389   : > { %875 = vmatpush.msra.mxu0 %v4375_v48  ;;  %895 = vmatpush.msra.mxu1 %v4382_v49 }
 0x38b   : > { %876 = vmatpush.msra.mxu0 %v4389_v50  ;;  %896 = vmatpush.msra.mxu1 %v4394_v52 }
 0x38d   : > { %877 = vmatpush.msra.mxu0 %v4401_v54  ;;  %897 = vmatpush.msra.mxu1 %v4406_v55 }
 0x38f   : > { %878 = vmatpush.msra.mxu0 %v4411_v57  ;;  %898 = vmatpush.msra.mxu1 %v4416_v58 }
 0x391   : > { %879 = vmatpush.msra.mxu0 %v4423_v59  ;;  %899 = vmatpush.msra.mxu1 %v4428_v60 }
 0x393   : > { %1030 = vmatpush.msrb.mxu0 %v4437_v63  ;;  %1050 = vmatpush.msrb.mxu1 %v4442_v3 }
 0x395   : > { %1031 = vmatpush.msrb.mxu0 %v4483_v5  ;;  %1051 = vmatpush.msrb.mxu1 %v4488_v6 }
 0x3c8   : > { %v3738_v17 = vpop.permute.xlu2 %3737 }
 0x3c9   : > { %v3740_v33 = vunpack.i.h.bf16 %v3738_v17  ;;  %v3739_v41 = vunpack.i.l.bf16 %v3738_v17 }
 0x3cb   : > { %v1114_v27 = vsel %vm6276_vm4, %v3739_v41, %v3740_v33  ;;  %v1115_v26 = vsel %vm6276_vm4, %v3740_v33, %v3739_v41 }
 0x3ef   : > { %v831_v30 = vpop.f32.mrf.mxu0  ;;  %v845_v40 = vpop.f32.mrf.mxu1 }
 0x3f0   : > { %v832_v23 = vadd.f32 %v831_v30, %v800_v16  ;;  %v846_v31 = vadd.f32 %v845_v40, %v800_v16  ;;  %v1116_v30 = vsel %vm6352_vm5, %v1114_v27, 0.0  ;;  %v1117_v40 = vsel %vm6353_vm15, %v1115_v26, 0.0  ;;  %v3743_v16 = vpop.permute.xlu1 %3742  ;;  %vm4638_vm5 = vmpackc.low %vm6357_vm0, %vm6356_vm7 }
 0x3f1   : > { %v3745_v60 = vunpack.i.h.bf16 %v3743_v16  ;;  %v3744_v59 = vunpack.i.l.bf16 %v3743_v16  ;;  %vm6361_vm15 = vcmp.ge.s32.totalorder %v4092_v8, 1 }
 0x3f3   : > { %v1107_v27 = vsel %vm6355_vm6, %v3745_v60, %v3744_v59  ;;  %vm6365_vm6 = vcmask 130048  }
 0x3f4   : > { %vm6366_vm7 = vmmov %vm6365_vm6 }
 0x3f7   : > { %v833_v20 = vpop.f32.mrf.mxu0  ;;  %v847_v37 = vpop.f32.mrf.mxu1 }
 0x3f8   : > { %v834_v34 = vadd.f32 %v833_v20, %v805_v19  ;;  %v848_v39 = vadd.f32 %v847_v37, %v805_v19  ;;  %v1120_v20 = vpack.c.bf16 %v1116_v30, %v1116_v30  ;;  %v1121_v37 = vpack.c.bf16 %v1117_v40, %v1117_v40 }
 0x3fa   : > { %v850_v0 = vadd.f32 %v834_v34, %v832_v23  ;;  %v857_v24 = vadd.f32 %v848_v39, %v846_v31  ;;  %v1146_v26 = vsel %vm6275_vm3, %v1120_v20, 0 }
 0x3fc   : > { %v851_v29 = vrot.slane %v850_v0, 4  ;;  %v858_v1 = vrot.slane %v857_v24, 4 }
 0x3fe   : > { %v852_v12 = vadd.f32 %v851_v29, %v850_v0  ;;  %v859_v2 = vadd.f32 %v858_v1, %v857_v24  ;;  %v1106_v0 = vsel %vm6354_vm8, %v3744_v59, %v3745_v60  ;;  %vm4645_vm8 = vmpackc.low %vm6357_vm0, %vm6361_vm15 }
 0x3ff   : > { %vm6375_vm0 = vmmov %vm6365_vm6 }
 0x400   : > { %v853_v56 = vrot.slane %v852_v12, 2  ;;  %v860_v51 = vrot.slane %v859_v2, 2  ;;  %vm6376_vm15 = vmmov %vm6375_vm0 }
 0x402   : > { %v854_v17 = vadd.f32 %v853_v56, %v852_v12  ;;  %v861_v19 = vadd.f32 %v860_v51, %v859_v2  ;;  %v1149_v51 = vsel %vm6275_vm3, %v1121_v37, 0  ;;  %v6358_v56 = vmov 0 }
 0x403   : > { %v6359_v56 = vsel %vm4638_vm5, 4294967295, %v6358_v56  ;;  %v6362_v2 = vmov 0  ;;  %v3540_v12 = vpack.c.bf16 %v4565_v38, %v1107_v27 }
 0x404   : > { %v855_v58 = vrot.slane %v854_v17, 1  ;;  %v862_v57 = vrot.slane %v861_v19, 1  ;;  %6360 = vst [vmem:[#allocation17_spill] sm:$0xff] %v6359_v56  ;;  %v6363_v2 = vsel %vm4645_vm8, 4294967295, %v6362_v2 }
 0x405   : > { %6364 = vst [vmem:[#allocation18_spill] sm:$0xff] %v6363_v2 }
 0x406   : > { %v856_v33 = vadd.f32 %v855_v58, %v854_v17  ;;  %v863_v41 = vadd.f32 %v862_v57, %v861_v19  ;;  %v3544_v57 = vpack.c.bf16 %v4567_v32, %v1106_v0 }
 0x408   : > { %880 = vmatmul.f32.vlgmr.msra.gmra.mxu0 %v856_v33  ;;  %900 = vmatmul.f32.vlgmr.msra.gmra.mxu1 %v863_v41 }
 0x409   : > { %1157 = vmatpush.bf16.msra.mxu0 %v1146_v26  ;;  %1171 = vmatpush.bf16.msra.mxu1 %v1149_v51 }
 0x40d   : > { %3541 = vmatpush.bf16.msk.msra.mxu0 %vm4638_vm5, %v3540_v12  ;;  %3545 = vmatpush.bf16.msk.msra.mxu1 %vm4645_vm8, %v3544_v57 }
 0x485   : > { %v881_v58 = vpop.f32.mrf.mxu0  ;;  %v901_v59 = vpop.f32.mrf.mxu1 }
 0x486   : > { %v902_v60 = vadd.f32 %v901_v59, %v881_v58 }
 0x488   : > { %3531 = vmatmul.msk.f32.vlgmr.msra.gmra.mxu2 %vm6365_vm6, %v902_v60  ;;  %3532 = vmatmul.msk.f32.vlgmr.msra.gmra.mxu3 %vm6366_vm7, %v902_v60  ;;  %vm6274_vm6 = vcmask 195584   ;;  %vm6379_vm7 = vmmov %vm6375_vm0 }
 0x489   : > { %1250 = vmatpush.msra.mxu2 %v4437_v63  ;;  %1270 = vmatpush.msra.mxu3 %v4442_v3 }
 0x48b   : > { %1251 = vmatpush.msra.mxu2 %v4483_v5  ;;  %1271 = vmatpush.msra.mxu3 %v4488_v6 }
 0x50b   : > { %v924_v38 = vpop.f32.mrf.mxu2  ;;  %v944_v32 = vpop.f32.mrf.mxu3 }
 0x50c   : > { %v947_v24 = vmul.f32 0.00390625, %v924_v38  ;;  %v948_v29 = vmul.f32 0.00390625, %v944_v32  ;;  %v4726_v32 = vld [vmem:[%s6238_s5 + $0x70] sm:$0xff] }
 0x50e   : > { %v949_v1 = vperm.slane %v947_v24, 0  ;;  %v950_v30 = vperm.slane %v948_v29, 0  ;;  %v4732_v24 = vld [vmem:[%s6238_s5 + $0xf0] sm:$0xff] }
 0x50f   : > { %v3672_v29 = vld [vmem:[%s6234_s1 + $0xc] sm:$0xff] }
 0x510   : > { %v4661_v40 = vsub.f32 %v832_v23, %v949_v1  ;;  %v4663_v16 = vsub.f32 %v834_v34, %v949_v1  ;;  %v4665_v17 = vsub.f32 %v846_v31, %v950_v30  ;;  %v4667_v19 = vsub.f32 %v848_v39, %v950_v30  ;;  %v4741_v1 = vld [vmem:[%s6238_s5 + $0x68] sm:$0xff] }
 0x511   : > { %v4747_v30 = vld [vmem:[%s6238_s5 + $0xe8] sm:$0xff] }
 0x512   : > { %6367 = vst [vmem:[#allocation19_spill] sm:$0xff] %v4661_v40  ;;  %v955_v20 = vmul.f32 %v4661_v40, %v4661_v40  ;;  %v957_v37 = vmul.f32 %v4663_v16, %v4663_v16  ;;  %v956_v33 = vmul.f32 %v4665_v17, %v4665_v17  ;;  %v958_v41 = vmul.f32 %v4667_v19, %v4667_v19 }
 0x513   : > { %6368 = vst [vmem:[#allocation20_spill] sm:$0xff] %v4663_v16 }
 0x514   : > { %6369 = vst [vmem:[#allocation21_spill] sm:$0xff] %v4665_v17  ;;  %v959_v23 = vadd.f32 %v957_v37, %v955_v20  ;;  %v966_v0 = vadd.f32 %v958_v41, %v956_v33  ;;  %v4753_v20 = vld [vmem:[%s6238_s5 + $0x60] sm:$0xff]  ;;  %v4767_v33 = vld [vmem:[%s6238_s5 + $0x58] sm:$0xff] }
 0x515   : > { %6370 = vst [vmem:[#allocation22_spill] sm:$0xff] %v4667_v19  ;;  %v4759_v37 = vld [vmem:[%s6238_s5 + $0xe0] sm:$0xff] }
 0x516   : > { %v960_v34 = vrot.slane %v959_v23, 4  ;;  %v967_v27 = vrot.slane %v966_v0, 4 }
 0x518   : > { %v961_v31 = vadd.f32 %v960_v34, %v959_v23  ;;  %v968_v26 = vadd.f32 %v967_v27, %v966_v0 }
 0x51a   : > { %v962_v39 = vrot.slane %v961_v31, 2  ;;  %v969_v51 = vrot.slane %v968_v26, 2 }
 0x51c   : > { %v963_v12 = vadd.f32 %v962_v39, %v961_v31  ;;  %v970_v57 = vadd.f32 %v969_v51, %v968_v26 }
 0x51e   : > { %v964_v58 = vrot.slane %v963_v12, 1  ;;  %v971_v59 = vrot.slane %v970_v57, 1 }
 0x520   : > { %v965_v60 = vadd.f32 %v964_v58, %v963_v12  ;;  %v972_v38 = vadd.f32 %v971_v59, %v970_v57 }
 0x522   : > { %989 = vmatmul.f32.vlgmr.msrb.gmra.mxu2 %v965_v60  ;;  %1009 = vmatmul.f32.vlgmr.msrb.gmra.mxu3 %v972_v38 }
 0x523   : > { %1302 = vmatpush.msrb.mxu2 %v4100_v10  ;;  %1322 = vmatpush.msrb.mxu3 %v4105_v11  ;;  %v6371_v10 = vld [vmem:[#allocation13_spill] sm:$0xff]  ;;  %v6372_v11 = vld [vmem:[#allocation14_spill] sm:$0xff] }
 0x525   : > { %1303 = vmatpush.msrb.mxu2 %v4111_v13  ;;  %1323 = vmatpush.msrb.mxu3 %v4116_v14  ;;  %v6373_v13 = vld [vmem:[#allocation15_spill] sm:$0xff]  ;;  %v6374_v14 = vld [vmem:[#allocation16_spill] sm:$0xff] }
 0x527   : > { %1304 = vmatpush.msrb.mxu2 %v4122_v15  ;;  %1324 = vmatpush.msrb.mxu3 %v4131_v18 }
 0x529   : > { %1305 = vmatpush.msrb.mxu2 %v4139_v21  ;;  %1325 = vmatpush.msrb.mxu3 %v4145_v22  ;;  %v4714_v22 = vld [vmem:[%s6238_s5 + $0x78] sm:$0xff] }
 0x52b   : > { %1306 = vmatpush.msrb.mxu2 %v4155_v25  ;;  %1326 = vmatpush.msrb.mxu3 %v4167_v28  ;;  %v4720_v25 = vld [vmem:[%s6238_s5 + $0xf8] sm:$0xff] }
 0x52d   : > { %1307 = vmatpush.msrb.mxu2 %v4180_v35  ;;  %1327 = vmatpush.msrb.mxu3 %v4185_v36 }
 0x52f   : > { %1308 = vmatpush.msrb.mxu2 %v4198_v42  ;;  %1328 = vmatpush.msrb.mxu3 %v4205_v47 }
 0x531   : > { %1309 = vmatpush.msrb.mxu2 %v4222_v53  ;;  %1329 = vmatpush.msrb.mxu3 %v4247_v61 }
 0x533   : > { %1310 = vmatpush.msrb.mxu2 %v4252_v62  ;;  %1330 = vmatpush.msrb.mxu3 %v4275_v9 }
 0x535   : > { %1311 = vmatpush.msrb.mxu2 %v4353_v43  ;;  %1331 = vmatpush.msrb.mxu3 %v4358_v44 }
 0x537   : > { %1312 = vmatpush.msrb.mxu2 %v4365_v45  ;;  %1332 = vmatpush.msrb.mxu3 %v4370_v46 }
 0x539   : > { %1313 = vmatpush.msrb.mxu2 %v4375_v48  ;;  %1333 = vmatpush.msrb.mxu3 %v4382_v49 }
 0x53b   : > { %1314 = vmatpush.msrb.mxu2 %v4389_v50  ;;  %1334 = vmatpush.msrb.mxu3 %v4394_v52 }
 0x53d   : > { %1315 = vmatpush.msrb.mxu2 %v4401_v54  ;;  %1335 = vmatpush.msrb.mxu3 %v4406_v55 }
 0x53f   : > { %1316 = vmatpush.msrb.mxu2 %v6371_v10  ;;  %1336 = vmatpush.msrb.mxu3 %v6372_v11 }
 0x541   : > { %1317 = vmatpush.msrb.mxu2 %v6373_v13  ;;  %1337 = vmatpush.msrb.mxu3 %v6374_v14 }
 0x5a5   : > { %v990_v15 = vpop.f32.mrf.mxu2  ;;  %v1010_v18 = vpop.f32.mrf.mxu3 }
 0x5a6   : > { %v1011_v21 = vadd.f32 %v1010_v18, %v990_v15 }
 0x5a8   : > { %3533 = vmatmul.msk.f32.vlgmr.msrb.gmra.mxu0 %vm6375_vm0, %v1011_v21  ;;  %3534 = vmatmul.msk.f32.vlgmr.msrb.gmra.mxu1 %vm6376_vm15, %v1011_v21  ;;  %vm6380_vm15 = vmmov %vm6375_vm0 }
 0x5a9   : > { %1193 = vmatpush.msrb.mxu0 %v4714_v22  ;;  %1213 = vmatpush.msrb.mxu1 %v4720_v25 }
 0x5ab   : > { %1194 = vmatpush.msrb.mxu0 %v4726_v32  ;;  %1214 = vmatpush.msrb.mxu1 %v4732_v24 }
 0x5ad   : > { %1195 = vmatpush.msrb.mxu0 %v4741_v1  ;;  %1215 = vmatpush.msrb.mxu1 %v4747_v30 }
 0x5af   : > { %1196 = vmatpush.msrb.mxu0 %v4753_v20  ;;  %1216 = vmatpush.msrb.mxu1 %v4759_v37 }
 0x5b0   : > { %3542 = vmatmul.msk.bf16.vlgmr.msra.gmra.mxu0 %vm6274_vm6, %v3672_v29  ;;  %3546 = vmatmul.msk.bf16.vlgmr.msra.gmra.mxu1 %vm6274_vm6, %v3672_v29 }
 0x5b1   : > { %1197 = vmatpush.msrb.mxu0 %v4767_v33  ;;  %1217 = vmatpush.msrb.mxu1 %v4167_v28 }
 0x5b3   : > { %1198 = vmatpush.msrb.mxu0 %v4180_v35  ;;  %1218 = vmatpush.msrb.mxu1 %v4185_v36 }
 0x5b5   : > { %1199 = vmatpush.msrb.mxu0 %v4198_v42  ;;  %1219 = vmatpush.msrb.mxu1 %v4205_v47  ;;  %v1129_v47 = vpop.permute.xlu2 %1128 }
 0x5b7   : > { %1200 = vmatpush.msrb.mxu0 %v4222_v53  ;;  %1220 = vmatpush.msrb.mxu1 %v4247_v61  ;;  %v1134_v53 = vpop.permute.xlu0 %1133 }
 0x5b9   : > { %1201 = vmatpush.msrb.mxu0 %v4252_v62  ;;  %1221 = vmatpush.msrb.mxu1 %v4275_v9 }
 0x5bb   : > { %1202 = vmatpush.msrb.mxu0 %v4353_v43  ;;  %1222 = vmatpush.msrb.mxu1 %v4358_v44 }
 0x5bd   : > { %1203 = vmatpush.msrb.mxu0 %v4365_v45  ;;  %1223 = vmatpush.msrb.mxu1 %v4370_v46 }
 0x5bf   : > { %1204 = vmatpush.msrb.mxu0 %v4375_v48  ;;  %1224 = vmatpush.msrb.mxu1 %v4382_v49 }
 0x5c1   : > { %1205 = vmatpush.msrb.mxu0 %v4389_v50  ;;  %1225 = vmatpush.msrb.mxu1 %v4394_v52 }
 0x5c3   : > { %1206 = vmatpush.msrb.mxu0 %v4401_v54  ;;  %1226 = vmatpush.msrb.mxu1 %v4406_v55 }
 0x5c5   : > { %1207 = vmatpush.msrb.mxu0 %v6371_v10  ;;  %1227 = vmatpush.msrb.mxu1 %v6372_v11 }
 0x5c7   : > { %1208 = vmatpush.msrb.mxu0 %v6373_v13  ;;  %1228 = vmatpush.msrb.mxu1 %v6374_v14 }
 0x5c9   : > { %1359 = vmatpush.msra.mxu0 %v4437_v63  ;;  %1379 = vmatpush.msra.mxu1 %v4442_v3 }
 0x5cb   : > { %1360 = vmatpush.msra.mxu0 %v4483_v5  ;;  %1380 = vmatpush.msra.mxu1 %v4488_v6 }
 0x625   : > { %v4797_v28 = vpop.f32.mrf.mxu0  ;;  %v4799_v35 = vpop.f32.mrf.mxu1 }
 0x626   : > { %6377 = vst [vmem:[#allocation13_spill] sm:$0xff] %v4797_v28 }
 0x627   : > { %6378 = vst [vmem:[#allocation14_spill] sm:$0xff] %v4799_v35 }
 0x62d   : > { %v1160_v36 = vpop.f32.mrf.mxu0  ;;  %v1174_v42 = vpop.f32.mrf.mxu1 }
 0x62e   : > { %v4801_v9 = vadd.f32 %v1160_v36, %v1129_v47  ;;  %v4803_v41 = vadd.f32 %v1174_v42, %v1129_v47  ;;  %v4827_v42 = vld [vmem:[%s6238_s5 + $0xd8] sm:$0xff]  ;;  %v4833_v47 = vld [vmem:[%s6238_s5 + $0x50] sm:$0xff] }
 0x635   : > { %v1162_v61 = vpop.f32.mrf.mxu0  ;;  %v1176_v62 = vpop.f32.mrf.mxu1 }
 0x636   : > { %v4805_v23 = vadd.f32 %v1162_v61, %v1134_v53  ;;  %v4807_v0 = vadd.f32 %v1176_v62, %v1134_v53  ;;  %v4839_v53 = vld [vmem:[%s6238_s5 + $0xd0] sm:$0xff]  ;;  %v4845_v61 = vld [vmem:[%s6238_s5 + $0x48] sm:$0xff] }
 0x637   : > { %v4851_v62 = vld [vmem:[%s6238_s5 + $0xc8] sm:$0xff] }
 0x638   : > { %v1179_v34 = vadd.f32 %v4805_v23, %v4801_v9  ;;  %v1186_v27 = vadd.f32 %v4807_v0, %v4803_v41 }
 0x63a   : > { %v1180_v31 = vrot.slane %v1179_v34, 4  ;;  %v1187_v26 = vrot.slane %v1186_v27, 4 }
 0x63c   : > { %v1181_v39 = vadd.f32 %v1180_v31, %v1179_v34  ;;  %v1188_v51 = vadd.f32 %v1187_v26, %v1186_v27  ;;  %v4857_v34 = vld [vmem:[%s6238_s5 + $0x40] sm:$0xff]  ;;  %v4869_v31 = vld [vmem:[%s6238_s5 + $0x38] sm:$0xff] }
 0x63d   : > { %v4863_v27 = vld [vmem:[%s6238_s5 + $0xc0] sm:$0xff]  ;;  %v4875_v26 = vld [vmem:[%s6238_s5 + $0xb8] sm:$0xff] }
 0x63e   : > { %v1182_v12 = vrot.slane %v1181_v39, 2  ;;  %v1189_v57 = vrot.slane %v1188_v51, 2 }
 0x640   : > { %v1183_v58 = vadd.f32 %v1182_v12, %v1181_v39  ;;  %v1190_v59 = vadd.f32 %v1189_v57, %v1188_v51 }
 0x642   : > { %v1184_v60 = vrot.slane %v1183_v58, 1  ;;  %v1191_v38 = vrot.slane %v1190_v59, 1 }
 0x644   : > { %v1185_v15 = vadd.f32 %v1184_v60, %v1183_v58  ;;  %v1192_v18 = vadd.f32 %v1191_v38, %v1190_v59 }
 0x646   : > { %1209 = vmatmul.f32.vlgmr.msrb.gmra.mxu0 %v1185_v15  ;;  %1229 = vmatmul.f32.vlgmr.msrb.gmra.mxu1 %v1192_v18 }
 0x6c3   : > { %v1210_v21 = vpop.f32.mrf.mxu0  ;;  %v1230_v29 = vpop.f32.mrf.mxu1 }
 0x6c4   : > { %v1231_v36 = vadd.f32 %v1230_v29, %v1210_v21 }
 0x6c6   : > { %3547 = vmatmul.msk.f32.vlgmr.msra.gmra.mxu2 %vm6379_vm7, %v1231_v36  ;;  %3548 = vmatmul.msk.f32.vlgmr.msra.gmra.mxu3 %vm6375_vm0, %v1231_v36  ;;  %vm6381_vm7 = vmmov %vm6375_vm0 }
 0x6c7   : > { %1538 = vmatpush.msra.mxu2 %v4714_v22  ;;  %1558 = vmatpush.msra.mxu3 %v4720_v25 }
 0x6c9   : > { %1539 = vmatpush.msra.mxu2 %v4726_v32  ;;  %1559 = vmatpush.msra.mxu3 %v4732_v24 }
 0x6cb   : > { %1540 = vmatpush.msra.mxu2 %v4741_v1  ;;  %1560 = vmatpush.msra.mxu3 %v4747_v30 }
 0x6cd   : > { %1541 = vmatpush.msra.mxu2 %v4753_v20  ;;  %1561 = vmatpush.msra.mxu3 %v4759_v37 }
 0x6cf   : > { %1542 = vmatpush.msra.mxu2 %v4767_v33  ;;  %1562 = vmatpush.msra.mxu3 %v4827_v42 }
 0x6d1   : > { %1543 = vmatpush.msra.mxu2 %v4833_v47  ;;  %1563 = vmatpush.msra.mxu3 %v4839_v53 }
 0x6d3   : > { %1544 = vmatpush.msra.mxu2 %v4845_v61  ;;  %1564 = vmatpush.msra.mxu3 %v4851_v62 }
 0x6d5   : > { %1545 = vmatpush.msra.mxu2 %v4857_v34  ;;  %1565 = vmatpush.msra.mxu3 %v4863_v27 }
 0x6d7   : > { %1546 = vmatpush.msra.mxu2 %v4869_v31  ;;  %1566 = vmatpush.msra.mxu3 %v4875_v26 }
 0x6d9   : > { %1547 = vmatpush.msra.mxu2 %v4353_v43  ;;  %1567 = vmatpush.msra.mxu3 %v4358_v44 }
 0x6db   : > { %1548 = vmatpush.msra.mxu2 %v4365_v45  ;;  %1568 = vmatpush.msra.mxu3 %v4370_v46 }
 0x6dd   : > { %1549 = vmatpush.msra.mxu2 %v4375_v48  ;;  %1569 = vmatpush.msra.mxu3 %v4382_v49 }
 0x6df   : > { %1550 = vmatpush.msra.mxu2 %v4389_v50  ;;  %1570 = vmatpush.msra.mxu3 %v4394_v52 }
 0x6e1   : > { %1551 = vmatpush.msra.mxu2 %v4401_v54  ;;  %1571 = vmatpush.msra.mxu3 %v4406_v55 }
 0x6e3   : > { %1552 = vmatpush.msra.mxu2 %v6371_v10  ;;  %1572 = vmatpush.msra.mxu3 %v6372_v11 }
 0x6e5   : > { %1553 = vmatpush.msra.mxu2 %v6373_v13  ;;  %1573 = vmatpush.msra.mxu3 %v6374_v14 }
 0x749   : > { %v1253_v43 = vpop.f32.mrf.mxu2  ;;  %v1273_v44 = vpop.f32.mrf.mxu3 }
 0x74a   : > { %v1276_v45 = vmul.f32 0.00390625, %v1253_v43  ;;  %v1277_v46 = vmul.f32 0.00390625, %v1273_v44 }
 0x74c   : > { %v1278_v48 = vperm.slane %v1276_v45, 0  ;;  %v1279_v49 = vperm.slane %v1277_v46, 0 }
 0x74e   : > { %v4893_v50 = vsub.f32 %v4801_v9, %v1278_v48  ;;  %v4896_v52 = vsub.f32 %v4805_v23, %v1278_v48  ;;  %v4899_v54 = vsub.f32 %v4803_v41, %v1279_v49  ;;  %v4902_v55 = vsub.f32 %v4807_v0, %v1279_v49 }
 0x750   : > { %v1284_v10 = vmul.f32 %v4893_v50, %v4893_v50  ;;  %v1286_v11 = vmul.f32 %v4896_v52, %v4896_v52  ;;  %v1285_v13 = vmul.f32 %v4899_v54, %v4899_v54  ;;  %v1287_v14 = vmul.f32 %v4902_v55, %v4902_v55 }
 0x752   : > { %v1288_v9 = vadd.f32 %v1286_v11, %v1284_v10  ;;  %v1295_v23 = vadd.f32 %v1287_v14, %v1285_v13 }
 0x754   : > { %v1289_v39 = vrot.slane %v1288_v9, 4  ;;  %v1296_v41 = vrot.slane %v1295_v23, 4 }
 0x756   : > { %v1290_v51 = vadd.f32 %v1289_v39, %v1288_v9  ;;  %v1297_v12 = vadd.f32 %v1296_v41, %v1295_v23 }
 0x758   : > { %v1291_v0 = vrot.slane %v1290_v51, 2  ;;  %v1298_v57 = vrot.slane %v1297_v12, 2 }
 0x75a   : > { %v1292_v58 = vadd.f32 %v1291_v0, %v1290_v51  ;;  %v1299_v59 = vadd.f32 %v1298_v57, %v1297_v12 }
 0x75c   : > { %v1293_v60 = vrot.slane %v1292_v58, 1  ;;  %v1300_v38 = vrot.slane %v1299_v59, 1 }
 0x75e   : > { %v1294_v15 = vadd.f32 %v1293_v60, %v1292_v58  ;;  %v1301_v18 = vadd.f32 %v1300_v38, %v1299_v59  ;;  %v1415_v58 = vld [vmem:[%s6236_s3 + $0x30] sm:$0xff]  ;;  %v1417_v59 = vld [vmem:[%s6236_s3 + $0x40] sm:$0xff] }
 0x760   : > { %1318 = vmatmul.f32.vlgmr.msrb.gmra.mxu2 %v1294_v15  ;;  %1338 = vmatmul.f32.vlgmr.msrb.gmra.mxu3 %v1301_v18  ;;  %v1416_v15 = vld [vmem:[%s6236_s3 + $0x38] sm:$0xff]  ;;  %v1418_v18 = vld [vmem:[%s6236_s3 + $0x48] sm:$0xff] }
 0x761   : > { %1704 = vmatpush.msrb.mxu2 %v4437_v63  ;;  %1724 = vmatpush.msrb.mxu3 %v4442_v3 }
 0x763   : > { %1705 = vmatpush.msrb.mxu2 %v4483_v5  ;;  %1725 = vmatpush.msrb.mxu3 %v4488_v6 }
 0x7e3   : > { %v1319_v21 = vpop.f32.mrf.mxu2  ;;  %v1339_v29 = vpop.f32.mrf.mxu3 }
 0x7e4   : > { %v1340_v36 = vadd.f32 %v1339_v29, %v1319_v21 }
 0x7e6   : > { %3549 = vmatmul.msk.f32.vlgmr.msra.gmra.mxu0 %vm6380_vm15, %v1340_v36  ;;  %3550 = vmatmul.msk.f32.vlgmr.msra.gmra.mxu1 %vm6381_vm7, %v1340_v36  ;;  %v1423_v36 = vld [vmem:[%s6237_s4 + $0x30] sm:$0xff] }
 0x863   : > { %v1362_v43 = vpop.f32.mrf.mxu0  ;;  %v1382_v44 = vpop.f32.mrf.mxu1 }
 0x864   : > { %v1385_v45 = vmul.f32 0.00390625, %v1362_v43  ;;  %v1386_v46 = vmul.f32 0.00390625, %v1382_v44  ;;  %v1426_v43 = vld [vmem:[%s6237_s4 + $0x48] sm:$0xff] }
 0x866   : > { %v1387_v48 = vadd.f32 1e-05, %v1385_v45  ;;  %v1388_v49 = vadd.f32 1e-05, %v1386_v46 }
 0x868   : > { %3870 = vrsqrt.f32 %v1387_v48  ;;  %vm1395_vm7 = vweird.f32 %v1387_v48  ;;  %vm1405_vm3 = vweird.f32 %v1388_v49 }
 0x869   : > { %3872 = vrsqrt.f32 %v1388_v49 }
 0x86e   : > { %v3871_v63 = vpop.eup %3870 }
 0x86f   : > { %v3873_v3 = vpop.eup %3872  ;;  %v1390_v5 = vmul.f32 %v3871_v63, %v1387_v48  ;;  %vm1396_vm0 = vweird.f32 %v3871_v63 }
 0x870   : > { %v1400_v10 = vmul.f32 %v3873_v3, %v1388_v49  ;;  %vm1406_vm15 = vweird.f32 %v3873_v3  ;;  %vm1397_vm6 = vmor %vm1395_vm7, %vm1396_vm0 }
 0x871   : > { %v1391_v6 = vmul.f32 %v3871_v63, %v1390_v5  ;;  %vm1407_vm4 = vmor %vm1405_vm3, %vm1406_vm15  ;;  %vm6382_vm3 = vcmp.lt.s32.totalorder %v4090_v7, 15 }
 0x872   : > { %v1401_v11 = vmul.f32 %v3873_v3, %v1400_v10 }
 0x873   : > { %v1392_v13 = vmul.f32 0.5, %v1391_v6 }
 0x874   : > { %v1402_v14 = vmul.f32 0.5, %v1401_v11 }
 0x875   : > { %v1393_v9 = vsub.f32 1.5, %v1392_v13 }
 0x876   : > { %v1403_v23 = vsub.f32 1.5, %v1402_v14 }
 0x877   : > { %v1394_v39 = vmul.f32 %v3871_v63, %v1393_v9 }
 0x878   : > { %v1404_v41 = vmul.f32 %v3873_v3, %v1403_v23  ;;  %v1476_v23 = vld [vmem:[%s6235_s2 + $0x30] sm:$0xff] }
 0x879   : > { %v1398_v51 = vsel %vm1397_vm6, %v3871_v63, %v1394_v39  ;;  %v1475_v39 = vld [vmem:[%s6235_s2 + $0x28] sm:$0xff]  ;;  %vm6386_vm6 = vcmp.lt.s32.totalorder %v4084_v4, 127 }
 0x87a   : > { %v1409_v12 = vperm.slane %v1398_v51, 0  ;;  %v1408_v0 = vsel %vm1407_vm4, %v3873_v3, %v1404_v41  ;;  %vm4959_vm4 = vmpackc.low %vm6382_vm3, %vm6382_vm3 }
 0x87b   : > { %v1410_v57 = vperm.slane %v1408_v0, 0  ;;  %vm6387_vm0 = vmmov %vm6386_vm6 }
 0x87c   : > { %v1411_v60 = vmul.f32 %v1409_v12, %v4893_v50  ;;  %v1413_v38 = vmul.f32 %v1409_v12, %v4896_v52  ;;  %v1425_v50 = vld [vmem:[%s6237_s4 + $0x40] sm:$0xff]  ;;  %v1424_v52 = vld [vmem:[%s6237_s4 + $0x38] sm:$0xff]  ;;  %vm6388_vm15 = vmmov %vm6387_vm0 }
 0x87d   : > { %v1412_v21 = vmul.f32 %v1410_v57, %v4899_v54  ;;  %v1414_v29 = vmul.f32 %v1410_v57, %v4902_v55  ;;  %vm6389_vm7 = vmmov %vm6387_vm0 }
 0x87e   : > { %v1419_v44 = vmul.f32 %v1415_v58, %v1411_v60  ;;  %v1421_v54 = vmul.f32 %v1417_v59, %v1413_v38  ;;  %v6383_v59 = vmov 0  ;;  %vm4985_vm3 = vmpackc.low %vm6394_vm1, %vm6394_vm1  ;;  %vm6295_vm1 = vcmask 392192  }
 0x87f   : > { %v1420_v45 = vmul.f32 %v1416_v15, %v1412_v21  ;;  %v1422_v55 = vmul.f32 %v1418_v18, %v1414_v29  ;;  %v6384_v59 = vsel %vm4959_vm4, 4294967295, %v6383_v59  ;;  %v6391_v21 = vmov 0 }
 0x880   : > { %v1427_v46 = vadd.f32 %v1423_v36, %v1419_v44  ;;  %v1429_v48 = vadd.f32 %v1425_v50, %v1421_v54  ;;  %6385 = vst [vmem:[#allocation15_spill] sm:$0xff] %v6384_v59  ;;  %v6392_v21 = vsel %vm4974_vm2, 4294967295, %v6391_v21 }
 0x881   : > { %v1428_v49 = vadd.f32 %v1424_v52, %v1420_v45  ;;  %v1430_v63 = vadd.f32 %v1426_v43, %v1422_v55  ;;  %6393 = vst [vmem:[#allocation16_spill] sm:$0xff] %v6392_v21  ;;  %v6395_v55 = vmov 0 }
 0x882   : > { %v1431_v3 = vmax.f32 %v1427_v46, 0.0  ;;  %v1433_v5 = vmax.f32 %v1429_v48, 0.0  ;;  %v6396_v55 = vsel %vm4985_vm3, 4294967295, %v6395_v55 }
 0x883   : > { %v1432_v10 = vmax.f32 %v1428_v49, 0.0  ;;  %v1434_v6 = vmax.f32 %v1430_v63, 0.0  ;;  %6397 = vst [vmem:[#allocation23_spill] sm:$0xff] %v6396_v55 }
 0x884   : > { %v3756_v11 = vpack.i.bf16 %v1433_v5, %v1431_v3  ;;  %v1469_v13 = vpack.c.bf16 %v1433_v5, %v1431_v3  ;;  %v6403_v3 = vmov 0 }
 0x885   : > { %v3751_v14 = vpack.i.bf16 %v1434_v6, %v1432_v10  ;;  %v1470_v9 = vpack.c.bf16 %v1434_v6, %v1432_v10  ;;  %v6404_v3 = vsel %vm5000_vm9, 4294967295, %v6403_v3  ;;  %v3673_v6 = vld [vmem:[%s6234_s1 + $0x14] sm:$0xff] }
 0x886   : > { %3757 = vrot.lane.b32.xlu0 %v3756_v11, %s4009_s13  ;;  %3747 = vrot.lane.b32.xlu1 %v3756_v11, %s4008_s12  ;;  %6405 = vst [vmem:[#allocation24_spill] sm:$0xff] %v6404_v3  ;;  %v5014_v11 = vld [vmem:[%s6239_s6 + $0x10] sm:$0xff] }
 0x887   : > { %3752 = vrot.lane.b32.xlu2 %v3751_v14, %s4008_s12  ;;  %6406 = vst [vmem:[#allocation25_spill] sm:$0xff] %v5014_v11 }
 0x88e   : > { %1484 = vperm.xlu0 %3734, %v1476_v23   ;;  %3762 = vrot.lane.b32.xlu1 %v3751_v14, %s4009_s13  ;;  %v5028_v14 = vld [vmem:[%s6239_s6] sm:$0xff]  ;;  %v5058_v23 = vld [vmem:[%s6238_s5 + $0x30] sm:$0xff] }
 0x88f   : > { %1479 = vperm.xlu2 %3733, %v1475_v39   ;;  %6408 = vst [vmem:[#allocation27_spill] sm:$0xff] %v5028_v14  ;;  %v5064_v39 = vld [vmem:[%s6238_s5 + $0xb0] sm:$0xff] }
 0x8e1   : > { %v3753_v41 = vpop.permute.xlu2 %3752 }
 0x8e2   : > { %v3755_v12 = vunpack.i.h.bf16 %v3753_v41  ;;  %v3754_v0 = vunpack.i.l.bf16 %v3753_v41  ;;  %v5070_v41 = vld [vmem:[%s6238_s5 + $0x28] sm:$0xff] }
 0x8f8   : > { %v3748_v51 = vpop.permute.xlu1 %3747  ;;  %v3758_v50 = vpop.permute.xlu0 %3757 }
 0x8f9   : > { %v3750_v57 = vunpack.i.h.bf16 %v3748_v51  ;;  %v3749_v58 = vunpack.i.l.bf16 %v3748_v51  ;;  %v3760_v43 = vunpack.i.h.bf16 %v3758_v50  ;;  %v3759_v44 = vunpack.i.l.bf16 %v3758_v50  ;;  %v5076_v51 = vld [vmem:[%s6238_s5 + $0xa8] sm:$0xff] }
 0x8fb   : > { %v1460_v60 = vsel %vm6386_vm6, %v3750_v57, %v3755_v12  ;;  %v1462_v38 = vsel %vm6387_vm0, %v3755_v12, %v3750_v57  ;;  %v1459_v15 = vsel %vm6388_vm15, %v3749_v58, %v3754_v0  ;;  %v1461_v18 = vsel %vm6389_vm7, %v3754_v0, %v3749_v58  ;;  %v5082_v12 = vld [vmem:[%s6238_s5 + $0x20] sm:$0xff]  ;;  %v5094_v57 = vld [vmem:[%s6238_s5 + $0x18] sm:$0xff] }
 0x8fc   : > { %v3556_v29 = vpack.c.bf16 %v1460_v60, %v1459_v15  ;;  %v3563_v36 = vpack.c.bf16 %v1462_v38, %v1461_v18  ;;  %vm6398_vm6 = vcmp.lt.s32.totalorder %v4084_v4, 1  ;;  %v5088_v0 = vld [vmem:[%s6238_s5 + $0xa0] sm:$0xff]  ;;  %v5100_v58 = vld [vmem:[%s6238_s5 + $0x98] sm:$0xff]  ;;  %v5106_v60 = vld [vmem:[%s6238_s5 + $0x10] sm:$0xff] }
 0x8fd   : > { %vm6399_vm0 = vmmov %vm6398_vm6  ;;  %v5112_v38 = vld [vmem:[%s6238_s5 + $0x90] sm:$0xff]  ;;  %v5118_v15 = vld [vmem:[%s6238_s5 + $0x8] sm:$0xff] }
 0x8fe   : > { %3557 = vmatpush.bf16.msk.msrb.mxu0 %vm4959_vm4, %v3556_v29  ;;  %3564 = vmatpush.bf16.msk.msrb.mxu1 %vm4974_vm2, %v3563_v36  ;;  %vm6400_vm15 = vmmov %vm6399_vm0  ;;  %6410 = vst [vmem:[#allocation29_spill] sm:$0xff] %v5118_v15  ;;  %v5124_v18 = vld [vmem:[%s6238_s5 + $0x88] sm:$0xff]  ;;  %v5130_v29 = vld [vmem:[%s6238_s5] sm:$0xff] }
 0x8ff   : > { %vm6401_vm7 = vmmov %vm6399_vm0  ;;  %6411 = vst [vmem:[#allocation30_spill] sm:$0xff] %v5124_v18  ;;  %v5136_v36 = vld [vmem:[%s6238_s5 + $0x80] sm:$0xff] }
 0x900   : > { %v3763_v52 = vpop.permute.xlu1 %3762  ;;  %6412 = vst [vmem:[#allocation31_spill] sm:$0xff] %v5130_v29 }
 0x901   : > { %v3765_v54 = vunpack.i.h.bf16 %v3763_v52  ;;  %v3764_v45 = vunpack.i.l.bf16 %v3763_v52  ;;  %6413 = vst [vmem:[#allocation32_spill] sm:$0xff] %v5136_v36 }
 0x902   : > { %1502 = vmatpush.bf16.msrb.mxu0 %v1469_v13  ;;  %1516 = vmatpush.bf16.msrb.mxu1 %v1470_v9  ;;  %v5020_v13 = vld [vmem:[%s6239_s6 + $0x18] sm:$0xff]  ;;  %v5034_v9 = vld [vmem:[%s6239_s6 + $0x8] sm:$0xff] }
 0x903   : > { %v1444_v46 = vsel %vm6398_vm6, %v3760_v43, %v3765_v54  ;;  %v1446_v48 = vsel %vm6399_vm0, %v3765_v54, %v3760_v43  ;;  %v1443_v49 = vsel %vm6400_vm15, %v3759_v44, %v3764_v45  ;;  %v1445_v63 = vsel %vm6401_vm7, %v3764_v45, %v3759_v44  ;;  %6407 = vst [vmem:[#allocation26_spill] sm:$0xff] %v5020_v13  ;;  %v1480_v43 = vpop.permute.xlu2 %1479  ;;  %v1485_v44 = vpop.permute.xlu0 %1484  ;;  %vm6415_vm6 = vmmov %vm6414_vm12 }
 0x904   : > { %v3559_v5 = vpack.c.bf16 %v1446_v48, %v1445_v63  ;;  %v3566_v10 = vpack.c.bf16 %v1444_v46, %v1443_v49  ;;  %6409 = vst [vmem:[#allocation28_spill] sm:$0xff] %v5034_v9  ;;  %vm6416_vm0 = vmmov %vm6415_vm6 }
 0x905   : > { %vm6417_vm15 = vmmov %vm6416_vm0 }
 0x906   : > { %3560 = vmatpush.bf16.msk.msrb.mxu0 %vm4985_vm3, %v3559_v5  ;;  %3567 = vmatpush.bf16.msk.msrb.mxu1 %vm5000_vm9, %v3566_v10 }
 0x909   : > { %3561 = vmatmul.msk.bf16.vlgmr.msrb.gmra.mxu0 %vm6295_vm1, %v3673_v6  ;;  %3568 = vmatmul.msk.bf16.vlgmr.msrb.gmra.mxu1 %vm6295_vm1, %v3673_v6 }
 0x90a   : > { %1595 = vmatpush.msra.mxu0 %v5014_v11  ;;  %1615 = vmatpush.msra.mxu1 %v5020_v13 }
 0x90c   : > { %1596 = vmatpush.msra.mxu0 %v5028_v14  ;;  %1616 = vmatpush.msra.mxu1 %v5034_v9 }
 0x90e   : > { %1647 = vmatpush.msrb.mxu0 %v4714_v22  ;;  %1667 = vmatpush.msrb.mxu1 %v4720_v25 }
 0x910   : > { %1648 = vmatpush.msrb.mxu0 %v4726_v32  ;;  %1668 = vmatpush.msrb.mxu1 %v4732_v24 }
 0x912   : > { %1649 = vmatpush.msrb.mxu0 %v4741_v1  ;;  %1669 = vmatpush.msrb.mxu1 %v4747_v30 }
 0x914   : > { %1650 = vmatpush.msrb.mxu0 %v4753_v20  ;;  %1670 = vmatpush.msrb.mxu1 %v4759_v37 }
 0x916   : > { %1651 = vmatpush.msrb.mxu0 %v4767_v33  ;;  %1671 = vmatpush.msrb.mxu1 %v4827_v42 }
 0x918   : > { %1652 = vmatpush.msrb.mxu0 %v4833_v47  ;;  %1672 = vmatpush.msrb.mxu1 %v4839_v53 }
 0x91a   : > { %1653 = vmatpush.msrb.mxu0 %v4845_v61  ;;  %1673 = vmatpush.msrb.mxu1 %v4851_v62 }
 0x91c   : > { %1654 = vmatpush.msrb.mxu0 %v4857_v34  ;;  %1674 = vmatpush.msrb.mxu1 %v4863_v27 }
 0x91e   : > { %1655 = vmatpush.msrb.mxu0 %v4869_v31  ;;  %1675 = vmatpush.msrb.mxu1 %v4875_v26 }
 0x920   : > { %1656 = vmatpush.msrb.mxu0 %v5058_v23  ;;  %1676 = vmatpush.msrb.mxu1 %v5064_v39 }
 0x922   : > { %1657 = vmatpush.msrb.mxu0 %v5070_v41  ;;  %1677 = vmatpush.msrb.mxu1 %v5076_v51 }
 0x924   : > { %1658 = vmatpush.msrb.mxu0 %v5082_v12  ;;  %1678 = vmatpush.msrb.mxu1 %v5088_v0 }
 0x926   : > { %1659 = vmatpush.msrb.mxu0 %v5094_v57  ;;  %1679 = vmatpush.msrb.mxu1 %v5100_v58 }
 0x928   : > { %1660 = vmatpush.msrb.mxu0 %v5106_v60  ;;  %1680 = vmatpush.msrb.mxu1 %v5112_v38 }
 0x92a   : > { %1661 = vmatpush.msrb.mxu0 %v5118_v15  ;;  %1681 = vmatpush.msrb.mxu1 %v5124_v18 }
 0x92c   : > { %1662 = vmatpush.msrb.mxu0 %v5130_v29  ;;  %1682 = vmatpush.msrb.mxu1 %v5136_v36 }
 0x986   : > { %v1505_v50 = vpop.f32.mrf.mxu0  ;;  %v1519_v52 = vpop.f32.mrf.mxu1 }
 0x987   : > { %v1506_v46 = vadd.f32 %v1505_v50, %v1480_v43  ;;  %v1520_v48 = vadd.f32 %v1519_v52, %v1480_v43 }
 0x98e   : > { %v1507_v54 = vpop.f32.mrf.mxu0  ;;  %v1521_v45 = vpop.f32.mrf.mxu1 }
 0x98f   : > { %v1508_v49 = vadd.f32 %v1507_v54, %v1485_v44  ;;  %v1522_v63 = vadd.f32 %v1521_v45, %v1485_v44 }
 0x991   : > { %v1524_v5 = vadd.f32 %v1508_v49, %v1506_v46  ;;  %v1531_v10 = vadd.f32 %v1522_v63, %v1520_v48 }
 0x993   : > { %v1525_v6 = vrot.slane %v1524_v5, 4  ;;  %v1532_v2 = vrot.slane %v1531_v10, 4 }
 0x995   : > { %v1526_v56 = vadd.f32 %v1525_v6, %v1524_v5  ;;  %v1533_v8 = vadd.f32 %v1532_v2, %v1531_v10 }
 0x997   : > { %v1527_v7 = vrot.slane %v1526_v56, 2  ;;  %v1534_v19 = vrot.slane %v1533_v8, 2 }
 0x999   : > { %v1528_v17 = vadd.f32 %v1527_v7, %v1526_v56  ;;  %v1535_v16 = vadd.f32 %v1534_v19, %v1533_v8 }
 0x99b   : > { %v1529_v40 = vrot.slane %v1528_v17, 1  ;;  %v1536_v35 = vrot.slane %v1535_v16, 1 }
 0x99d   : > { %v1530_v28 = vadd.f32 %v1529_v40, %v1528_v17  ;;  %v1537_v3 = vadd.f32 %v1536_v35, %v1535_v16 }
 0x99f   : > { %1554 = vmatmul.f32.vlgmr.msra.gmra.mxu2 %v1530_v28  ;;  %1574 = vmatmul.f32.vlgmr.msra.gmra.mxu3 %v1537_v3 }
 0xa22   : > { %v1555_v50 = vpop.f32.mrf.mxu2  ;;  %v1575_v52 = vpop.f32.mrf.mxu3 }
 0xa23   : > { %v1576_v43 = vadd.f32 %v1575_v52, %v1555_v50 }
 0xa25   : > { %3569 = vmatmul.msk.f32.vlgmr.msra.gmra.mxu0 %vm6414_vm12, %v1576_v43  ;;  %3570 = vmatmul.msk.f32.vlgmr.msra.gmra.mxu1 %vm6415_vm6, %v1576_v43 }
 0xa26   : > { %1939 = vmatpush.msra.mxu0 %v5014_v11  ;;  %1959 = vmatpush.msra.mxu1 %v5020_v13 }
 0xa28   : > { %1940 = vmatpush.msra.mxu0 %v5028_v14  ;;  %1960 = vmatpush.msra.mxu1 %v5034_v9 }
 0xaa2   : > { %v1598_v7 = vpop.f32.mrf.mxu0  ;;  %v1618_v8 = vpop.f32.mrf.mxu1 }
 0xaa3   : > { %v1621_v56 = vmul.f32 0.00390625, %v1598_v7  ;;  %v1622_v2 = vmul.f32 0.00390625, %v1618_v8 }
 0xaa5   : > { %v1623_v40 = vperm.slane %v1621_v56, 0  ;;  %v1624_v16 = vperm.slane %v1622_v2, 0 }
 0xaa7   : > { %v5145_v17 = vsub.f32 %v1506_v46, %v1623_v40  ;;  %v5147_v19 = vsub.f32 %v1508_v49, %v1623_v40  ;;  %v5149_v28 = vsub.f32 %v1520_v48, %v1624_v16  ;;  %v5151_v35 = vsub.f32 %v1522_v63, %v1624_v16 }
 0xaa9   : > { %v1629_v3 = vmul.f32 %v5145_v17, %v5145_v17  ;;  %v1631_v44 = vmul.f32 %v5147_v19, %v5147_v19  ;;  %v1630_v54 = vmul.f32 %v5149_v28, %v5149_v28  ;;  %v1632_v45 = vmul.f32 %v5151_v35, %v5151_v35 }
 0xaab   : > { %v1633_v46 = vadd.f32 %v1631_v44, %v1629_v3  ;;  %v1640_v5 = vadd.f32 %v1632_v45, %v1630_v54 }
 0xaad   : > { %v1634_v49 = vrot.slane %v1633_v46, 4  ;;  %v1641_v10 = vrot.slane %v1640_v5, 4 }
 0xaaf   : > { %v1635_v48 = vadd.f32 %v1634_v49, %v1633_v46  ;;  %v1642_v6 = vadd.f32 %v1641_v10, %v1640_v5 }
 0xab1   : > { %v1636_v63 = vrot.slane %v1635_v48, 2  ;;  %v1643_v50 = vrot.slane %v1642_v6, 2 }
 0xab3   : > { %v1637_v52 = vadd.f32 %v1636_v63, %v1635_v48  ;;  %v1644_v43 = vadd.f32 %v1643_v50, %v1642_v6 }
 0xab5   : > { %v1638_v7 = vrot.slane %v1637_v52, 1  ;;  %v1645_v8 = vrot.slane %v1644_v43, 1 }
 0xab7   : > { %v1639_v56 = vadd.f32 %v1638_v7, %v1637_v52  ;;  %v1646_v2 = vadd.f32 %v1645_v8, %v1644_v43 }
 0xab9   : > { %1663 = vmatmul.f32.vlgmr.msrb.gmra.mxu0 %v1639_v56  ;;  %1683 = vmatmul.f32.vlgmr.msrb.gmra.mxu1 %v1646_v2 }
 0xaba   : > { %1991 = vmatpush.msrb.mxu0 %v4714_v22  ;;  %2011 = vmatpush.msrb.mxu1 %v4720_v25 }
 0xabc   : > { %1992 = vmatpush.msrb.mxu0 %v4726_v32  ;;  %2012 = vmatpush.msrb.mxu1 %v4732_v24 }
 0xabe   : > { %1993 = vmatpush.msrb.mxu0 %v4741_v1  ;;  %2013 = vmatpush.msrb.mxu1 %v4747_v30 }
 0xac0   : > { %1994 = vmatpush.msrb.mxu0 %v4753_v20  ;;  %2014 = vmatpush.msrb.mxu1 %v4759_v37 }
 0xac2   : > { %1995 = vmatpush.msrb.mxu0 %v4767_v33  ;;  %2015 = vmatpush.msrb.mxu1 %v4827_v42 }
 0xac4   : > { %1996 = vmatpush.msrb.mxu0 %v4833_v47  ;;  %2016 = vmatpush.msrb.mxu1 %v4839_v53 }
 0xac6   : > { %1997 = vmatpush.msrb.mxu0 %v4845_v61  ;;  %2017 = vmatpush.msrb.mxu1 %v4851_v62 }
 0xac8   : > { %1998 = vmatpush.msrb.mxu0 %v4857_v34  ;;  %2018 = vmatpush.msrb.mxu1 %v4863_v27 }
 0xaca   : > { %1999 = vmatpush.msrb.mxu0 %v4869_v31  ;;  %2019 = vmatpush.msrb.mxu1 %v4875_v26 }
 0xacc   : > { %2000 = vmatpush.msrb.mxu0 %v5058_v23  ;;  %2020 = vmatpush.msrb.mxu1 %v5064_v39 }
 0xace   : > { %2001 = vmatpush.msrb.mxu0 %v5070_v41  ;;  %2021 = vmatpush.msrb.mxu1 %v5076_v51 }
 0xad0   : > { %2002 = vmatpush.msrb.mxu0 %v5082_v12  ;;  %2022 = vmatpush.msrb.mxu1 %v5088_v0 }
 0xad2   : > { %2003 = vmatpush.msrb.mxu0 %v5094_v57  ;;  %2023 = vmatpush.msrb.mxu1 %v5100_v58 }
 0xad4   : > { %2004 = vmatpush.msrb.mxu0 %v5106_v60  ;;  %2024 = vmatpush.msrb.mxu1 %v5112_v38 }
 0xad6   : > { %2005 = vmatpush.msrb.mxu0 %v5118_v15  ;;  %2025 = vmatpush.msrb.mxu1 %v5124_v18 }
 0xad8   : > { %2006 = vmatpush.msrb.mxu0 %v5130_v29  ;;  %2026 = vmatpush.msrb.mxu1 %v5136_v36 }
 0xb36   : > { %v1664_v40 = vpop.f32.mrf.mxu0  ;;  %v1684_v16 = vpop.f32.mrf.mxu1 }
 0xb37   : > { %v1685_v3 = vadd.f32 %v1684_v16, %v1664_v40 }
 0xb39   : > { %3571 = vmatmul.msk.f32.vlgmr.msrb.gmra.mxu2 %vm6416_vm0, %v1685_v3  ;;  %3572 = vmatmul.msk.f32.vlgmr.msrb.gmra.mxu3 %vm6417_vm15, %v1685_v3 }
 0xbbc   : > { %v1707_v44 = vpop.f32.mrf.mxu2  ;;  %v1727_v54 = vpop.f32.mrf.mxu3 }
 0xbbd   : > { %v1730_v45 = vmul.f32 0.00390625, %v1707_v44  ;;  %v1731_v46 = vmul.f32 0.00390625, %v1727_v54 }
 0xbbf   : > { %v1732_v5 = vadd.f32 1e-05, %v1730_v45  ;;  %v1733_v49 = vadd.f32 1e-05, %v1731_v46  ;;  %v1760_v45 = vld [vmem:[%s6236_s3 + $0x50] sm:$0xff]  ;;  %v1762_v46 = vld [vmem:[%s6236_s3 + $0x60] sm:$0xff] }
 0xbc1   : > { %3874 = vrsqrt.f32 %v1732_v5  ;;  %vm1740_vm6 = vweird.f32 %v1732_v5  ;;  %vm1750_vm15 = vweird.f32 %v1733_v49 }
 0xbc2   : > { %3876 = vrsqrt.f32 %v1733_v49 }
 0xbc7   : > { %v3875_v10 = vpop.eup %3874 }
 0xbc8   : > { %v3877_v48 = vpop.eup %3876  ;;  %v1735_v6 = vmul.f32 %v3875_v10, %v1732_v5  ;;  %vm1741_vm7 = vweird.f32 %v3875_v10 }
 0xbc9   : > { %v1745_v63 = vmul.f32 %v3877_v48, %v1733_v49  ;;  %vm1751_vm12 = vweird.f32 %v3877_v48  ;;  %vm1742_vm0 = vmor %vm1740_vm6, %vm1741_vm7  ;;  %v1761_v49 = vld [vmem:[%s6236_s3 + $0x58] sm:$0xff] }
 0xbca   : > { %v1736_v50 = vmul.f32 %v3875_v10, %v1735_v6  ;;  %vm1752_vm1 = vmor %vm1750_vm15, %vm1751_vm12 }
 0xbcb   : > { %v1746_v52 = vmul.f32 %v3877_v48, %v1745_v63 }
 0xbcc   : > { %v1737_v43 = vmul.f32 0.5, %v1736_v50  ;;  %v1768_v50 = vld [vmem:[%s6237_s4 + $0x50] sm:$0xff] }
 0xbcd   : > { %v1747_v7 = vmul.f32 0.5, %v1746_v52  ;;  %v1771_v52 = vld [vmem:[%s6237_s4 + $0x68] sm:$0xff] }
 0xbce   : > { %v1738_v8 = vsub.f32 1.5, %v1737_v43 }
 0xbcf   : > { %v1748_v56 = vsub.f32 1.5, %v1747_v7 }
 0xbd0   : > { %v1739_v2 = vmul.f32 %v3875_v10, %v1738_v8 }
 0xbd1   : > { %v1749_v40 = vmul.f32 %v3877_v48, %v1748_v56 }
 0xbd2   : > { %v1743_v16 = vsel %vm1742_vm0, %v3875_v10, %v1739_v2  ;;  %v1763_v10 = vld [vmem:[%s6236_s3 + $0x68] sm:$0xff]  ;;  %vm6422_vm0 = vcmp.lt.s32.totalorder %v4084_v4, 1 }
 0xbd3   : > { %v1754_v3 = vperm.slane %v1743_v16, 0  ;;  %v1753_v44 = vsel %vm1752_vm1, %v3877_v48, %v1749_v40  ;;  %vm6418_vm1 = vcmp.lt.s32.totalorder %v4084_v4, 127  ;;  %vm6423_vm15 = vmmov %vm6422_vm0 }
 0xbd4   : > { %v1755_v54 = vperm.slane %v1753_v44, 0  ;;  %vm6419_vm7 = vmmov %vm6418_vm1 }
 0xbd5   : > { %v1756_v6 = vmul.f32 %v1754_v3, %v5145_v17  ;;  %v1758_v5 = vmul.f32 %v1754_v3, %v5147_v19  ;;  %v1770_v17 = vld [vmem:[%s6237_s4 + $0x60] sm:$0xff]  ;;  %v1769_v19 = vld [vmem:[%s6237_s4 + $0x58] sm:$0xff]  ;;  %vm6420_vm12 = vmmov %vm6418_vm1 }
 0xbd6   : > { %v1757_v48 = vmul.f32 %v1755_v54, %v5149_v28  ;;  %v1759_v63 = vmul.f32 %v1755_v54, %v5151_v35  ;;  %vm6421_vm6 = vmmov %vm6418_vm1 }
 0xbd7   : > { %v1764_v43 = vmul.f32 %v1760_v45, %v1756_v6  ;;  %v1766_v28 = vmul.f32 %v1762_v46, %v1758_v5  ;;  %v1821_v45 = vld [vmem:[%s6235_s2 + $0x40] sm:$0xff]  ;;  %v1820_v46 = vld [vmem:[%s6235_s2 + $0x38] sm:$0xff]  ;;  %v2135_v6 = vld [vmem:[%s6235_s2 + $0x48] sm:$0xff] }
 0xbd8   : > { %v1765_v7 = vmul.f32 %v1761_v49, %v1757_v48  ;;  %v1767_v35 = vmul.f32 %v1763_v10, %v1759_v63 }
 0xbd9   : > { %v1772_v8 = vadd.f32 %v1768_v50, %v1764_v43  ;;  %v1774_v56 = vadd.f32 %v1770_v17, %v1766_v28 }
 0xbda   : > { %v1773_v2 = vadd.f32 %v1769_v19, %v1765_v7  ;;  %v1775_v40 = vadd.f32 %v1771_v52, %v1767_v35 }
 0xbdb   : > { %v1776_v16 = vmax.f32 %v1772_v8, 0.0  ;;  %v1778_v3 = vmax.f32 %v1774_v56, 0.0 }
 0xbdc   : > { %v1777_v44 = vmax.f32 %v1773_v2, 0.0  ;;  %v1779_v54 = vmax.f32 %v1775_v40, 0.0 }
 0xbdd   : > { %v3776_v9 = vpack.i.bf16 %v1778_v3, %v1776_v16  ;;  %v1814_v14 = vpack.c.bf16 %v1778_v3, %v1776_v16 }
 0xbde   : > { %v3771_v13 = vpack.i.bf16 %v1779_v54, %v1777_v44  ;;  %v1815_v11 = vpack.c.bf16 %v1779_v54, %v1777_v44 }
 0xbdf   : > { %3777 = vrot.lane.b32.xlu0 %v3776_v9, %s4009_s13  ;;  %3767 = vrot.lane.b32.xlu1 %v3776_v9, %s4008_s12 }
 0xbe0   : > { %3772 = vrot.lane.b32.xlu2 %v3771_v13, %s4008_s12 }
 0xbe7   : > { %1829 = vperm.xlu0 %3734, %v1821_v45   ;;  %3782 = vrot.lane.b32.xlu1 %v3771_v13, %s4009_s13 }
 0xbe8   : > { %1824 = vperm.xlu2 %3733, %v1820_v46   ;;  %v3674_v46 = vld [vmem:[%s6234_s1 + $0x1c] sm:$0xff] }
 0xbef   : > { %2138 = vperm.xlu1 %3735, %v2135_v6  }
 0xc3a   : > { %v3773_v9 = vpop.permute.xlu2 %3772 }
 0xc3b   : > { %v3775_v49 = vunpack.i.h.bf16 %v3773_v9  ;;  %v3774_v10 = vunpack.i.l.bf16 %v3773_v9 }
 0xc51   : > { %v3768_v5 = vpop.permute.xlu1 %3767  ;;  %v3778_v28 = vpop.permute.xlu0 %3777 }
 0xc52   : > { %v3770_v48 = vunpack.i.h.bf16 %v3768_v5  ;;  %v3769_v63 = vunpack.i.l.bf16 %v3768_v5  ;;  %v3780_v35 = vunpack.i.h.bf16 %v3778_v28  ;;  %v3779_v8 = vunpack.i.l.bf16 %v3778_v28 }
 0xc54   : > { %v1805_v50 = vsel %vm6418_vm1, %v3770_v48, %v3775_v49  ;;  %v1807_v17 = vsel %vm6419_vm7, %v3775_v49, %v3770_v48  ;;  %v1804_v13 = vsel %vm6420_vm12, %v3769_v63, %v3774_v10  ;;  %v1806_v19 = vsel %vm6421_vm6, %v3774_v10, %v3769_v63  ;;  %vm6424_vm1 = vmmov %vm6422_vm0 }
 0xc55   : > { %v3578_v52 = vpack.c.bf16 %v1805_v50, %v1804_v13  ;;  %v3585_v43 = vpack.c.bf16 %v1807_v17, %v1806_v19  ;;  %vm6425_vm7 = vmmov %vm6422_vm0  ;;  %vm6427_vm12 = vcmask 392192  }
 0xc56   : > { %vm6428_vm6 = vmmov %vm6427_vm12 }
 0xc57   : > { %3579 = vmatpush.bf16.msk.msra.mxu2 %vm4959_vm4, %v3578_v52  ;;  %3586 = vmatpush.bf16.msk.msra.mxu3 %vm4974_vm2, %v3585_v43 }
 0xc59   : > { %v3783_v7 = vpop.permute.xlu1 %3782 }
 0xc5a   : > { %v3785_v56 = vunpack.i.h.bf16 %v3783_v7  ;;  %v3784_v2 = vunpack.i.l.bf16 %v3783_v7 }
 0xc5b   : > { %1846 = vmatpush.bf16.msra.mxu2 %v1814_v14  ;;  %1860 = vmatpush.bf16.msra.mxu3 %v1815_v11  ;;  %v1094_v11 = vld [vmem:[%s6237_s4 + $0x10] sm:$0xff] }
 0xc5c   : > { %v1789_v40 = vsel %vm6422_vm0, %v3780_v35, %v3785_v56  ;;  %v1791_v16 = vsel %vm6423_vm15, %v3785_v56, %v3780_v35  ;;  %v1788_v3 = vsel %vm6424_vm1, %v3779_v8, %v3784_v2  ;;  %v1790_v44 = vsel %vm6425_vm7, %v3784_v2, %v3779_v8 }
 0xc5d   : > { %v3581_v54 = vpack.c.bf16 %v1791_v16, %v1790_v44  ;;  %v3588_v45 = vpack.c.bf16 %v1789_v40, %v1788_v3  ;;  %vm6433_vm0 = vcmask 130048  }
 0xc5e   : > { %vm6434_vm15 = vmmov %vm6433_vm0 }
 0xc5f   : > { %3582 = vmatpush.bf16.msk.msra.mxu2 %vm4985_vm3, %v3581_v54  ;;  %3589 = vmatpush.bf16.msk.msra.mxu3 %vm5000_vm9, %v3588_v45  ;;  %vm6435_vm1 = vmmov %vm6433_vm0 }
 0xc60   : > { %vm6436_vm7 = vmmov %vm6433_vm0 }
 0xc62   : > { %3583 = vmatmul.msk.bf16.vlgmr.msra.gmra.mxu2 %vm6427_vm12, %v3674_v46  ;;  %3590 = vmatmul.msk.bf16.vlgmr.msra.gmra.mxu3 %vm6428_vm6, %v3674_v46 }
 0xc63   : > { %1882 = vmatpush.msrb.mxu2 %v4714_v22  ;;  %1902 = vmatpush.msrb.mxu3 %v4720_v25  ;;  %v6429_v22 = vld [vmem:[#allocation25_spill] sm:$0xff]  ;;  %v6430_v25 = vld [vmem:[#allocation26_spill] sm:$0xff] }
 0xc65   : > { %1883 = vmatpush.msrb.mxu2 %v4726_v32  ;;  %1903 = vmatpush.msrb.mxu3 %v4732_v24  ;;  %v6431_v32 = vld [vmem:[#allocation27_spill] sm:$0xff]  ;;  %v6432_v24 = vld [vmem:[#allocation28_spill] sm:$0xff] }
 0xc67   : > { %1884 = vmatpush.msrb.mxu2 %v4741_v1  ;;  %1904 = vmatpush.msrb.mxu3 %v4747_v30 }
 0xc69   : > { %1885 = vmatpush.msrb.mxu2 %v4753_v20  ;;  %1905 = vmatpush.msrb.mxu3 %v4759_v37  ;;  %v1825_v20 = vpop.permute.xlu2 %1824  ;;  %v1830_v37 = vpop.permute.xlu0 %1829 }
 0xc6b   : > { %1886 = vmatpush.msrb.mxu2 %v4767_v33  ;;  %1906 = vmatpush.msrb.mxu3 %v4827_v42 }
 0xc6d   : > { %1887 = vmatpush.msrb.mxu2 %v4833_v47  ;;  %1907 = vmatpush.msrb.mxu3 %v4839_v53 }
 0xc6f   : > { %1888 = vmatpush.msrb.mxu2 %v4845_v61  ;;  %1908 = vmatpush.msrb.mxu3 %v4851_v62 }
 0xc71   : > { %1889 = vmatpush.msrb.mxu2 %v4857_v34  ;;  %1909 = vmatpush.msrb.mxu3 %v4863_v27 }
 0xc73   : > { %1890 = vmatpush.msrb.mxu2 %v4869_v31  ;;  %1910 = vmatpush.msrb.mxu3 %v4875_v26 }
 0xc75   : > { %1891 = vmatpush.msrb.mxu2 %v5058_v23  ;;  %1911 = vmatpush.msrb.mxu3 %v5064_v39 }
 0xc77   : > { %1892 = vmatpush.msrb.mxu2 %v5070_v41  ;;  %1912 = vmatpush.msrb.mxu3 %v5076_v51 }
 0xc79   : > { %1893 = vmatpush.msrb.mxu2 %v5082_v12  ;;  %1913 = vmatpush.msrb.mxu3 %v5088_v0 }
 0xc7b   : > { %1894 = vmatpush.msrb.mxu2 %v5094_v57  ;;  %1914 = vmatpush.msrb.mxu3 %v5100_v58 }
 0xc7d   : > { %1895 = vmatpush.msrb.mxu2 %v5106_v60  ;;  %1915 = vmatpush.msrb.mxu3 %v5112_v38 }
 0xc7f   : > { %1896 = vmatpush.msrb.mxu2 %v5118_v15  ;;  %1916 = vmatpush.msrb.mxu3 %v5124_v18 }
 0xc81   : > { %1897 = vmatpush.msrb.mxu2 %v5130_v29  ;;  %1917 = vmatpush.msrb.mxu3 %v5136_v36 }
 0xc83   : > { %2048 = vmatpush.msra.mxu2 %v6429_v22  ;;  %2068 = vmatpush.msra.mxu3 %v6430_v25 }
 0xc85   : > { %2049 = vmatpush.msra.mxu2 %v6431_v32  ;;  %2069 = vmatpush.msra.mxu3 %v6432_v24 }
 0xce5   : > { %v1849_v1 = vpop.f32.mrf.mxu2  ;;  %v1863_v30 = vpop.f32.mrf.mxu3 }
 0xce6   : > { %v1850_v47 = vadd.f32 %v1849_v1, %v1825_v20  ;;  %v1864_v53 = vadd.f32 %v1863_v30, %v1825_v20 }
 0xced   : > { %v1851_v33 = vpop.f32.mrf.mxu2  ;;  %v1865_v42 = vpop.f32.mrf.mxu3 }
 0xcee   : > { %v1852_v61 = vadd.f32 %v1851_v33, %v1830_v37  ;;  %v1866_v62 = vadd.f32 %v1865_v42, %v1830_v37 }
 0xcf0   : > { %v1868_v34 = vadd.f32 %v1852_v61, %v1850_v47  ;;  %v1875_v27 = vadd.f32 %v1866_v62, %v1864_v53 }
 0xcf2   : > { %v1869_v31 = vrot.slane %v1868_v34, 4  ;;  %v1876_v26 = vrot.slane %v1875_v27, 4 }
 0xcf4   : > { %v1870_v14 = vadd.f32 %v1869_v31, %v1868_v34  ;;  %v1877_v6 = vadd.f32 %v1876_v26, %v1875_v27  ;;  %v5328_v26 = vld [vmem:[%s6238_s5 + $0x78] sm:$0xff] }
 0xcf6   : > { %v1871_v9 = vrot.slane %v1870_v14, 2  ;;  %v1878_v5 = vrot.slane %v1877_v6, 2 }
 0xcf8   : > { %v1872_v49 = vadd.f32 %v1871_v9, %v1870_v14  ;;  %v1879_v10 = vadd.f32 %v1878_v5, %v1877_v6  ;;  %v5334_v14 = vld [vmem:[%s6238_s5 + $0xf8] sm:$0xff]  ;;  %v5340_v6 = vld [vmem:[%s6238_s5 + $0x70] sm:$0xff]  ;;  %v5352_v5 = vld [vmem:[%s6238_s5 + $0x68] sm:$0xff] }
 0xcf9   : > { %v5346_v9 = vld [vmem:[%s6238_s5 + $0xf0] sm:$0xff] }
 0xcfa   : > { %v1873_v48 = vrot.slane %v1872_v49, 1  ;;  %v1880_v63 = vrot.slane %v1879_v10, 1 }
 0xcfc   : > { %v1874_v50 = vadd.f32 %v1873_v48, %v1872_v49  ;;  %v1881_v17 = vadd.f32 %v1880_v63, %v1879_v10  ;;  %v5358_v49 = vld [vmem:[%s6238_s5 + $0xe8] sm:$0xff]  ;;  %v5364_v10 = vld [vmem:[%s6238_s5 + $0x60] sm:$0xff]  ;;  %v5376_v63 = vld [vmem:[%s6238_s5 + $0x58] sm:$0xff] }
 0xcfd   : > { %v5370_v48 = vld [vmem:[%s6238_s5 + $0xe0] sm:$0xff] }
 0xcfe   : > { %1898 = vmatmul.f32.vlgmr.msrb.gmra.mxu2 %v1874_v50  ;;  %1918 = vmatmul.f32.vlgmr.msrb.gmra.mxu3 %v1881_v17  ;;  %v5382_v50 = vld [vmem:[%s6238_s5 + $0xd8] sm:$0xff]  ;;  %v5388_v17 = vld [vmem:[%s6238_s5 + $0x50] sm:$0xff] }
 0xcff   : > { %2239 = vmatpush.msrb.mxu2 %v6429_v22  ;;  %2259 = vmatpush.msrb.mxu3 %v6430_v25 }
 0xd01   : > { %2240 = vmatpush.msrb.mxu2 %v6431_v32  ;;  %2260 = vmatpush.msrb.mxu3 %v6432_v24 }
 0xd81   : > { %v1899_v13 = vpop.f32.mrf.mxu2  ;;  %v1919_v19 = vpop.f32.mrf.mxu3 }
 0xd82   : > { %v1920_v52 = vadd.f32 %v1919_v19, %v1899_v13  ;;  %v5394_v13 = vld [vmem:[%s6238_s5 + $0xd0] sm:$0xff]  ;;  %v5400_v19 = vld [vmem:[%s6238_s5 + $0x48] sm:$0xff] }
 0xd84   : > { %3591 = vmatmul.msk.f32.vlgmr.msra.gmra.mxu0 %vm6433_vm0, %v1920_v52  ;;  %3592 = vmatmul.msk.f32.vlgmr.msra.gmra.mxu1 %vm6434_vm15, %v1920_v52  ;;  %v5406_v52 = vld [vmem:[%s6238_s5 + $0xc8] sm:$0xff] }
 0xe01   : > { %v1942_v43 = vpop.f32.mrf.mxu0  ;;  %v1962_v28 = vpop.f32.mrf.mxu1 }
 0xe02   : > { %v1965_v7 = vmul.f32 0.00390625, %v1942_v43  ;;  %v1966_v35 = vmul.f32 0.00390625, %v1962_v28  ;;  %v5412_v43 = vld [vmem:[%s6238_s5 + $0x40] sm:$0xff] }
 0xe03   : > { %v5418_v28 = vld [vmem:[%s6238_s5 + $0xc0] sm:$0xff] }
 0xe04   : > { %v1967_v8 = vperm.slane %v1965_v7, 0  ;;  %v1968_v56 = vperm.slane %v1966_v35, 0  ;;  %v5424_v7 = vld [vmem:[%s6238_s5 + $0x38] sm:$0xff] }
 0xe05   : > { %v5430_v35 = vld [vmem:[%s6238_s5 + $0xb8] sm:$0xff] }
 0xe06   : > { %v5307_v2 = vsub.f32 %v1850_v47, %v1967_v8  ;;  %v5309_v40 = vsub.f32 %v1852_v61, %v1967_v8  ;;  %v5311_v16 = vsub.f32 %v1864_v53, %v1968_v56  ;;  %v5313_v3 = vsub.f32 %v1866_v62, %v1968_v56  ;;  %v6437_v8 = vld [vmem:[#allocation13_spill] sm:$0xff] }
 0xe07   : > { %v1056_v56 = vmul.f32 0.00390625, %v6437_v8 }
 0xe08   : > { %v1973_v44 = vmul.f32 %v5307_v2, %v5307_v2  ;;  %v1975_v54 = vmul.f32 %v5309_v40, %v5309_v40  ;;  %v1974_v45 = vmul.f32 %v5311_v16, %v5311_v16  ;;  %v1976_v46 = vmul.f32 %v5313_v3, %v5313_v3 }
 0xe0a   : > { %v1977_v22 = vadd.f32 %v1975_v54, %v1973_v44  ;;  %v1984_v25 = vadd.f32 %v1976_v46, %v1974_v45  ;;  %v6438_v44 = vld [vmem:[#allocation14_spill] sm:$0xff]  ;;  %v1058_v45 = vadd.f32 1e-05, %v1056_v56 }
 0xe0b   : > { %v1057_v54 = vmul.f32 0.00390625, %v6438_v44 }
 0xe0c   : > { %v1978_v32 = vrot.slane %v1977_v22, 4  ;;  %v1985_v24 = vrot.slane %v1984_v25, 4  ;;  %3878 = vrsqrt.f32 %v1058_v45  ;;  %vm1066_vm0 = vweird.f32 %v1058_v45 }
 0xe0d   : > { %v1059_v46 = vadd.f32 1e-05, %v1057_v54 }
 0xe0e   : > { %v1979_v1 = vadd.f32 %v1978_v32, %v1977_v22  ;;  %v1986_v30 = vadd.f32 %v1985_v24, %v1984_v25 }
 0xe0f   : > { %3880 = vrsqrt.f32 %v1059_v46 }
 0xe10   : > { %v1980_v20 = vrot.slane %v1979_v1, 2  ;;  %v1987_v37 = vrot.slane %v1986_v30, 2 }
 0xe12   : > { %v1981_v33 = vadd.f32 %v1980_v20, %v1979_v1  ;;  %v1988_v42 = vadd.f32 %v1987_v37, %v1986_v30  ;;  %v3879_v22 = vpop.eup %3878 }
 0xe13   : > { %v1061_v32 = vmul.f32 %v3879_v22, %v1058_v45  ;;  %vm1067_vm12 = vweird.f32 %v3879_v22 }
 0xe14   : > { %v1982_v47 = vrot.slane %v1981_v33, 1  ;;  %v1989_v53 = vrot.slane %v1988_v42, 1  ;;  %vm1068_vm15 = vmor %vm1066_vm0, %vm1067_vm12 }
 0xe15   : > { %v3881_v25 = vpop.eup %3880  ;;  %v1062_v1 = vmul.f32 %v3879_v22, %v1061_v32 }
 0xe16   : > { %v1983_v61 = vadd.f32 %v1982_v47, %v1981_v33  ;;  %v1990_v62 = vadd.f32 %v1989_v53, %v1988_v42  ;;  %v1071_v24 = vmul.f32 %v3881_v25, %v1059_v46  ;;  %vm1077_vm6 = vweird.f32 %v3881_v25 }
 0xe18   : > { %2007 = vmatmul.f32.vlgmr.msrb.gmra.mxu0 %v1983_v61  ;;  %2027 = vmatmul.f32.vlgmr.msrb.gmra.mxu1 %v1990_v62  ;;  %v1072_v37 = vmul.f32 %v3881_v25, %v1071_v24  ;;  %v1063_v61 = vmul.f32 0.5, %v1062_v1 }
 0xe1a   : > { %v1073_v62 = vmul.f32 0.5, %v1072_v37 }
 0xe95   : > { %v2008_v34 = vpop.f32.mrf.mxu0  ;;  %v2028_v27 = vpop.f32.mrf.mxu1 }
 0xe96   : > { %v2029_v31 = vadd.f32 %v2028_v27, %v2008_v34  ;;  %v1064_v34 = vsub.f32 1.5, %v1063_v61  ;;  %v1074_v27 = vsub.f32 1.5, %v1073_v62 }
 0xe98   : > { %3593 = vmatmul.msk.f32.vlgmr.msra.gmra.mxu2 %vm6435_vm1, %v2029_v31  ;;  %3594 = vmatmul.msk.f32.vlgmr.msra.gmra.mxu3 %vm6436_vm7, %v2029_v31  ;;  %v1065_v56 = vmul.f32 %v3879_v22, %v1064_v34  ;;  %v1075_v54 = vmul.f32 %v3881_v25, %v1074_v27  ;;  %vm1076_vm1 = vweird.f32 %v1059_v46  ;;  %v6439_v46 = vld [vmem:[#allocation19_spill] sm:$0xff] }
 0xe99   : > { %2285 = vmatpush.msra.mxu2 %v5328_v26  ;;  %2305 = vmatpush.msra.mxu3 %v5334_v14  ;;  %vm1078_vm7 = vmor %vm1076_vm1, %vm1077_vm6 }
 0xe9a   : > { %v1079_v37 = vsel %vm1078_vm7, %v3881_v25, %v1075_v54  ;;  %v1087_v54 = vld [vmem:[%s6236_s3 + $0x18] sm:$0xff] }
 0xe9b   : > { %2286 = vmatpush.msra.mxu2 %v5340_v6  ;;  %2306 = vmatpush.msra.mxu3 %v5346_v9  ;;  %v1081_v34 = vperm.slane %v1079_v37, 0 }
 0xe9d   : > { %2287 = vmatpush.msra.mxu2 %v5352_v5  ;;  %2307 = vmatpush.msra.mxu3 %v5358_v49 }
 0xe9f   : > { %2288 = vmatpush.msra.mxu2 %v5364_v10  ;;  %2308 = vmatpush.msra.mxu3 %v5370_v48 }
 0xea1   : > { %2289 = vmatpush.msra.mxu2 %v5376_v63  ;;  %2309 = vmatpush.msra.mxu3 %v5382_v50 }
 0xea3   : > { %2290 = vmatpush.msra.mxu2 %v5388_v17  ;;  %2310 = vmatpush.msra.mxu3 %v5394_v13 }
 0xea5   : > { %2291 = vmatpush.msra.mxu2 %v5400_v19  ;;  %2311 = vmatpush.msra.mxu3 %v5406_v52 }
 0xea7   : > { %2292 = vmatpush.msra.mxu2 %v5412_v43  ;;  %2312 = vmatpush.msra.mxu3 %v5418_v28 }
 0xea9   : > { %2293 = vmatpush.msra.mxu2 %v5424_v7  ;;  %2313 = vmatpush.msra.mxu3 %v5430_v35 }
 0xeab   : > { %2294 = vmatpush.msra.mxu2 %v5058_v23  ;;  %2314 = vmatpush.msra.mxu3 %v5064_v39 }
 0xead   : > { %2295 = vmatpush.msra.mxu2 %v5070_v41  ;;  %2315 = vmatpush.msra.mxu3 %v5076_v51 }
 0xeaf   : > { %2296 = vmatpush.msra.mxu2 %v5082_v12  ;;  %2316 = vmatpush.msra.mxu3 %v5088_v0 }
 0xeb1   : > { %2297 = vmatpush.msra.mxu2 %v5094_v57  ;;  %2317 = vmatpush.msra.mxu3 %v5100_v58 }
 0xeb3   : > { %2298 = vmatpush.msra.mxu2 %v5106_v60  ;;  %2318 = vmatpush.msra.mxu3 %v5112_v38 }
 0xeb5   : > { %2299 = vmatpush.msra.mxu2 %v5118_v15  ;;  %2319 = vmatpush.msra.mxu3 %v5124_v18 }
 0xeb7   : > { %2300 = vmatpush.msra.mxu2 %v5130_v29  ;;  %2320 = vmatpush.msra.mxu3 %v5136_v36 }
 0xf1b   : > { %v2051_v30 = vpop.f32.mrf.mxu2  ;;  %v2071_v20 = vpop.f32.mrf.mxu3 }
 0xf1c   : > { %v2074_v33 = vmul.f32 0.00390625, %v2051_v30  ;;  %v2075_v42 = vmul.f32 0.00390625, %v2071_v20  ;;  %v1069_v20 = vsel %vm1068_vm15, %v3879_v22, %v1065_v56  ;;  %v6440_v22 = vld [vmem:[#allocation20_spill] sm:$0xff] }
 0xf1d   : > { %v1080_v61 = vperm.slane %v1069_v20, 0  ;;  %v6442_v20 = vld [vmem:[#allocation22_spill] sm:$0xff] }
 0xf1e   : > { %v2076_v47 = vadd.f32 1e-05, %v2074_v33  ;;  %v2077_v53 = vadd.f32 1e-05, %v2075_v42 }
 0xf1f   : > { %v1084_v56 = vmul.f32 %v1080_v61, %v6440_v22  ;;  %v2113_v22 = vld [vmem:[%s6237_s4 + $0x78] sm:$0xff] }
 0xf20   : > { %3882 = vrsqrt.f32 %v2076_v47  ;;  %vm2084_vm14 = vweird.f32 %v2076_v47  ;;  %vm2094_vm8 = vweird.f32 %v2077_v53 }
 0xf21   : > { %3884 = vrsqrt.f32 %v2077_v53 }
 0xf26   : > { %v3883_v31 = vpop.eup %3882 }
 0xf27   : > { %v3885_v8 = vpop.eup %3884  ;;  %v2079_v44 = vmul.f32 %v3883_v31, %v2076_v47  ;;  %vm2085_vm11 = vweird.f32 %v3883_v31  ;;  %v6441_v47 = vld [vmem:[#allocation21_spill] sm:$0xff] }
 0xf28   : > { %v2089_v32 = vmul.f32 %v3885_v8, %v2077_v53  ;;  %vm2095_vm10 = vweird.f32 %v3885_v8  ;;  %vm2086_vm13 = vmor %vm2084_vm14, %vm2085_vm11  ;;  %v1085_v53 = vmul.f32 %v1081_v34, %v6442_v20 }
 0xf29   : > { %v2080_v24 = vmul.f32 %v3883_v31, %v2079_v44  ;;  %vm2096_vm12 = vmor %vm2094_vm8, %vm2095_vm10  ;;  %v1082_v44 = vmul.f32 %v1080_v61, %v6439_v46  ;;  %v2107_v61 = vld [vmem:[%s6236_s3 + $0x88] sm:$0xff] }
 0xf2a   : > { %v2090_v30 = vmul.f32 %v3885_v8, %v2089_v32 }
 0xf2b   : > { %v2081_v1 = vmul.f32 0.5, %v2080_v24  ;;  %v1086_v24 = vld [vmem:[%s6236_s3 + $0x10] sm:$0xff] }
 0xf2c   : > { %v2091_v33 = vmul.f32 0.5, %v2090_v30  ;;  %v1083_v30 = vmul.f32 %v1081_v34, %v6441_v47 }
 0xf2d   : > { %v2082_v42 = vsub.f32 1.5, %v2081_v1  ;;  %v1088_v1 = vld [vmem:[%s6236_s3 + $0x20] sm:$0xff] }
 0xf2e   : > { %v2092_v62 = vsub.f32 1.5, %v2091_v33  ;;  %v1091_v20 = vmul.f32 %v1087_v54, %v1083_v30 }
 0xf2f   : > { %v2083_v55 = vmul.f32 %v3883_v31, %v2082_v42  ;;  %v2105_v42 = vld [vmem:[%s6236_s3 + $0x78] sm:$0xff] }
 0xf30   : > { %v2093_v27 = vmul.f32 %v3885_v8, %v2092_v62  ;;  %v1089_v62 = vld [vmem:[%s6236_s3 + $0x28] sm:$0xff] }
 0xf31   : > { %v2087_v45 = vsel %vm2086_vm13, %v3883_v31, %v2083_v55  ;;  %v2104_v55 = vld [vmem:[%s6236_s3 + $0x70] sm:$0xff]  ;;  %v2106_v31 = vld [vmem:[%s6236_s3 + $0x80] sm:$0xff]  ;;  %vm6443_vm13 = vcmask 130048  }
 0xf32   : > { %v2098_v32 = vperm.slane %v2087_v45, 0  ;;  %v2097_v25 = vsel %vm2096_vm12, %v3885_v8, %v2093_v27  ;;  %vm6444_vm14 = vmmov %vm6443_vm13  ;;  %vm6468_vm12 = vcmask 392192  }
 0xf33   : > { %v2099_v8 = vperm.slane %v2097_v25, 0 }
 0xf34   : > { %v2100_v37 = vmul.f32 %v2098_v32, %v5307_v2  ;;  %v2102_v33 = vmul.f32 %v2098_v32, %v5309_v40  ;;  %v2112_v2 = vld [vmem:[%s6237_s4 + $0x70] sm:$0xff]  ;;  %v2114_v40 = vld [vmem:[%s6237_s4 + $0x80] sm:$0xff]  ;;  %v1090_v32 = vmul.f32 %v1086_v24, %v1082_v44  ;;  %v1097_v44 = vld [vmem:[%s6237_s4 + $0x28] sm:$0xff] }
 0xf35   : > { %v2101_v34 = vmul.f32 %v2099_v8, %v5311_v16  ;;  %v2103_v27 = vmul.f32 %v2099_v8, %v5313_v3  ;;  %v2115_v16 = vld [vmem:[%s6237_s4 + $0x88] sm:$0xff]  ;;  %v1092_v3 = vmul.f32 %v1088_v1, %v1084_v56  ;;  %v1093_v8 = vmul.f32 %v1089_v62, %v1085_v53 }
 0xf36   : > { %v2108_v45 = vmul.f32 %v2104_v55, %v2100_v37  ;;  %v2110_v46 = vmul.f32 %v2106_v31, %v2102_v33  ;;  %v1096_v55 = vld [vmem:[%s6237_s4 + $0x20] sm:$0xff]  ;;  %v1095_v31 = vld [vmem:[%s6237_s4 + $0x18] sm:$0xff]  ;;  %v1098_v53 = vadd.f32 %v1094_v11, %v1090_v32 }
 0xf37   : > { %v2109_v25 = vmul.f32 %v2105_v42, %v2101_v34  ;;  %v2111_v47 = vmul.f32 %v2107_v61, %v2103_v27  ;;  %v1100_v1 = vadd.f32 %v1096_v55, %v1092_v3  ;;  %v1099_v42 = vadd.f32 %v1095_v31, %v1091_v20 }
 0xf38   : > { %v2116_v56 = vadd.f32 %v2112_v2, %v2108_v45  ;;  %v2118_v24 = vadd.f32 %v2114_v40, %v2110_v46  ;;  %v1101_v61 = vadd.f32 %v1097_v44, %v1093_v8 }
 0xf39   : > { %v2117_v54 = vadd.f32 %v2113_v22, %v2109_v25  ;;  %v2119_v30 = vadd.f32 %v2115_v16, %v2111_v47 }
 0xf3a   : > { %v2120_v37 = vmax.f32 %v2116_v56, 0.0  ;;  %v2122_v33 = vmax.f32 %v2118_v24, 0.0 }
 0xf3b   : > { %v2121_v62 = vmax.f32 %v2117_v54, 0.0  ;;  %v2123_v34 = vmax.f32 %v2119_v30, 0.0 }
 0xf3c   : > { %v2124_v27 = vadd.f32 %v2120_v37, %v1098_v53  ;;  %v2126_v59 = vadd.f32 %v2122_v33, %v1100_v1  ;;  %v6449_v53 = vld [vmem:[#allocation2_spill] sm:$0xff] }
 0xf3d   : > { %v2125_v21 = vadd.f32 %v2121_v62, %v1099_v42  ;;  %v2127_v4 = vadd.f32 %v2123_v34, %v1101_v61  ;;  %vm6450_vm10 = vcmp.lt.s32.totalorder %v6449_v53, 127  ;;  %vm6456_vm0 = vcmp.lt.s32.totalorder %v6449_v53, 1 }
 0xf3e   : > { %v2128_v29 = vmax.f32 %v2124_v27, 0.0  ;;  %v2130_v36 = vmax.f32 %v2126_v59, 0.0  ;;  %v2134_v59 = vld [vmem:[%s6234_s1 + $0x24] sm:$0xf]  ;;  %vm6451_vm11 = vmmov %vm6450_vm10 }
 0xf3f   : > { %v2129_v15 = vmax.f32 %v2125_v21, 0.0  ;;  %v2131_v18 = vmax.f32 %v2127_v4, 0.0  ;;  %v2441_v4 = vld [vmem:[%s6235_s2 + $0x50] sm:$0xff]  ;;  %v2733_v21 = vld [vmem:[%s6235_s2 + $0x58] sm:$0xff]  ;;  %vm6452_vm8 = vmmov %vm6450_vm10 }
 0xf40   : > { %v3796_v2 = vpack.i.bf16 %v2130_v36, %v2128_v29  ;;  %v5505_v40 = vpack.c.bf16 %v2130_v36, %v2128_v29  ;;  %vm6453_vm6 = vmmov %vm6452_vm8 }
 0xf41   : > { %v3791_v45 = vpack.i.bf16 %v2131_v18, %v2129_v15  ;;  %v5507_v11 = vpack.c.bf16 %v2131_v18, %v2129_v15  ;;  %v3031_v15 = vld [vmem:[%s6235_s2 + $0x60] sm:$0xff]  ;;  %vm6457_vm15 = vmmov %vm6456_vm0 }
 0xf42   : > { %3797 = vrot.lane.b32.xlu1 %v3796_v2, %s4009_s13  ;;  %3787 = vrot.lane.b32.xlu2 %v3796_v2, %s4008_s12  ;;  %vm6458_vm1 = vmmov %vm6456_vm0 }
 0xf43   : > { %3792 = vrot.lane.b32.xlu0 %v3791_v45, %s4008_s12  ;;  %2164 = vmatpush.bf16.msra.mxu1 %v5507_v11  ;;  %vm6459_vm7 = vmmov %vm6456_vm0 }
 0xf44   : > { %2151 = vmatpush.bf16.msra.mxu0 %v5505_v40 }
 0xf46   : > { %3596 = vmatmul.msk.bf16.vlgmr.msra.gmra.mxu1 %vm6443_vm13, %v2134_v59 }
 0xf47   : > { %2202 = vmatpush.msrb.mxu1 %v5334_v14  ;;  %3595 = vmatmul.msk.bf16.vlgmr.msra.gmra.mxu0 %vm6444_vm14, %v2134_v59 }
 0xf48   : > { %2182 = vmatpush.msrb.mxu0 %v5328_v26 }
 0xf49   : > { %2203 = vmatpush.msrb.mxu1 %v5346_v9 }
 0xf4a   : > { %2183 = vmatpush.msrb.mxu0 %v5340_v6  ;;  %3802 = vrot.lane.b32.xlu2 %v3791_v45, %s4009_s13 }
 0xf4b   : > { %2204 = vmatpush.msrb.mxu1 %v5358_v49  ;;  %2444 = vperm.xlu0 %3734, %v2441_v4  }
 0xf4c   : > { %2184 = vmatpush.msrb.mxu0 %v5352_v5 }
 0xf4d   : > { %2205 = vmatpush.msrb.mxu1 %v5370_v48 }
 0xf4e   : > { %2185 = vmatpush.msrb.mxu0 %v5364_v10 }
 0xf4f   : > { %2206 = vmatpush.msrb.mxu1 %v5382_v50 }
 0xf50   : > { %2186 = vmatpush.msrb.mxu0 %v5376_v63 }
 0xf51   : > { %2207 = vmatpush.msrb.mxu1 %v5394_v13 }
 0xf52   : > { %2187 = vmatpush.msrb.mxu0 %v5388_v17 }
 0xf53   : > { %2208 = vmatpush.msrb.mxu1 %v5406_v52  ;;  %2736 = vperm.xlu0 %3734, %v2733_v21  }
 0xf54   : > { %2188 = vmatpush.msrb.mxu0 %v5400_v19 }
 0xf55   : > { %2209 = vmatpush.msrb.mxu1 %v5418_v28 }
 0xf56   : > { %2189 = vmatpush.msrb.mxu0 %v5412_v43 }
 0xf57   : > { %2210 = vmatpush.msrb.mxu1 %v5430_v35 }
 0xf58   : > { %2190 = vmatpush.msrb.mxu0 %v5424_v7 }
 0xf59   : > { %2211 = vmatpush.msrb.mxu1 %v5064_v39  ;;  %v6445_v39 = vld [vmem:[#allocation30_spill] sm:$0xff] }
 0xf5a   : > { %2191 = vmatpush.msrb.mxu0 %v5058_v23  ;;  %v6446_v23 = vld [vmem:[#allocation29_spill] sm:$0xff] }
 0xf5b   : > { %2212 = vmatpush.msrb.mxu1 %v5076_v51  ;;  %3034 = vperm.xlu0 %3734, %v3031_v15   ;;  %v6447_v51 = vld [vmem:[#allocation32_spill] sm:$0xff] }
 0xf5c   : > { %2192 = vmatpush.msrb.mxu0 %v5070_v41  ;;  %v6448_v41 = vld [vmem:[#allocation31_spill] sm:$0xff] }
 0xf5d   : > { %2213 = vmatpush.msrb.mxu1 %v5088_v0  ;;  %v5570_v0 = vld [vmem:[%s6239_s6 + $0x10] sm:$0xff] }
 0xf5e   : > { %2193 = vmatpush.msrb.mxu0 %v5082_v12  ;;  %v5564_v12 = vld [vmem:[%s6239_s6 + $0x18] sm:$0xff] }
 0xf5f   : > { %2214 = vmatpush.msrb.mxu1 %v5100_v58  ;;  %v5582_v58 = vld [vmem:[%s6239_s6] sm:$0xff] }
 0xf60   : > { %2194 = vmatpush.msrb.mxu0 %v5094_v57  ;;  %v5576_v57 = vld [vmem:[%s6239_s6 + $0x8] sm:$0xff] }
 0xf61   : > { %2215 = vmatpush.msrb.mxu1 %v5112_v38 }
 0xf62   : > { %2195 = vmatpush.msrb.mxu0 %v5106_v60  ;;  %v2139_v60 = vpop.permute.xlu1 %2138 }
 0xf63   : > { %2216 = vmatpush.msrb.mxu1 %v6445_v39  ;;  %v5675_v39 = vld [vmem:[%s6238_s5 + $0x20] sm:$0xff] }
 0xf64   : > { %2196 = vmatpush.msrb.mxu0 %v6446_v23 }
 0xf65   : > { %2217 = vmatpush.msrb.mxu1 %v6447_v51 }
 0xf66   : > { %2197 = vmatpush.msrb.mxu0 %v6448_v41  ;;  %v5693_v41 = vld [vmem:[%s6238_s5 + $0x98] sm:$0xff] }
 0xf67   : > { %2362 = vmatpush.msra.mxu1 %v5564_v12 }
 0xf68   : > { %2342 = vmatpush.msra.mxu0 %v5570_v0 }
 0xf69   : > { %2363 = vmatpush.msra.mxu1 %v5576_v57 }
 0xf6a   : > { %2343 = vmatpush.msra.mxu0 %v5582_v58 }
 0xf9c   : > { %v3788_v22 = vpop.permute.xlu2 %3787 }
 0xf9d   : > { %v3790_v44 = vunpack.i.h.bf16 %v3788_v22  ;;  %v3789_v56 = vunpack.i.l.bf16 %v3788_v22 }
 0xfa4   : > { %v3803_v2 = vpop.permute.xlu2 %3802 }
 0xfa5   : > { %v3805_v23 = vunpack.i.h.bf16 %v3803_v2  ;;  %v3804_v51 = vunpack.i.l.bf16 %v3803_v2 }
 0xfb4   : > { %v3798_v62 = vpop.permute.xlu1 %3797 }
 0xfb5   : > { %v3793_v16 = vpop.permute.xlu0 %3792  ;;  %v3800_v21 = vunpack.i.h.bf16 %v3798_v62  ;;  %v3799_v15 = vunpack.i.l.bf16 %v3798_v62 }
 0xfb6   : > { %v3795_v47 = vunpack.i.h.bf16 %v3793_v16  ;;  %v3794_v20 = vunpack.i.l.bf16 %v3793_v16 }
 0xfb8   : > { %v2430_v1 = vsel %vm6450_vm10, %v3794_v20, %v3789_v56  ;;  %v2431_v37 = vsel %vm6451_vm11, %v3795_v47, %v3790_v44  ;;  %v2428_v42 = vsel %vm6452_vm8, %v3789_v56, %v3794_v20  ;;  %v2429_v61 = vsel %vm6453_vm6, %v3790_v44, %v3795_v47 }
 0xfb9   : > { %v3609_v45 = vpack.c.bf16 %v2431_v37, %v2430_v1  ;;  %v3602_v4 = vpack.c.bf16 %v2429_v61, %v2428_v42 }
 0xfc3   : > { %v2166_v38 = vpop.f32.mrf.mxu1 }
 0xfc4   : > { %v2153_v18 = vpop.f32.mrf.mxu0  ;;  %v5585_v29 = vadd.f32 %v2166_v38, %v2139_v60  ;;  %v2413_v38 = vsel %vm6457_vm15, %v3800_v21, %v3805_v23 }
 0xfc5   : > { %v2154_v36 = vadd.f32 %v2153_v18, %v2139_v60  ;;  %v2412_v60 = vsel %vm6456_vm0, %v3799_v15, %v3804_v51  ;;  %v2414_v18 = vsel %vm6458_vm1, %v3804_v51, %v3799_v15  ;;  %v5669_v15 = vld [vmem:[%s6238_s5 + $0xa8] sm:$0xff]  ;;  %v5687_v51 = vld [vmem:[%s6238_s5 + $0x18] sm:$0xff] }
 0xfc6   : > { %v2176_v46 = vrot.slane %v5585_v29, 4  ;;  %v3612_v22 = vpack.c.bf16 %v2413_v38, %v2412_v60  ;;  %v5699_v60 = vld [vmem:[%s6238_s5 + $0x10] sm:$0xff] }
 0xfc7   : > { %v2170_v32 = vrot.slane %v2154_v36, 4  ;;  %v5705_v38 = vld [vmem:[%s6238_s5 + $0x90] sm:$0xff] }
 0xfc8   : > { %v2177_v3 = vadd.f32 %v2176_v46, %v5585_v29  ;;  %v2415_v46 = vsel %vm6459_vm7, %v3805_v23, %v3800_v21  ;;  %v5663_v21 = vld [vmem:[%s6238_s5 + $0x28] sm:$0xff]  ;;  %v5681_v23 = vld [vmem:[%s6238_s5 + $0xa0] sm:$0xff] }
 0xfc9   : > { %v2171_v25 = vadd.f32 %v2170_v32, %v2154_v36  ;;  %v3605_v16 = vpack.c.bf16 %v2415_v46, %v2414_v18  ;;  %v5711_v18 = vld [vmem:[%s6238_s5 + $0x8] sm:$0xff] }
 0xfca   : > { %v2178_v8 = vrot.slane %v2177_v3, 2  ;;  %v5717_v46 = vld [vmem:[%s6238_s5 + $0x88] sm:$0xff] }
 0xfcb   : > { %v2172_v55 = vrot.slane %v2171_v25, 2  ;;  %v2168_v31 = vpop.f32.mrf.mxu1 }
 0xfcc   : > { %v2179_v24 = vadd.f32 %v2178_v8, %v2177_v3  ;;  %v2155_v54 = vpop.f32.mrf.mxu0 }
 0xfcd   : > { %v2173_v30 = vadd.f32 %v2172_v55, %v2171_v25 }
 0xfce   : > { %v2180_v33 = vrot.slane %v2179_v24, 1 }
 0xfcf   : > { %v2174_v34 = vrot.slane %v2173_v30, 1 }
 0xfd0   : > { %v2181_v27 = vadd.f32 %v2180_v33, %v2179_v24 }
 0xfd1   : > { %v2175_v59 = vadd.f32 %v2174_v34, %v2173_v30 }
 0xfd2   : > { %2218 = vmatmul.f32.vlgmr.msrb.gmra.mxu1 %v2181_v27 }
 0xfd3   : > { %2198 = vmatmul.f32.vlgmr.msrb.gmra.mxu0 %v2175_v59  ;;  %3610 = vmatpush.bf16.msk.msrb.mxu1 %vm4974_vm2, %v3609_v45  ;;  %vm6462_vm2 = vmmov %vm6443_vm13 }
 0xfd4   : > { %3603 = vmatpush.bf16.msk.msrb.mxu0 %vm4959_vm4, %v3602_v4  ;;  %vm6463_vm4 = vmmov %vm6462_vm2  ;;  %v5657_v4 = vld [vmem:[%s6238_s5 + $0xb0] sm:$0xff] }
 0xfd5   : > { %vm6469_vm13 = vmmov %vm6468_vm12 }
 0xfd6   : > { %vm6470_vm14 = vmmov %vm6462_vm2 }
 0xfd7   : > { %2469 = vmatpush.bf16.msrb.mxu1 %v5507_v11  ;;  %vm6471_vm10 = vmmov %vm6462_vm2 }
 0xfd8   : > { %2456 = vmatpush.bf16.msrb.mxu0 %v5505_v40  ;;  %vm6472_vm11 = vmmov %vm6462_vm2 }
 0xfd9   : > { %vm6473_vm8 = vmmov %vm6462_vm2 }
 0xfdb   : > { %3613 = vmatpush.bf16.msk.msrb.mxu1 %vm5000_vm9, %v3612_v22  ;;  %v5723_v22 = vld [vmem:[%s6238_s5] sm:$0xff]  ;;  %vm6466_vm9 = vmmov %vm6462_vm2 }
 0xfdc   : > { %3606 = vmatpush.bf16.msk.msrb.mxu0 %vm4985_vm3, %v3605_v16  ;;  %v5729_v16 = vld [vmem:[%s6238_s5 + $0x80] sm:$0xff]  ;;  %vm6467_vm3 = vmmov %vm6462_vm2 }
0x104f   : > { %v2219_v25 = vpop.f32.mrf.mxu1 }
0x1050   : > { %v2199_v47 = vpop.f32.mrf.mxu0 }
0x1051   : > { %v2220_v20 = vadd.f32 %v2219_v25, %v2199_v47  ;;  %v2440_v47 = vld [vmem:[%s6234_s1 + $0x28] sm:$0xf] }
0x1053   : > { %3597 = vmatmul.msk.f32.vlgmr.msrb.gmra.mxu2 %vm6462_vm2, %v2220_v20  ;;  %3598 = vmatmul.msk.f32.vlgmr.msrb.gmra.mxu3 %vm6463_vm4, %v2220_v20  ;;  %vm6474_vm4 = vcmp.lt.s32.totalorder %v6449_v53, 127 }
0x1054   : > { %2545 = vmatpush.msrb.mxu2 %v5570_v0  ;;  %2565 = vmatpush.msrb.mxu3 %v5564_v12 }
0x1056   : > { %2546 = vmatpush.msrb.mxu2 %v5582_v58  ;;  %2566 = vmatpush.msrb.mxu3 %v5576_v57 }
0x10d6   : > { %v2242_v40 = vpop.f32.mrf.mxu2  ;;  %v2262_v11 = vpop.f32.mrf.mxu3 }
0x10d7   : > { %v2265_v8 = vmul.f32 0.0078125, %v2242_v40  ;;  %v2266_v55 = vmul.f32 0.0078125, %v2262_v11  ;;  %v2445_v11 = vpop.permute.xlu0 %2444 }
0x10d9   : > { %v2267_v31 = vperm.slane %v2265_v8, 0  ;;  %v2268_v44 = vperm.slane %v2266_v55, 0 }
0x10db   : > { %v5621_v56 = vsub.f32 %v2154_v36, %v2267_v31  ;;  %v5624_v24 = vsub.f32 %v5585_v29, %v2268_v44  ;;  %v5651_v29 = vld [vmem:[%s6238_s5 + $0x30] sm:$0xff] }
0x10dd   : > { %6464 = vst [vmem:[#allocation25_spill] sm:$0xff] %v5621_v56  ;;  %v2271_v54 = vmul.f32 %v5621_v56, %v5621_v56  ;;  %v2272_v30 = vmul.f32 %v5624_v24, %v5624_v24 }
0x10de   : > { %6465 = vst [vmem:[#allocation26_spill] sm:$0xff] %v5624_v24 }
0x10df   : > { %v2273_v1 = vrot.slane %v2271_v54, 4  ;;  %v2279_v37 = vrot.slane %v2272_v30, 4 }
0x10e1   : > { %v2274_v33 = vadd.f32 %v2273_v1, %v2271_v54  ;;  %v2280_v42 = vadd.f32 %v2279_v37, %v2272_v30 }
0x10e3   : > { %v2275_v61 = vrot.slane %v2274_v33, 2  ;;  %v2281_v62 = vrot.slane %v2280_v42, 2 }
0x10e5   : > { %v2276_v34 = vadd.f32 %v2275_v61, %v2274_v33  ;;  %v2282_v27 = vadd.f32 %v2281_v62, %v2280_v42 }
0x10e7   : > { %v2277_v2 = vrot.slane %v2276_v34, 1  ;;  %v2283_v36 = vrot.slane %v2282_v27, 1 }
0x10e9   : > { %v2278_v45 = vadd.f32 %v2277_v2, %v2276_v34  ;;  %v2284_v59 = vadd.f32 %v2283_v36, %v2282_v27 }
0x10eb   : > { %2301 = vmatmul.f32.vlgmr.msra.gmra.mxu2 %v2278_v45  ;;  %2321 = vmatmul.f32.vlgmr.msra.gmra.mxu3 %v2284_v59 }
0x10ec   : > { %2591 = vmatpush.msra.mxu2 %v5328_v26  ;;  %2611 = vmatpush.msra.mxu3 %v5334_v14 }
0x10ee   : > { %2592 = vmatpush.msra.mxu2 %v5340_v6  ;;  %2612 = vmatpush.msra.mxu3 %v5346_v9 }
0x10f0   : > { %2593 = vmatpush.msra.mxu2 %v5352_v5  ;;  %2613 = vmatpush.msra.mxu3 %v5358_v49 }
0x10f2   : > { %2594 = vmatpush.msra.mxu2 %v5364_v10  ;;  %2614 = vmatpush.msra.mxu3 %v5370_v48 }
0x10f4   : > { %2595 = vmatpush.msra.mxu2 %v5376_v63  ;;  %2615 = vmatpush.msra.mxu3 %v5382_v50 }
0x10f6   : > { %2596 = vmatpush.msra.mxu2 %v5388_v17  ;;  %2616 = vmatpush.msra.mxu3 %v5394_v13 }
0x10f8   : > { %2597 = vmatpush.msra.mxu2 %v5400_v19  ;;  %2617 = vmatpush.msra.mxu3 %v5406_v52 }
0x10fa   : > { %2598 = vmatpush.msra.mxu2 %v5412_v43  ;;  %2618 = vmatpush.msra.mxu3 %v5418_v28 }
0x10fc   : > { %2599 = vmatpush.msra.mxu2 %v5424_v7  ;;  %2619 = vmatpush.msra.mxu3 %v5430_v35 }
0x10fe   : > { %2600 = vmatpush.msra.mxu2 %v5651_v29  ;;  %2620 = vmatpush.msra.mxu3 %v5657_v4 }
0x1100   : > { %2601 = vmatpush.msra.mxu2 %v5663_v21  ;;  %2621 = vmatpush.msra.mxu3 %v5669_v15 }
0x1102   : > { %2602 = vmatpush.msra.mxu2 %v5675_v39  ;;  %2622 = vmatpush.msra.mxu3 %v5681_v23 }
0x1104   : > { %2603 = vmatpush.msra.mxu2 %v5687_v51  ;;  %2623 = vmatpush.msra.mxu3 %v5693_v41 }
0x1106   : > { %2604 = vmatpush.msra.mxu2 %v5699_v60  ;;  %2624 = vmatpush.msra.mxu3 %v5705_v38 }
0x1108   : > { %2605 = vmatpush.msra.mxu2 %v5711_v18  ;;  %2625 = vmatpush.msra.mxu3 %v5717_v46 }
0x110a   : > { %2606 = vmatpush.msra.mxu2 %v5723_v22  ;;  %2626 = vmatpush.msra.mxu3 %v5729_v16 }
0x116e   : > { %v2302_v32 = vpop.f32.mrf.mxu2  ;;  %v2322_v3 = vpop.f32.mrf.mxu3 }
0x116f   : > { %v2323_v25 = vadd.f32 %v2322_v3, %v2302_v32 }
0x1171   : > { %3599 = vmatmul.msk.f32.vlgmr.msra.gmra.mxu0 %vm6466_vm9, %v2323_v25  ;;  %3600 = vmatmul.msk.f32.vlgmr.msra.gmra.mxu1 %vm6467_vm3, %v2323_v25  ;;  %vm6475_vm9 = vmmov %vm6474_vm4 }
0x1172   : > { %2488 = vmatpush.msra.mxu0 %v5328_v26  ;;  %2508 = vmatpush.msra.mxu1 %v5334_v14 }
0x1174   : > { %2489 = vmatpush.msra.mxu0 %v5340_v6  ;;  %2509 = vmatpush.msra.mxu1 %v5346_v9 }
0x1176   : > { %2490 = vmatpush.msra.mxu0 %v5352_v5  ;;  %2510 = vmatpush.msra.mxu1 %v5358_v49 }
0x1178   : > { %2491 = vmatpush.msra.mxu0 %v5364_v10  ;;  %2511 = vmatpush.msra.mxu1 %v5370_v48 }
0x1179   : > { %3607 = vmatmul.msk.bf16.vlgmr.msrb.gmra.mxu0 %vm6468_vm12, %v2440_v47  ;;  %3614 = vmatmul.msk.bf16.vlgmr.msrb.gmra.mxu1 %vm6469_vm13, %v2440_v47  ;;  %vm6480_vm13 = vcmp.lt.s32.totalorder %v6449_v53, 1 }
0x117a   : > { %2492 = vmatpush.msra.mxu0 %v5376_v63  ;;  %2512 = vmatpush.msra.mxu1 %v5382_v50 }
0x117c   : > { %2493 = vmatpush.msra.mxu0 %v5388_v17  ;;  %2513 = vmatpush.msra.mxu1 %v5394_v13 }
0x117e   : > { %2494 = vmatpush.msra.mxu0 %v5400_v19  ;;  %2514 = vmatpush.msra.mxu1 %v5406_v52 }
0x1180   : > { %2495 = vmatpush.msra.mxu0 %v5412_v43  ;;  %2515 = vmatpush.msra.mxu1 %v5418_v28 }
0x1182   : > { %2496 = vmatpush.msra.mxu0 %v5424_v7  ;;  %2516 = vmatpush.msra.mxu1 %v5430_v35 }
0x1184   : > { %2497 = vmatpush.msra.mxu0 %v5651_v29  ;;  %2517 = vmatpush.msra.mxu1 %v5657_v4 }
0x1186   : > { %2498 = vmatpush.msra.mxu0 %v5663_v21  ;;  %2518 = vmatpush.msra.mxu1 %v5669_v15 }
0x1188   : > { %2499 = vmatpush.msra.mxu0 %v5675_v39  ;;  %2519 = vmatpush.msra.mxu1 %v5681_v23 }
0x118a   : > { %2500 = vmatpush.msra.mxu0 %v5687_v51  ;;  %2520 = vmatpush.msra.mxu1 %v5693_v41 }
0x118c   : > { %2501 = vmatpush.msra.mxu0 %v5699_v60  ;;  %2521 = vmatpush.msra.mxu1 %v5705_v38 }
0x118e   : > { %2502 = vmatpush.msra.mxu0 %v5711_v18  ;;  %2522 = vmatpush.msra.mxu1 %v5717_v46 }
0x1190   : > { %2503 = vmatpush.msra.mxu0 %v5723_v22  ;;  %2523 = vmatpush.msra.mxu1 %v5729_v16 }
0x1192   : > { %2648 = vmatpush.msrb.mxu0 %v5570_v0  ;;  %2668 = vmatpush.msrb.mxu1 %v5564_v12 }
0x1194   : > { %2649 = vmatpush.msrb.mxu0 %v5582_v58  ;;  %2669 = vmatpush.msrb.mxu1 %v5576_v57 }
0x11ee   : > { %v5775_v20 = vpop.f32.mrf.mxu0  ;;  %v5777_v40 = vpop.f32.mrf.mxu1 }
0x11f6   : > { %v2459_v8 = vpop.f32.mrf.mxu0  ;;  %v2472_v55 = vpop.f32.mrf.mxu1 }
0x11f7   : > { %v2460_v31 = vadd.f32 %v2459_v8, %v2445_v11  ;;  %v2473_v44 = vadd.f32 %v2472_v55, %v2445_v11 }
0x11f9   : > { %v2476_v54 = vrot.slane %v2460_v31, 4  ;;  %v2482_v30 = vrot.slane %v2473_v44, 4 }
0x11fb   : > { %v2477_v1 = vadd.f32 %v2476_v54, %v2460_v31  ;;  %v2483_v37 = vadd.f32 %v2482_v30, %v2473_v44 }
0x11fd   : > { %v2478_v33 = vrot.slane %v2477_v1, 2  ;;  %v2484_v42 = vrot.slane %v2483_v37, 2 }
0x11fe   : > { %v2461_v61 = vpop.f32.mrf.mxu0  ;;  %v2474_v62 = vpop.f32.mrf.mxu1 }
0x11ff   : > { %v2479_v34 = vadd.f32 %v2478_v33, %v2477_v1  ;;  %v2485_v27 = vadd.f32 %v2484_v42, %v2483_v37 }
0x1201   : > { %v2480_v2 = vrot.slane %v2479_v34, 1  ;;  %v2486_v36 = vrot.slane %v2485_v27, 1 }
0x1203   : > { %v2481_v45 = vadd.f32 %v2480_v2, %v2479_v34  ;;  %v2487_v59 = vadd.f32 %v2486_v36, %v2485_v27 }
0x1205   : > { %2504 = vmatmul.f32.vlgmr.msra.gmra.mxu0 %v2481_v45  ;;  %2524 = vmatmul.f32.vlgmr.msra.gmra.mxu1 %v2487_v59 }
0x1282   : > { %v2505_v32 = vpop.f32.mrf.mxu0  ;;  %v2525_v3 = vpop.f32.mrf.mxu1 }
0x1283   : > { %v2526_v25 = vadd.f32 %v2525_v3, %v2505_v32 }
0x1285   : > { %3615 = vmatmul.msk.f32.vlgmr.msrb.gmra.mxu2 %vm6470_vm14, %v2526_v25  ;;  %3616 = vmatmul.msk.f32.vlgmr.msrb.gmra.mxu3 %vm6471_vm10, %v2526_v25  ;;  %vm6481_vm14 = vmmov %vm6480_vm13  ;;  %vm6482_vm10 = vcmask 1043456  }
0x1286   : > { %2786 = vmatpush.msrb.mxu2 %v5328_v26  ;;  %2806 = vmatpush.msrb.mxu3 %v5334_v14 }
0x1288   : > { %2787 = vmatpush.msrb.mxu2 %v5340_v6  ;;  %2807 = vmatpush.msrb.mxu3 %v5346_v9 }
0x128a   : > { %2788 = vmatpush.msrb.mxu2 %v5352_v5  ;;  %2808 = vmatpush.msrb.mxu3 %v5358_v49 }
0x128c   : > { %2789 = vmatpush.msrb.mxu2 %v5364_v10  ;;  %2809 = vmatpush.msrb.mxu3 %v5370_v48 }
0x128e   : > { %2790 = vmatpush.msrb.mxu2 %v5376_v63  ;;  %2810 = vmatpush.msrb.mxu3 %v5382_v50 }
0x1290   : > { %2791 = vmatpush.msrb.mxu2 %v5388_v17  ;;  %2811 = vmatpush.msrb.mxu3 %v5394_v13 }
0x1292   : > { %2792 = vmatpush.msrb.mxu2 %v5400_v19  ;;  %2812 = vmatpush.msrb.mxu3 %v5406_v52 }
0x1294   : > { %2793 = vmatpush.msrb.mxu2 %v5412_v43  ;;  %2813 = vmatpush.msrb.mxu3 %v5418_v28 }
0x1296   : > { %2794 = vmatpush.msrb.mxu2 %v5424_v7  ;;  %2814 = vmatpush.msrb.mxu3 %v5430_v35 }
0x1298   : > { %2795 = vmatpush.msrb.mxu2 %v5651_v29  ;;  %2815 = vmatpush.msrb.mxu3 %v5657_v4 }
0x129a   : > { %2796 = vmatpush.msrb.mxu2 %v5663_v21  ;;  %2816 = vmatpush.msrb.mxu3 %v5669_v15 }
0x129c   : > { %2797 = vmatpush.msrb.mxu2 %v5675_v39  ;;  %2817 = vmatpush.msrb.mxu3 %v5681_v23 }
0x129e   : > { %2798 = vmatpush.msrb.mxu2 %v5687_v51  ;;  %2818 = vmatpush.msrb.mxu3 %v5693_v41 }
0x12a0   : > { %2799 = vmatpush.msrb.mxu2 %v5699_v60  ;;  %2819 = vmatpush.msrb.mxu3 %v5705_v38 }
0x12a2   : > { %2800 = vmatpush.msrb.mxu2 %v5711_v18  ;;  %2820 = vmatpush.msrb.mxu3 %v5717_v46 }
0x12a4   : > { %2801 = vmatpush.msrb.mxu2 %v5723_v22  ;;  %2821 = vmatpush.msrb.mxu3 %v5729_v16 }
0x1308   : > { %v2548_v26 = vpop.f32.mrf.mxu2  ;;  %v2568_v14 = vpop.f32.mrf.mxu3 }
0x1309   : > { %v2571_v6 = vmul.f32 0.0078125, %v2548_v26  ;;  %v2572_v9 = vmul.f32 0.0078125, %v2568_v14 }
0x130b   : > { %v2573_v5 = vperm.slane %v2571_v6, 0  ;;  %v2574_v49 = vperm.slane %v2572_v9, 0 }
0x130d   : > { %v2575_v10 = vsub.f32 %v2460_v31, %v2573_v5  ;;  %v2576_v48 = vsub.f32 %v2473_v44, %v2574_v49 }
0x130f   : > { %v2577_v63 = vmul.f32 %v2575_v10, %v2575_v10  ;;  %v2578_v50 = vmul.f32 %v2576_v48, %v2576_v48 }
0x1311   : > { %v2579_v17 = vrot.slane %v2577_v63, 4  ;;  %v2585_v13 = vrot.slane %v2578_v50, 4 }
0x1313   : > { %v2580_v19 = vadd.f32 %v2579_v17, %v2577_v63  ;;  %v2586_v52 = vadd.f32 %v2585_v13, %v2578_v50  ;;  %v2702_v63 = vld [vmem:[%s6236_s3 + $0xa0] sm:$0xff]  ;;  %v2703_v17 = vld [vmem:[%s6236_s3 + $0xa8] sm:$0xff] }
0x1315   : > { %v2581_v43 = vrot.slane %v2580_v19, 2  ;;  %v2587_v28 = vrot.slane %v2586_v52, 2 }
0x1317   : > { %v2582_v7 = vadd.f32 %v2581_v43, %v2580_v19  ;;  %v2588_v35 = vadd.f32 %v2587_v28, %v2586_v52  ;;  %v2706_v19 = vld [vmem:[%s6237_s4 + $0xa0] sm:$0xff]  ;;  %v2707_v43 = vld [vmem:[%s6237_s4 + $0xa8] sm:$0xff] }
0x1319   : > { %v2583_v47 = vrot.slane %v2582_v7, 1  ;;  %v2589_v11 = vrot.slane %v2588_v35, 1 }
0x131b   : > { %v2584_v8 = vadd.f32 %v2583_v47, %v2582_v7  ;;  %v2590_v55 = vadd.f32 %v2589_v11, %v2588_v35 }
0x131d   : > { %2607 = vmatmul.f32.vlgmr.msra.gmra.mxu2 %v2584_v8  ;;  %2627 = vmatmul.f32.vlgmr.msra.gmra.mxu3 %v2590_v55 }
0x131e   : > { %2946 = vmatpush.msra.mxu2 %v5570_v0  ;;  %2966 = vmatpush.msra.mxu3 %v5564_v12 }
0x1320   : > { %2947 = vmatpush.msra.mxu2 %v5582_v58  ;;  %2967 = vmatpush.msra.mxu3 %v5576_v57 }
0x13a0   : > { %v2608_v31 = vpop.f32.mrf.mxu2  ;;  %v2628_v44 = vpop.f32.mrf.mxu3 }
0x13a1   : > { %v2629_v54 = vadd.f32 %v2628_v44, %v2608_v31 }
0x13a3   : > { %3617 = vmatmul.msk.f32.vlgmr.msrb.gmra.mxu0 %vm6472_vm11, %v2629_v54  ;;  %3618 = vmatmul.msk.f32.vlgmr.msrb.gmra.mxu1 %vm6473_vm8, %v2629_v54  ;;  %vm6483_vm11 = vmmov %vm6482_vm10 }
0x1420   : > { %v2651_v30 = vpop.f32.mrf.mxu0  ;;  %v2671_v1 = vpop.f32.mrf.mxu1 }
0x1421   : > { %v2674_v37 = vmul.f32 0.0078125, %v2651_v30  ;;  %v2675_v33 = vmul.f32 0.0078125, %v2671_v1 }
0x1423   : > { %v2676_v42 = vadd.f32 1e-05, %v2674_v37  ;;  %v2677_v61 = vadd.f32 1e-05, %v2675_v33  ;;  %v6476_v37 = vld [vmem:[#allocation3_spill] sm:$0xff] }
0x1424   : > { %vm6477_vm3 = vcmp.lt.s32.totalorder %v6476_v37, 15 }
0x1425   : > { %3886 = vrsqrt.f32 %v2676_v42  ;;  %vm2684_vm15 = vweird.f32 %v2676_v42  ;;  %vm2694_vm7 = vweird.f32 %v2677_v61 }
0x1426   : > { %3888 = vrsqrt.f32 %v2677_v61 }
0x142b   : > { %v3887_v62 = vpop.eup %3886 }
0x142c   : > { %v3889_v34 = vpop.eup %3888  ;;  %v2679_v27 = vmul.f32 %v3887_v62, %v2676_v42  ;;  %vm2685_vm6 = vweird.f32 %v3887_v62  ;;  %v6478_v42 = vld [vmem:[#allocation4_spill] sm:$0xff] }
0x142d   : > { %v2689_v2 = vmul.f32 %v3889_v34, %v2677_v61  ;;  %vm2695_vm0 = vweird.f32 %v3889_v34  ;;  %vm2686_vm1 = vmor %vm2684_vm15, %vm2685_vm6  ;;  %vm6479_vm12 = vcmp.lt.s32.totalorder %v6478_v42, 15  ;;  %vm6487_vm6 = vcmask 195584  }
0x142e   : > { %v2680_v36 = vmul.f32 %v3887_v62, %v2679_v27  ;;  %vm2696_vm2 = vmor %vm2694_vm7, %vm2695_vm0  ;;  %vm6489_vm15 = vcmask 130048  }
0x142f   : > { %v2690_v45 = vmul.f32 %v3889_v34, %v2689_v2  ;;  %vm6488_vm0 = vmmov %vm6487_vm6 }
0x1430   : > { %v2681_v59 = vmul.f32 0.5, %v2680_v36 }
0x1431   : > { %v2691_v32 = vmul.f32 0.5, %v2690_v45 }
0x1432   : > { %v2682_v3 = vsub.f32 1.5, %v2681_v59 }
0x1433   : > { %v2692_v25 = vsub.f32 1.5, %v2691_v32 }
0x1434   : > { %v2683_v26 = vmul.f32 %v3887_v62, %v2682_v3 }
0x1435   : > { %v2693_v14 = vmul.f32 %v3889_v34, %v2692_v25  ;;  %v6485_v25 = vld [vmem:[#allocation18_spill] sm:$0xff] }
0x1436   : > { %v2687_v6 = vsel %vm2686_vm1, %v3887_v62, %v2683_v26  ;;  %vm6486_vm8 = vnez %v6485_v25  ;;  %v2732_v26 = vld [vmem:[%s6234_s1 + $0x2c] sm:$0xf]  ;;  %vm6490_vm1 = vmmov %vm6489_vm15 }
0x1437   : > { %v2698_v9 = vperm.slane %v2687_v6, 0  ;;  %v2697_v5 = vsel %vm2696_vm2, %v3889_v34, %v2693_v14  ;;  %v5863_v14 = vld [vmem:[%s6238_s5 + $0x78] sm:$0xff]  ;;  %vm6491_vm7 = vmmov %vm6490_vm1 }
0x1438   : > { %v2699_v49 = vperm.slane %v2697_v5, 0  ;;  %v5869_v6 = vld [vmem:[%s6238_s5 + $0xf8] sm:$0xff]  ;;  %v5881_v5 = vld [vmem:[%s6238_s5 + $0xf0] sm:$0xff]  ;;  %vm6492_vm2 = vmmov %vm6490_vm1 }
0x1439   : > { %v2700_v50 = vmul.f32 %v2698_v9, %v2575_v10  ;;  %v5875_v9 = vld [vmem:[%s6238_s5 + $0x70] sm:$0xff] }
0x143a   : > { %v2701_v13 = vmul.f32 %v2699_v49, %v2576_v48  ;;  %v5887_v49 = vld [vmem:[%s6238_s5 + $0x68] sm:$0xff] }
0x143b   : > { %v2704_v52 = vmul.f32 %v2702_v63, %v2700_v50  ;;  %v5893_v63 = vld [vmem:[%s6238_s5 + $0xe8] sm:$0xff]  ;;  %v5899_v50 = vld [vmem:[%s6238_s5 + $0x60] sm:$0xff] }
0x143c   : > { %v2705_v28 = vmul.f32 %v2703_v17, %v2701_v13  ;;  %v5905_v17 = vld [vmem:[%s6238_s5 + $0xe0] sm:$0xff]  ;;  %v5911_v13 = vld [vmem:[%s6238_s5 + $0x58] sm:$0xff] }
0x143d   : > { %v2708_v7 = vadd.f32 %v2706_v19, %v2704_v52  ;;  %v5917_v19 = vld [vmem:[%s6238_s5 + $0xd8] sm:$0xff]  ;;  %v5923_v52 = vld [vmem:[%s6238_s5 + $0x50] sm:$0xff] }
0x143e   : > { %v2709_v35 = vadd.f32 %v2707_v43, %v2705_v28  ;;  %v5929_v43 = vld [vmem:[%s6238_s5 + $0xd0] sm:$0xff]  ;;  %v5935_v28 = vld [vmem:[%s6238_s5 + $0x48] sm:$0xff] }
0x143f   : > { %v2710_v47 = vmax.f32 %v2708_v7, 0.0  ;;  %v5941_v7 = vld [vmem:[%s6238_s5 + $0xc8] sm:$0xff] }
0x1440   : > { %v2711_v11 = vmax.f32 %v2709_v35, 0.0  ;;  %v5947_v35 = vld [vmem:[%s6238_s5 + $0x40] sm:$0xff] }
0x1442   : > { %v3811_v10 = vpack.i.bf16 %v2711_v11, %v2710_v47 }
0x1444   : > { %3812 = vrot.lane.b32.xlu2 %v3811_v10, %s4009_s13  ;;  %3807 = vrot.lane.b32.xlu1 %v3811_v10, %s4008_s12  ;;  %v5965_v10 = vld [vmem:[%s6238_s5 + $0xb8] sm:$0xff] }
0x149e   : > { %v3813_v48 = vpop.permute.xlu2 %3812 }
0x149f   : > { %v3815_v44 = vunpack.i.h.bf16 %v3813_v48  ;;  %v3814_v54 = vunpack.i.l.bf16 %v3813_v48  ;;  %v2737_v48 = vpop.permute.xlu0 %2736 }
0x14a1   : > { %v2716_v27 = vsel %vm6480_vm13, %v3814_v54, %v3815_v44  ;;  %v2717_v2 = vsel %vm6481_vm14, %v3815_v44, %v3814_v54 }
0x14a2   : > { %v3620_v59 = vpack.c.bf16 %v2710_v47, %v2717_v2  ;;  %v3624_v32 = vpack.c.bf16 %v2711_v11, %v2716_v27  ;;  %v5953_v47 = vld [vmem:[%s6238_s5 + $0xc0] sm:$0xff]  ;;  %v5959_v11 = vld [vmem:[%s6238_s5 + $0x38] sm:$0xff] }
0x14b6   : > { %v3808_v8 = vpop.permute.xlu1 %3807 }
0x14b7   : > { %v3810_v55 = vunpack.i.h.bf16 %v3808_v8  ;;  %v3809_v31 = vunpack.i.l.bf16 %v3808_v8 }
0x14b9   : > { %v2724_v30 = vsel %vm6474_vm4, %v3809_v31, %v3810_v55  ;;  %v2725_v1 = vsel %vm6475_vm9, %v3810_v55, %v3809_v31 }
0x14ba   : > { %v2726_v33 = vsel %vm6477_vm3, %v2724_v30, 0.0  ;;  %v2727_v61 = vsel %vm6479_vm12, %v2725_v1, 0.0 }
0x14bb   : > { %v2730_v62 = vpack.c.bf16 %v2726_v33, %v2726_v33  ;;  %v2731_v34 = vpack.c.bf16 %v2727_v61, %v2727_v61 }
0x14bd   : > { %v2743_v36 = vsel %vm6482_vm10, %v2730_v62, 0  ;;  %v2746_v45 = vsel %vm6483_vm11, %v2731_v34, 0  ;;  %vm6493_vm10 = vcmp.lt.s32.totalorder %v6449_v53, 127 }
0x14be   : > { %2754 = vmatpush.bf16.msra.mxu0 %v2743_v36  ;;  %2767 = vmatpush.bf16.msra.mxu1 %v2746_v45  ;;  %vm6494_vm11 = vmmov %vm6493_vm10 }
0x14c2   : > { %3621 = vmatpush.bf16.msk.msra.mxu0 %vm4638_vm5, %v3620_v59  ;;  %3625 = vmatpush.bf16.msk.msra.mxu1 %vm6486_vm8, %v3624_v32 }
0x14c5   : > { %3622 = vmatmul.msk.bf16.vlgmr.msra.gmra.mxu0 %vm6487_vm6, %v2732_v26  ;;  %3626 = vmatmul.msk.bf16.vlgmr.msra.gmra.mxu1 %vm6488_vm0, %v2732_v26  ;;  %vm6495_vm6 = vcmp.lt.s32.totalorder %v6476_v37, 15  ;;  %vm6496_vm0 = vcmp.lt.s32.totalorder %v6478_v42, 15 }
0x14c6   : > { %2843 = vmatpush.msrb.mxu0 %v5570_v0  ;;  %2863 = vmatpush.msrb.mxu1 %v5564_v12 }
0x14c8   : > { %2844 = vmatpush.msrb.mxu0 %v5582_v58  ;;  %2864 = vmatpush.msrb.mxu1 %v5576_v57 }
0x14ca   : > { %2889 = vmatpush.msra.mxu0 %v5863_v14  ;;  %2909 = vmatpush.msra.mxu1 %v5869_v6 }
0x14cc   : > { %2890 = vmatpush.msra.mxu0 %v5875_v9  ;;  %2910 = vmatpush.msra.mxu1 %v5881_v5 }
0x14ce   : > { %2891 = vmatpush.msra.mxu0 %v5887_v49  ;;  %2911 = vmatpush.msra.mxu1 %v5893_v63 }
0x14d0   : > { %2892 = vmatpush.msra.mxu0 %v5899_v50  ;;  %2912 = vmatpush.msra.mxu1 %v5905_v17 }
0x14d2   : > { %2893 = vmatpush.msra.mxu0 %v5911_v13  ;;  %2913 = vmatpush.msra.mxu1 %v5917_v19 }
0x14d4   : > { %2894 = vmatpush.msra.mxu0 %v5923_v52  ;;  %2914 = vmatpush.msra.mxu1 %v5929_v43 }
0x14d6   : > { %2895 = vmatpush.msra.mxu0 %v5935_v28  ;;  %2915 = vmatpush.msra.mxu1 %v5941_v7 }
0x14d8   : > { %2896 = vmatpush.msra.mxu0 %v5947_v35  ;;  %2916 = vmatpush.msra.mxu1 %v5953_v47 }
0x14da   : > { %2897 = vmatpush.msra.mxu0 %v5959_v11  ;;  %2917 = vmatpush.msra.mxu1 %v5965_v10 }
0x14dc   : > { %2898 = vmatpush.msra.mxu0 %v5651_v29  ;;  %2918 = vmatpush.msra.mxu1 %v5657_v4 }
0x14de   : > { %2899 = vmatpush.msra.mxu0 %v5663_v21  ;;  %2919 = vmatpush.msra.mxu1 %v5669_v15 }
0x14e0   : > { %2900 = vmatpush.msra.mxu0 %v5675_v39  ;;  %2920 = vmatpush.msra.mxu1 %v5681_v23 }
0x14e2   : > { %2901 = vmatpush.msra.mxu0 %v5687_v51  ;;  %2921 = vmatpush.msra.mxu1 %v5693_v41 }
0x14e4   : > { %2902 = vmatpush.msra.mxu0 %v5699_v60  ;;  %2922 = vmatpush.msra.mxu1 %v5705_v38 }
0x14e6   : > { %2903 = vmatpush.msra.mxu0 %v5711_v18  ;;  %2923 = vmatpush.msra.mxu1 %v5717_v46 }
0x14e8   : > { %2904 = vmatpush.msra.mxu0 %v5723_v22  ;;  %2924 = vmatpush.msra.mxu1 %v5729_v16 }
0x1542   : > { %v2757_v8 = vpop.f32.mrf.mxu0  ;;  %v2770_v55 = vpop.f32.mrf.mxu1 }
0x1543   : > { %v2758_v31 = vadd.f32 %v2757_v8, %v2737_v48  ;;  %v2771_v44 = vadd.f32 %v2770_v55, %v2737_v48 }
0x1545   : > { %v2774_v54 = vrot.slane %v2758_v31, 4  ;;  %v2780_v30 = vrot.slane %v2771_v44, 4 }
0x1547   : > { %v2775_v1 = vadd.f32 %v2774_v54, %v2758_v31  ;;  %v2781_v33 = vadd.f32 %v2780_v30, %v2771_v44 }
0x1549   : > { %v2776_v61 = vrot.slane %v2775_v1, 2  ;;  %v2782_v62 = vrot.slane %v2781_v33, 2 }
0x154a   : > { %v2759_v34 = vpop.f32.mrf.mxu0  ;;  %v2772_v27 = vpop.f32.mrf.mxu1 }
0x154b   : > { %v2777_v2 = vadd.f32 %v2776_v61, %v2775_v1  ;;  %v2783_v36 = vadd.f32 %v2782_v62, %v2781_v33 }
0x154d   : > { %v2778_v45 = vrot.slane %v2777_v2, 1  ;;  %v2784_v59 = vrot.slane %v2783_v36, 1 }
0x154f   : > { %v2779_v32 = vadd.f32 %v2778_v45, %v2777_v2  ;;  %v2785_v26 = vadd.f32 %v2784_v59, %v2783_v36 }
0x1551   : > { %2802 = vmatmul.f32.vlgmr.msrb.gmra.mxu2 %v2779_v32  ;;  %2822 = vmatmul.f32.vlgmr.msrb.gmra.mxu3 %v2785_v26 }
0x15d4   : > { %v2803_v24 = vpop.f32.mrf.mxu2  ;;  %v2823_v56 = vpop.f32.mrf.mxu3 }
0x15d5   : > { %v2824_v8 = vadd.f32 %v2823_v56, %v2803_v24 }
0x15d7   : > { %3627 = vmatmul.msk.f32.vlgmr.msrb.gmra.mxu0 %vm6489_vm15, %v2824_v8  ;;  %3628 = vmatmul.msk.f32.vlgmr.msrb.gmra.mxu1 %vm6490_vm1, %v2824_v8  ;;  %vm6497_vm15 = vcmp.lt.s32.totalorder %v6449_v53, 1 }
0x15d8   : > { %3141 = vmatpush.msrb.mxu0 %v5570_v0  ;;  %3161 = vmatpush.msrb.mxu1 %v5564_v12  ;;  %vm6498_vm1 = vmmov %vm6497_vm15 }
0x15da   : > { %3142 = vmatpush.msrb.mxu0 %v5582_v58  ;;  %3162 = vmatpush.msrb.mxu1 %v5576_v57 }
0x1654   : > { %v2846_v48 = vpop.f32.mrf.mxu0  ;;  %v2866_v55 = vpop.f32.mrf.mxu1 }
0x1655   : > { %v2869_v54 = vmul.f32 0.0078125, %v2846_v48  ;;  %v2870_v30 = vmul.f32 0.0078125, %v2866_v55 }
0x1657   : > { %v2871_v1 = vperm.slane %v2869_v54, 0  ;;  %v2872_v33 = vperm.slane %v2870_v30, 0 }
0x1659   : > { %v5988_v61 = vsub.f32 %v2758_v31, %v2871_v1  ;;  %v5990_v56 = vsub.f32 %v2771_v44, %v2872_v33 }
0x165b   : > { %v2875_v24 = vmul.f32 %v5988_v61, %v5988_v61  ;;  %v2876_v12 = vmul.f32 %v5990_v56, %v5990_v56 }
0x165d   : > { %v2877_v0 = vrot.slane %v2875_v24, 4  ;;  %v2883_v58 = vrot.slane %v2876_v12, 4 }
0x165f   : > { %v2878_v62 = vadd.f32 %v2877_v0, %v2875_v24  ;;  %v2884_v57 = vadd.f32 %v2883_v58, %v2876_v12 }
0x1661   : > { %v2879_v34 = vrot.slane %v2878_v62, 2  ;;  %v2885_v27 = vrot.slane %v2884_v57, 2 }
0x1663   : > { %v2880_v2 = vadd.f32 %v2879_v34, %v2878_v62  ;;  %v2886_v36 = vadd.f32 %v2885_v27, %v2884_v57 }
0x1665   : > { %v2881_v45 = vrot.slane %v2880_v2, 1  ;;  %v2887_v59 = vrot.slane %v2886_v36, 1 }
0x1667   : > { %v2882_v31 = vadd.f32 %v2881_v45, %v2880_v2  ;;  %v2888_v32 = vadd.f32 %v2887_v59, %v2886_v36 }
0x1669   : > { %2905 = vmatmul.f32.vlgmr.msra.gmra.mxu0 %v2882_v31  ;;  %2925 = vmatmul.f32.vlgmr.msra.gmra.mxu1 %v2888_v32 }
0x166a   : > { %3187 = vmatpush.msra.mxu0 %v5863_v14  ;;  %3207 = vmatpush.msra.mxu1 %v5869_v6 }
0x166c   : > { %3188 = vmatpush.msra.mxu0 %v5875_v9  ;;  %3208 = vmatpush.msra.mxu1 %v5881_v5 }
0x166e   : > { %3189 = vmatpush.msra.mxu0 %v5887_v49  ;;  %3209 = vmatpush.msra.mxu1 %v5893_v63 }
0x1670   : > { %3190 = vmatpush.msra.mxu0 %v5899_v50  ;;  %3210 = vmatpush.msra.mxu1 %v5905_v17 }
0x1672   : > { %3191 = vmatpush.msra.mxu0 %v5911_v13  ;;  %3211 = vmatpush.msra.mxu1 %v5917_v19 }
0x1674   : > { %3192 = vmatpush.msra.mxu0 %v5923_v52  ;;  %3212 = vmatpush.msra.mxu1 %v5929_v43 }
0x1676   : > { %3193 = vmatpush.msra.mxu0 %v5935_v28  ;;  %3213 = vmatpush.msra.mxu1 %v5941_v7 }
0x1678   : > { %3194 = vmatpush.msra.mxu0 %v5947_v35  ;;  %3214 = vmatpush.msra.mxu1 %v5953_v47 }
0x167a   : > { %3195 = vmatpush.msra.mxu0 %v5959_v11  ;;  %3215 = vmatpush.msra.mxu1 %v5965_v10 }
0x167c   : > { %3196 = vmatpush.msra.mxu0 %v5651_v29  ;;  %3216 = vmatpush.msra.mxu1 %v5657_v4 }
0x167e   : > { %3197 = vmatpush.msra.mxu0 %v5663_v21  ;;  %3217 = vmatpush.msra.mxu1 %v5669_v15 }
0x1680   : > { %3198 = vmatpush.msra.mxu0 %v5675_v39  ;;  %3218 = vmatpush.msra.mxu1 %v5681_v23 }
0x1682   : > { %3199 = vmatpush.msra.mxu0 %v5687_v51  ;;  %3219 = vmatpush.msra.mxu1 %v5693_v41 }
0x1684   : > { %3200 = vmatpush.msra.mxu0 %v5699_v60  ;;  %3220 = vmatpush.msra.mxu1 %v5705_v38 }
0x1686   : > { %3201 = vmatpush.msra.mxu0 %v5711_v18  ;;  %3221 = vmatpush.msra.mxu1 %v5717_v46 }
0x1688   : > { %3202 = vmatpush.msra.mxu0 %v5723_v22  ;;  %3222 = vmatpush.msra.mxu1 %v5729_v16 }
0x16e6   : > { %v2906_v44 = vpop.f32.mrf.mxu0  ;;  %v2926_v26 = vpop.f32.mrf.mxu1 }
0x16e7   : > { %v2927_v8 = vadd.f32 %v2926_v26, %v2906_v44 }
0x16e9   : > { %3629 = vmatmul.msk.f32.vlgmr.msra.gmra.mxu2 %vm6491_vm7, %v2927_v8  ;;  %3630 = vmatmul.msk.f32.vlgmr.msra.gmra.mxu3 %vm6492_vm2, %v2927_v8  ;;  %v3000_v8 = vld [vmem:[%s6236_s3 + $0xb0] sm:$0xff]  ;;  %vm6499_vm7 = vcmask 1043456  }
0x16ea   : > { %vm6500_vm2 = vmmov %vm6499_vm7 }
0x176c   : > { %v2949_v48 = vpop.f32.mrf.mxu2  ;;  %v2969_v55 = vpop.f32.mrf.mxu3 }
0x176d   : > { %v2972_v54 = vmul.f32 0.0078125, %v2949_v48  ;;  %v2973_v30 = vmul.f32 0.0078125, %v2969_v55  ;;  %v3001_v55 = vld [vmem:[%s6236_s3 + $0xb8] sm:$0xff] }
0x176f   : > { %v2974_v1 = vadd.f32 1e-05, %v2972_v54  ;;  %v2975_v33 = vadd.f32 1e-05, %v2973_v30  ;;  %v3004_v30 = vld [vmem:[%s6237_s4 + $0xb0] sm:$0xff] }
0x1771   : > { %3890 = vrsqrt.f32 %v2974_v1  ;;  %vm2982_vm3 = vweird.f32 %v2974_v1  ;;  %vm2992_vm13 = vweird.f32 %v2975_v33 }
0x1772   : > { %3892 = vrsqrt.f32 %v2975_v33 }
0x1777   : > { %v3891_v24 = vpop.eup %3890 }
0x1778   : > { %v3893_v12 = vpop.eup %3892  ;;  %v2977_v0 = vmul.f32 %v3891_v24, %v2974_v1  ;;  %vm2983_vm4 = vweird.f32 %v3891_v24 }
0x1779   : > { %v2987_v58 = vmul.f32 %v3893_v12, %v2975_v33  ;;  %vm2993_vm9 = vweird.f32 %v3893_v12  ;;  %vm2984_vm12 = vmor %vm2982_vm3, %vm2983_vm4  ;;  %v3005_v33 = vld [vmem:[%s6237_s4 + $0xb8] sm:$0xff]  ;;  %vm6501_vm4 = vcmask 195584  }
0x177a   : > { %v2978_v62 = vmul.f32 %v3891_v24, %v2977_v0  ;;  %vm2994_vm14 = vmor %vm2992_vm13, %vm2993_vm9 }
0x177b   : > { %v2988_v57 = vmul.f32 %v3893_v12, %v2987_v58  ;;  %vm6502_vm9 = vmmov %vm6501_vm4 }
0x177c   : > { %v2979_v34 = vmul.f32 0.5, %v2978_v62 }
0x177d   : > { %v2989_v27 = vmul.f32 0.5, %v2988_v57 }
0x177e   : > { %v2980_v2 = vsub.f32 1.5, %v2979_v34 }
0x177f   : > { %v2990_v36 = vsub.f32 1.5, %v2989_v27 }
0x1780   : > { %v2981_v45 = vmul.f32 %v3891_v24, %v2980_v2 }
0x1781   : > { %v2991_v59 = vmul.f32 %v3893_v12, %v2990_v36 }
0x1782   : > { %v2985_v31 = vsel %vm2984_vm12, %v3891_v24, %v2981_v45 }
0x1783   : > { %v2996_v32 = vperm.slane %v2985_v31, 0  ;;  %v2995_v44 = vsel %vm2994_vm14, %v3893_v12, %v2991_v59 }
0x1784   : > { %v2997_v26 = vperm.slane %v2995_v44, 0 }
0x1785   : > { %v2998_v48 = vmul.f32 %v2996_v32, %v5988_v61 }
0x1786   : > { %v2999_v54 = vmul.f32 %v2997_v26, %v5990_v56 }
0x1787   : > { %v3002_v1 = vmul.f32 %v3000_v8, %v2998_v48 }
0x1788   : > { %v3003_v24 = vmul.f32 %v3001_v55, %v2999_v54 }
0x1789   : > { %v3006_v12 = vadd.f32 %v3004_v30, %v3002_v1 }
0x178a   : > { %v3007_v0 = vadd.f32 %v3005_v33, %v3003_v24  ;;  %v3030_v33 = vld [vmem:[%s6234_s1 + $0x30] sm:$0xf] }
0x178b   : > { %v3008_v58 = vmax.f32 %v3006_v12, 0.0 }
0x178c   : > { %v3009_v61 = vmax.f32 %v3007_v0, 0.0 }
0x178e   : > { %v3821_v62 = vpack.i.bf16 %v3009_v61, %v3008_v58 }
0x1790   : > { %3822 = vrot.lane.b32.xlu2 %v3821_v62, %s4009_s13  ;;  %3817 = vrot.lane.b32.xlu1 %v3821_v62, %s4008_s12 }
0x17ea   : > { %v3823_v56 = vpop.permute.xlu2 %3822 }
0x17eb   : > { %v3825_v2 = vunpack.i.h.bf16 %v3823_v56  ;;  %v3824_v36 = vunpack.i.l.bf16 %v3823_v56 }
0x17ed   : > { %v3014_v8 = vsel %vm6497_vm15, %v3824_v36, %v3825_v2  ;;  %v3015_v48 = vsel %vm6498_vm1, %v3825_v2, %v3824_v36 }
0x17ee   : > { %v3632_v30 = vpack.c.bf16 %v3008_v58, %v3015_v48  ;;  %v3636_v1 = vpack.c.bf16 %v3009_v61, %v3014_v8  ;;  %v2369_v8 = vmul.f32 0.0078125, %v5777_v40 }
0x1802   : > { %v3818_v57 = vpop.permute.xlu1 %3817 }
0x1803   : > { %v3820_v34 = vunpack.i.h.bf16 %v3818_v57  ;;  %v3819_v27 = vunpack.i.l.bf16 %v3818_v57 }
0x1805   : > { %v3022_v45 = vsel %vm6493_vm10, %v3819_v27, %v3820_v34  ;;  %v3023_v59 = vsel %vm6494_vm11, %v3820_v34, %v3819_v27 }
0x1806   : > { %v3024_v31 = vsel %vm6495_vm6, %v3022_v45, 0.0  ;;  %v3025_v32 = vsel %vm6496_vm0, %v3023_v59, 0.0 }
0x1807   : > { %v3028_v44 = vpack.c.bf16 %v3024_v31, %v3024_v31  ;;  %v3029_v26 = vpack.c.bf16 %v3025_v32, %v3025_v32 }
0x1809   : > { %v3041_v55 = vsel %vm6499_vm7, %v3028_v44, 0  ;;  %v3044_v54 = vsel %vm6500_vm2, %v3029_v26, 0  ;;  %v2368_v26 = vmul.f32 0.0078125, %v5775_v20 }
0x180a   : > { %3052 = vmatpush.bf16.msrb.mxu2 %v3041_v55  ;;  %3065 = vmatpush.bf16.msrb.mxu3 %v3044_v54  ;;  %v2371_v55 = vadd.f32 1e-05, %v2369_v8 }
0x180b   : > { %v2370_v48 = vadd.f32 1e-05, %v2368_v26 }
0x180c   : > { %vm2388_vm6 = vweird.f32 %v2371_v55 }
0x180d   : > { %3894 = vrsqrt.f32 %v2370_v48  ;;  %vm2378_vm10 = vweird.f32 %v2370_v48 }
0x180e   : > { %3633 = vmatpush.bf16.msk.msrb.mxu2 %vm4638_vm5, %v3632_v30  ;;  %3637 = vmatpush.bf16.msk.msrb.mxu3 %vm6486_vm8, %v3636_v1  ;;  %vm6503_vm5 = vcmask 130048   ;;  %3896 = vrsqrt.f32 %v2371_v55 }
0x180f   : > { %vm6504_vm8 = vmmov %vm6503_vm5 }
0x1810   : > { %vm6505_vm3 = vmmov %vm6503_vm5 }
0x1811   : > { %3634 = vmatmul.msk.bf16.vlgmr.msrb.gmra.mxu2 %vm6501_vm4, %v3030_v33  ;;  %3638 = vmatmul.msk.bf16.vlgmr.msrb.gmra.mxu3 %vm6502_vm9, %v3030_v33  ;;  %vm6506_vm12 = vmmov %vm6505_vm3 }
0x1812   : > { %3084 = vmatpush.msra.mxu2 %v5863_v14  ;;  %3104 = vmatpush.msra.mxu3 %v5869_v6 }
0x1813   : > { %v3895_v54 = vpop.eup %3894 }
0x1814   : > { %3085 = vmatpush.msra.mxu2 %v5875_v9  ;;  %3105 = vmatpush.msra.mxu3 %v5881_v5  ;;  %v3897_v30 = vpop.eup %3896  ;;  %v2373_v1 = vmul.f32 %v3895_v54, %v2370_v48  ;;  %vm2379_vm13 = vweird.f32 %v3895_v54 }
0x1815   : > { %v2383_v33 = vmul.f32 %v3897_v30, %v2371_v55  ;;  %vm2389_vm14 = vweird.f32 %v3897_v30  ;;  %vm2380_vm11 = vmor %vm2378_vm10, %vm2379_vm13  ;;  %vm6513_vm13 = vcmp.lt.s32.totalorder %v6449_v53, 125  ;;  %vm6515_vm10 = vcmask 1043456  }
0x1816   : > { %3086 = vmatpush.msra.mxu2 %v5887_v49  ;;  %3106 = vmatpush.msra.mxu3 %v5893_v63  ;;  %vm2390_vm0 = vmor %vm2388_vm6, %vm2389_vm14  ;;  %vm6517_vm6 = vcmp.lt.s32.totalorder %v6449_v53, 126 }
0x1817   : > { %vm6514_vm14 = vmmov %vm6513_vm13 }
0x1818   : > { %3087 = vmatpush.msra.mxu2 %v5899_v50  ;;  %3107 = vmatpush.msra.mxu3 %v5905_v17 }
0x181a   : > { %3088 = vmatpush.msra.mxu2 %v5911_v13  ;;  %3108 = vmatpush.msra.mxu3 %v5917_v19 }
0x181c   : > { %3089 = vmatpush.msra.mxu2 %v5923_v52  ;;  %3109 = vmatpush.msra.mxu3 %v5929_v43 }
0x181e   : > { %3090 = vmatpush.msra.mxu2 %v5935_v28  ;;  %3110 = vmatpush.msra.mxu3 %v5941_v7 }
0x1820   : > { %3091 = vmatpush.msra.mxu2 %v5947_v35  ;;  %3111 = vmatpush.msra.mxu3 %v5953_v47 }
0x1822   : > { %3092 = vmatpush.msra.mxu2 %v5959_v11  ;;  %3112 = vmatpush.msra.mxu3 %v5965_v10 }
0x1824   : > { %3093 = vmatpush.msra.mxu2 %v5651_v29  ;;  %3113 = vmatpush.msra.mxu3 %v5657_v4  ;;  %v3992_v29 = vld [vmem:[%s6239_s6 + $0x10] sm:$0xff]  ;;  %v3993_v4 = vld [vmem:[%s6239_s6 + $0x18] sm:$0xff] }
0x1826   : > { %3094 = vmatpush.msra.mxu2 %v5663_v21  ;;  %3114 = vmatpush.msra.mxu3 %v5669_v15  ;;  %v3994_v21 = vld [vmem:[%s6239_s6] sm:$0xff]  ;;  %v3995_v15 = vld [vmem:[%s6239_s6 + $0x8] sm:$0xff] }
0x1828   : > { %3095 = vmatpush.msra.mxu2 %v5675_v39  ;;  %3115 = vmatpush.msra.mxu3 %v5681_v23  ;;  %v3035_v39 = vpop.permute.xlu0 %3034 }
0x182a   : > { %3096 = vmatpush.msra.mxu2 %v5687_v51  ;;  %3116 = vmatpush.msra.mxu3 %v5693_v41 }
0x182c   : > { %3097 = vmatpush.msra.mxu2 %v5699_v60  ;;  %3117 = vmatpush.msra.mxu3 %v5705_v38 }
0x182e   : > { %3098 = vmatpush.msra.mxu2 %v5711_v18  ;;  %3118 = vmatpush.msra.mxu3 %v5717_v46 }
0x1830   : > { %3099 = vmatpush.msra.mxu2 %v5723_v22  ;;  %3119 = vmatpush.msra.mxu3 %v5729_v16 }
0x1832   : > { %3244 = vmatpush.msrb.mxu2 %v3992_v29  ;;  %3264 = vmatpush.msrb.mxu3 %v3993_v4  ;;  %v2374_v29 = vmul.f32 %v3895_v54, %v2373_v1 }
0x1834   : > { %3245 = vmatpush.msrb.mxu2 %v3994_v21  ;;  %3265 = vmatpush.msrb.mxu3 %v3995_v15  ;;  %v2384_v15 = vmul.f32 %v3897_v30, %v2383_v33 }
0x1836   : > { %v2385_v20 = vmul.f32 0.5, %v2384_v15 }
0x1894   : > { %v3055_v23 = vpop.f32.mrf.mxu2  ;;  %v3068_v51 = vpop.f32.mrf.mxu3 }
0x1895   : > { %v3056_v41 = vadd.f32 %v3055_v23, %v3035_v39  ;;  %v3069_v60 = vadd.f32 %v3068_v51, %v3035_v39 }
0x1897   : > { %v3072_v38 = vrot.slane %v3056_v41, 4  ;;  %v3078_v18 = vrot.slane %v3069_v60, 4 }
0x1899   : > { %v3073_v46 = vadd.f32 %v3072_v38, %v3056_v41  ;;  %v3079_v22 = vadd.f32 %v3078_v18, %v3069_v60  ;;  %v2386_v38 = vsub.f32 1.5, %v2385_v20 }
0x189b   : > { %v3074_v16 = vrot.slane %v3073_v46, 2  ;;  %v3080_v3 = vrot.slane %v3079_v22, 2 }
0x189c   : > { %v3057_v25 = vpop.f32.mrf.mxu2  ;;  %v3070_v14 = vpop.f32.mrf.mxu3 }
0x189d   : > { %v3075_v6 = vadd.f32 %v3074_v16, %v3073_v46  ;;  %v3081_v9 = vadd.f32 %v3080_v3, %v3079_v22  ;;  %v2387_v3 = vmul.f32 %v3897_v30, %v2386_v38 }
0x189f   : > { %v3076_v5 = vrot.slane %v3075_v6, 1  ;;  %v3082_v49 = vrot.slane %v3081_v9, 1 }
0x18a1   : > { %v3077_v63 = vadd.f32 %v3076_v5, %v3075_v6  ;;  %v3083_v50 = vadd.f32 %v3082_v49, %v3081_v9  ;;  %v2391_v49 = vsel %vm2390_vm0, %v3897_v30, %v2387_v3  ;;  %vm6518_vm0 = vmmov %vm6517_vm6 }
0x18a3   : > { %3100 = vmatmul.f32.vlgmr.msra.gmra.mxu2 %v3077_v63  ;;  %3120 = vmatmul.f32.vlgmr.msra.gmra.mxu3 %v3083_v50 }
0x1926   : > { %v3101_v17 = vpop.f32.mrf.mxu2  ;;  %v3121_v13 = vpop.f32.mrf.mxu3 }
0x1927   : > { %v3122_v19 = vadd.f32 %v3121_v13, %v3101_v17 }
0x1929   : > { %3639 = vmatmul.msk.f32.vlgmr.msrb.gmra.mxu0 %vm6503_vm5, %v3122_v19  ;;  %3640 = vmatmul.msk.f32.vlgmr.msrb.gmra.mxu1 %vm6504_vm8, %v3122_v19  ;;  %v2393_v19 = vperm.slane %v2391_v49, 0  ;;  %vm6509_vm5 = vcmp.lt.s32.totalorder %v6449_v53, 124 }
0x192a   : > { %vm6510_vm8 = vmmov %vm6509_vm5 }
0x19a6   : > { %v3144_v52 = vpop.f32.mrf.mxu0  ;;  %v3164_v43 = vpop.f32.mrf.mxu1 }
0x19a7   : > { %v3167_v28 = vmul.f32 0.0078125, %v3144_v52  ;;  %v3168_v7 = vmul.f32 0.0078125, %v3164_v43 }
0x19a9   : > { %v3169_v35 = vperm.slane %v3167_v28, 0  ;;  %v3170_v47 = vperm.slane %v3168_v7, 0  ;;  %v6507_v7 = vld [vmem:[#allocation25_spill] sm:$0xff] }
0x19ab   : > { %v6115_v11 = vsub.f32 %v3056_v41, %v3169_v35  ;;  %v6117_v10 = vsub.f32 %v3069_v60, %v3170_v47  ;;  %v2375_v60 = vmul.f32 0.5, %v2374_v29 }
0x19ad   : > { %v3173_v24 = vmul.f32 %v6115_v11, %v6115_v11  ;;  %v3174_v12 = vmul.f32 %v6117_v10, %v6117_v10  ;;  %v2376_v40 = vsub.f32 1.5, %v2375_v60 }
0x19af   : > { %v3175_v0 = vrot.slane %v3173_v24, 4  ;;  %v3181_v58 = vrot.slane %v3174_v12, 4  ;;  %v2377_v22 = vmul.f32 %v3895_v54, %v2376_v40 }
0x19b1   : > { %v3176_v61 = vadd.f32 %v3175_v0, %v3173_v24  ;;  %v3182_v62 = vadd.f32 %v3181_v58, %v3174_v12  ;;  %v2381_v9 = vsel %vm2380_vm11, %v3895_v54, %v2377_v22  ;;  %v2396_v12 = vld [vmem:[%s6236_s3 + $0x90] sm:$0xff]  ;;  %v6508_v0 = vld [vmem:[#allocation26_spill] sm:$0xff]  ;;  %vm6516_vm11 = vmmov %vm6515_vm10 }
0x19b2   : > { %v2392_v17 = vperm.slane %v2381_v9, 0  ;;  %v2395_v58 = vmul.f32 %v2393_v19, %v6508_v0  ;;  %v6523_v0 = vld [vmem:[#allocation6_spill] sm:$0xff] }
0x19b3   : > { %v3177_v56 = vrot.slane %v3176_v61, 2  ;;  %v3183_v57 = vrot.slane %v3182_v62, 2 }
0x19b4   : > { %v2394_v35 = vmul.f32 %v2392_v17, %v6507_v7 }
0x19b5   : > { %v3178_v34 = vadd.f32 %v3177_v56, %v3176_v61  ;;  %v3184_v27 = vadd.f32 %v3183_v57, %v3182_v62  ;;  %v3298_v61 = vld [vmem:[%s6236_s3 + $0xc0] sm:$0xff]  ;;  %v2397_v56 = vld [vmem:[%s6236_s3 + $0x98] sm:$0xff] }
0x19b7   : > { %v3179_v2 = vrot.slane %v3178_v34, 1  ;;  %v3185_v36 = vrot.slane %v3184_v27, 1 }
0x19b9   : > { %v3180_v45 = vadd.f32 %v3179_v2, %v3178_v34  ;;  %v3186_v59 = vadd.f32 %v3185_v36, %v3184_v27  ;;  %v3299_v34 = vld [vmem:[%s6236_s3 + $0xc8] sm:$0xff]  ;;  %v3302_v27 = vld [vmem:[%s6237_s4 + $0xc0] sm:$0xff]  ;;  %v2398_v36 = vmul.f32 %v2396_v12, %v2394_v35  ;;  %v6521_v12 = vld [vmem:[#allocation5_spill] sm:$0xff] }
0x19bb   : > { %3203 = vmatmul.f32.vlgmr.msra.gmra.mxu0 %v3180_v45  ;;  %3223 = vmatmul.f32.vlgmr.msra.gmra.mxu1 %v3186_v59  ;;  %v3303_v59 = vld [vmem:[%s6237_s4 + $0xc8] sm:$0xff] }
0x1a38   : > { %v3204_v31 = vpop.f32.mrf.mxu0  ;;  %v3224_v32 = vpop.f32.mrf.mxu1 }
0x1a39   : > { %v3225_v44 = vadd.f32 %v3224_v32, %v3204_v31  ;;  %v2399_v31 = vmul.f32 %v2397_v56, %v2395_v58 }
0x1a3b   : > { %3641 = vmatmul.msk.f32.vlgmr.msrb.gmra.mxu2 %vm6505_vm3, %v3225_v44  ;;  %3642 = vmatmul.msk.f32.vlgmr.msrb.gmra.mxu3 %vm6506_vm12, %v3225_v44  ;;  %v2401_v44 = vld [vmem:[%s6237_s4 + $0x98] sm:$0xff]  ;;  %vm6511_vm3 = vcmp.lt.s32.totalorder %v6476_v37, 12  ;;  %vm6512_vm12 = vcmp.lt.s32.totalorder %v6478_v42, 12 }
0x1a3c   : > { %v2403_v55 = vadd.f32 %v2401_v44, %v2399_v31 }
0x1abe   : > { %v3247_v4 = vpop.f32.mrf.mxu2  ;;  %v3267_v21 = vpop.f32.mrf.mxu3 }
0x1abf   : > { %v3270_v39 = vmul.f32 0.0078125, %v3247_v4  ;;  %v3271_v23 = vmul.f32 0.0078125, %v3267_v21  ;;  %v3387_v21 = vld [vmem:[%s6235_s2 + $0x68] sm:$0xff] }
0x1ac1   : > { %v3272_v51 = vadd.f32 1e-05, %v3270_v39  ;;  %v3273_v41 = vadd.f32 1e-05, %v3271_v23 }
0x1ac3   : > { %3898 = vrsqrt.f32 %v3272_v51  ;;  %vm3280_vm7 = vweird.f32 %v3272_v51  ;;  %vm3290_vm4 = vweird.f32 %v3273_v41 }
0x1ac4   : > { %3900 = vrsqrt.f32 %v3273_v41 }
0x1ac9   : > { %v3899_v18 = vpop.eup %3898 }
0x1aca   : > { %v3901_v46 = vpop.eup %3900  ;;  %v3275_v16 = vmul.f32 %v3899_v18, %v3272_v51  ;;  %vm3281_vm15 = vweird.f32 %v3899_v18 }
0x1acb   : > { %v3285_v25 = vmul.f32 %v3901_v46, %v3273_v41  ;;  %vm3291_vm1 = vweird.f32 %v3901_v46  ;;  %vm3282_vm2 = vmor %vm3280_vm7, %vm3281_vm15  ;;  %vm6519_vm15 = vcmp.lt.s32.totalorder %v6449_v53, 127  ;;  %vm6522_vm7 = vnez %v6521_v12 }
0x1acc   : > { %v3276_v14 = vmul.f32 %v3899_v18, %v3275_v16  ;;  %vm3292_vm9 = vmor %vm3290_vm4, %vm3291_vm1  ;;  %vm6525_vm4 = vcmp.lt.s32.totalorder %v6449_v53, 1 }
0x1acd   : > { %v3286_v6 = vmul.f32 %v3901_v46, %v3285_v25  ;;  %vm6520_vm1 = vmmov %vm6519_vm15 }
0x1ace   : > { %v3277_v5 = vmul.f32 0.5, %v3276_v14 }
0x1acf   : > { %v3287_v63 = vmul.f32 0.5, %v3286_v6 }
0x1ad0   : > { %v3278_v50 = vsub.f32 1.5, %v3277_v5 }
0x1ad1   : > { %v3288_v13 = vsub.f32 1.5, %v3287_v63 }
0x1ad2   : > { %v3279_v52 = vmul.f32 %v3899_v18, %v3278_v50 }
0x1ad3   : > { %v3289_v43 = vmul.f32 %v3901_v46, %v3288_v13 }
0x1ad4   : > { %v3283_v28 = vsel %vm3282_vm2, %v3899_v18, %v3279_v52  ;;  %vm6524_vm2 = vnez %v6523_v0 }
0x1ad5   : > { %v3294_v47 = vperm.slane %v3283_v28, 0  ;;  %v3293_v24 = vsel %vm3292_vm9, %v3901_v46, %v3289_v43  ;;  %vm6526_vm9 = vmmov %vm6525_vm4 }
0x1ad6   : > { %v3295_v62 = vperm.slane %v3293_v24, 0 }
0x1ad7   : > { %v3296_v57 = vmul.f32 %v3294_v47, %v6115_v11  ;;  %v2400_v11 = vld [vmem:[%s6237_s4 + $0x90] sm:$0xff] }
0x1ad8   : > { %v3297_v2 = vmul.f32 %v3295_v62, %v6117_v10  ;;  %v2402_v48 = vadd.f32 %v2400_v11, %v2398_v36  ;;  %v6529_v36 = vld [vmem:[#allocation7_spill] sm:$0xff] }
0x1ad9   : > { %v3300_v45 = vmul.f32 %v3298_v61, %v3296_v57 }
0x1ada   : > { %v3301_v32 = vmul.f32 %v3299_v34, %v3297_v2 }
0x1adb   : > { %v3304_v26 = vadd.f32 %v3302_v27, %v3300_v45  ;;  %v6531_v45 = vld [vmem:[#allocation8_spill] sm:$0xff] }
0x1adc   : > { %v3305_v8 = vadd.f32 %v3303_v59, %v3301_v32 }
0x1add   : > { %v3306_v10 = vmax.f32 %v3304_v26, 0.0 }
0x1ade   : > { %v3307_v54 = vmax.f32 %v3305_v8, 0.0 }
0x1adf   : > { %v3308_v30 = vadd.f32 %v3306_v10, %v2402_v48  ;;  %v6535_v10 = vld [vmem:[#allocation9_spill] sm:$0xff] }
0x1ae0   : > { %v3309_v1 = vadd.f32 %v3307_v54, %v2403_v55  ;;  %v6537_v55 = vld [vmem:[#allocation10_spill] sm:$0xff] }
0x1ae1   : > { %v3310_v33 = vmax.f32 %v3308_v30, 0.0 }
0x1ae2   : > { %v3311_v29 = vmax.f32 %v3309_v1, 0.0 }
0x1ae4   : > { %v3836_v4 = vpack.i.bf16 %v3311_v29, %v3310_v33 }
0x1ae6   : > { %3837 = vrot.lane.b32.xlu0 %v3836_v4, %s4005_s9  ;;  %3832 = vrot.lane.b32.xlu2 %v3836_v4, %s4007_s11 }
0x1ae7   : > { %3827 = vrot.lane.b32.xlu1 %v3836_v4, %s4004_s8 }
0x1aee   : > { %3852 = vrot.lane.b32.xlu0 %v3836_v4, %s4009_s13  ;;  %3847 = vrot.lane.b32.xlu2 %v3836_v4, %s4006_s10 }
0x1aef   : > { %3842 = vrot.lane.b32.xlu1 %v3836_v4, %s4008_s12  ;;  %s280_s12 = scalar_lea.vmem %s6240_s7, %s3492_s27 }
0x1af6   : > { %3390 = vperm.xlu0 %3734, %v3387_v21   ;;  %3862 = vrot.lane.b32.xlu2 %v3836_v4, %s4010_s14  ;;  %v3386_v21 = vld [vmem:[%s6234_s1 + $0x34] sm:$0xf] }
0x1af7   : > { %3857 = vrot.lane.b32.xlu1 %v3836_v4, %s4011_s15  ;;  %v6543_v4 = vld [vmem:[#allocation12_spill] sm:$0xff] }
0x1b40   : > { %v3833_v15 = vpop.permute.xlu2 %3832 }
0x1b41   : > { %v3835_v16 = vunpack.i.h.bf16 %v3833_v15  ;;  %v3834_v3 = vunpack.i.l.bf16 %v3833_v15 }
0x1b43   : > { %v3356_v42 = vsel %vm6517_vm6, %v3834_v3, %v3835_v16  ;;  %v3357_v50 = vsel %vm6518_vm0, %v3835_v16, %v3834_v3  ;;  %vm6539_vm6 = vcmp.lt.s32.totalorder %v6449_v53, 3 }
0x1b44   : > { %vm6540_vm0 = vmmov %vm6539_vm6 }
0x1b48   : > { %v3848_v18 = vpop.permute.xlu2 %3847 }
0x1b49   : > { %v3850_v47 = vunpack.i.h.bf16 %v3848_v18  ;;  %v3849_v24 = vunpack.i.l.bf16 %v3848_v18 }
0x1b50   : > { %v3863_v58 = vpop.permute.xlu2 %3862 }
0x1b51   : > { %v3865_v59 = vunpack.i.h.bf16 %v3863_v58  ;;  %v3864_v11 = vunpack.i.l.bf16 %v3863_v58 }
0x1b53   : > { %v3324_v54 = vsel %vm6539_vm6, %v3864_v11, %v3865_v59  ;;  %v3325_v30 = vsel %vm6540_vm0, %v3865_v59, %v3864_v11 }
0x1b58   : > { %v3838_v39 = vpop.permute.xlu0 %3837 }
0x1b59   : > { %v3828_v23 = vpop.permute.xlu1 %3827  ;;  %v3840_v60 = vunpack.i.h.bf16 %v3838_v39  ;;  %v3839_v20 = vunpack.i.l.bf16 %v3838_v39 }
0x1b5a   : > { %v3830_v51 = vunpack.i.h.bf16 %v3828_v23  ;;  %v3829_v41 = vunpack.i.l.bf16 %v3828_v23 }
0x1b5b   : > { %v3364_v6 = vsel %vm6513_vm13, %v3839_v20, %v3840_v60  ;;  %v3365_v9 = vsel %vm6514_vm14, %v3840_v60, %v3839_v20  ;;  %vm6533_vm13 = vcmp.lt.s32.totalorder %v6449_v53, 4 }
0x1b5c   : > { %v3372_v40 = vsel %vm6509_vm5, %v3829_v41, %v3830_v51  ;;  %v3373_v38 = vsel %vm6510_vm8, %v3830_v51, %v3829_v41  ;;  %v3644_v19 = vpack.c.bf16 %v3364_v6, %v3356_v42  ;;  %v3657_v52 = vpack.c.bf16 %v3365_v9, %v3357_v50  ;;  %vm6534_vm14 = vmmov %vm6533_vm13 }
0x1b5d   : > { %v3374_v46 = vsel %vm6511_vm3, %v3372_v40, 0.0  ;;  %v3375_v22 = vsel %vm6512_vm12, %v3373_v38, 0.0  ;;  %vm6527_vm5 = vcmp.lt.s32.totalorder %v6449_v53, 2  ;;  %vm6530_vm3 = vnez %v6529_v36 }
0x1b5e   : > { %v3384_v25 = vpack.c.bf16 %v3374_v46, %v3374_v46  ;;  %v3385_v14 = vpack.c.bf16 %v3375_v22, %v3375_v22  ;;  %v3332_v34 = vsel %vm6527_vm5, %v3849_v24, %v3850_v47  ;;  %vm6528_vm8 = vmmov %vm6527_vm5  ;;  %vm6532_vm12 = vnez %v6531_v45 }
0x1b5f   : > { %v3333_v27 = vsel %vm6528_vm8, %v3850_v47, %v3849_v24 }
0x1b60   : > { %v3397_v5 = vsel %vm6515_vm10, %v3384_v25, 0  ;;  %v3400_v49 = vsel %vm6516_vm11, %v3385_v14, 0  ;;  %v3853_v63 = vpop.permute.xlu0 %3852  ;;  %vm6536_vm10 = vnez %v6535_v10  ;;  %vm6538_vm11 = vnez %v6537_v55 }
0x1b61   : > { %v3843_v37 = vpop.permute.xlu1 %3842  ;;  %3405 = vmatpush.bf16.msra.mxu2 %v3397_v5  ;;  %3418 = vmatpush.bf16.msra.mxu3 %v3400_v49  ;;  %v3855_v43 = vunpack.i.h.bf16 %v3853_v63  ;;  %v3854_v28 = vunpack.i.l.bf16 %v3853_v63 }
0x1b62   : > { %v3845_v17 = vunpack.i.h.bf16 %v3843_v37  ;;  %v3844_v13 = vunpack.i.l.bf16 %v3843_v37 }
0x1b63   : > { %v3340_v56 = vsel %vm6525_vm4, %v3854_v28, %v3855_v43  ;;  %v3341_v57 = vsel %vm6526_vm9, %v3855_v43, %v3854_v28 }
0x1b64   : > { %v3348_v7 = vsel %vm6519_vm15, %v3844_v13, %v3845_v17  ;;  %v3349_v35 = vsel %vm6520_vm1, %v3845_v17, %v3844_v13  ;;  %v3650_v44 = vpack.c.bf16 %v3341_v57, %v3333_v27  ;;  %v3663_v26 = vpack.c.bf16 %v3340_v56, %v3332_v34 }
0x1b65   : > { %3645 = vmatpush.bf16.msk.msra.mxu2 %vm6522_vm7, %v3644_v19  ;;  %3658 = vmatpush.bf16.msk.msra.mxu3 %vm6524_vm2, %v3657_v52  ;;  %v3647_v61 = vpack.c.bf16 %v3348_v7, %v3310_v33  ;;  %v3660_v62 = vpack.c.bf16 %v3349_v35, %v3311_v29  ;;  %v6541_v29 = vld [vmem:[#allocation11_spill] sm:$0xff]  ;;  %vm6544_vm1 = vnez %v6543_v4  ;;  %vm6545_vm7 = vcmask 588800  }
0x1b66   : > { %vm6542_vm15 = vnez %v6541_v29  ;;  %vm6546_vm2 = vmmov %vm6545_vm7 }
0x1b68   : > { %v3391_v15 = vpop.permute.xlu0 %3390 }
0x1b69   : > { %v3858_v2 = vpop.permute.xlu1 %3857  ;;  %3648 = vmatpush.bf16.msk.msra.mxu2 %vm6530_vm3, %v3647_v61  ;;  %3661 = vmatpush.bf16.msk.msra.mxu3 %vm6532_vm12, %v3660_v62 }
0x1b6a   : > { %v3860_v31 = vunpack.i.h.bf16 %v3858_v2  ;;  %v3859_v32 = vunpack.i.l.bf16 %v3858_v2 }
0x1b6c   : > { %v3316_v8 = vsel %vm6533_vm13, %v3859_v32, %v3860_v31  ;;  %v3317_v48 = vsel %vm6534_vm14, %v3860_v31, %v3859_v32 }
0x1b6d   : > { %3651 = vmatpush.bf16.msk.msra.mxu2 %vm6536_vm10, %v3650_v44  ;;  %3664 = vmatpush.bf16.msk.msra.mxu3 %vm6538_vm11, %v3663_v26  ;;  %v3653_v1 = vpack.c.bf16 %v3325_v30, %v3317_v48  ;;  %v3666_v33 = vpack.c.bf16 %v3324_v54, %v3316_v8 }
0x1b71   : > { %3654 = vmatpush.bf16.msk.msra.mxu2 %vm6542_vm15, %v3653_v1  ;;  %3667 = vmatpush.bf16.msk.msra.mxu3 %vm6544_vm1, %v3666_v33 }
0x1b74   : > { %3655 = vmatmul.msk.bf16.vlgmr.msra.gmra.mxu2 %vm6545_vm7, %v3386_v21  ;;  %3668 = vmatmul.msk.bf16.vlgmr.msra.gmra.mxu3 %vm6546_vm2, %v3386_v21 }
0x1bf7   : > { %v3411_v53 = vpop.f32.mrf.mxu2  ;;  %v3424_v39 = vpop.f32.mrf.mxu3 }
0x1bf8   : > { %v3412_v23 = vadd.f32 %v3411_v53, %v3391_v15  ;;  %v3425_v51 = vadd.f32 %v3424_v39, %v3391_v15 }
0x1bfa   : > { %3428 = vst [vmem:[%s280_s12] sm:$0xff] %v3412_v23 }
0x1bfb   : > { %3429 = vst [vmem:[%s280_s12 + $0x8] sm:$0xff] %v3425_v51 }
0x1bff   : > { %v3413_v41 = vpop.f32.mrf.mxu2  ;;  %v3426_v60 = vpop.f32.mrf.mxu3 }
0x1c00 PF: > { %s17_s24 = sadd.s32 1, %s4002_s24  }
0x1c01   : > { %p14_p4 = scmp.ge.s32.totalorder %s17_s24, 4  }
0x1c03   :  { %16 = sbr.rel (!%p14_p4) target bundleno = 1 (0x1), region = 78 }

</bundles_post_ra>
